<compile_context>
chip_gen: v5e
topology: v5e:2x2
jax: 0.10.0
libtpu: 0.0.40
codegen_flags: <defaults>
</compile_context>

<pallas_src>
import jax
import jax.numpy as jnp
from jax import lax
from jax.experimental import pallas as pl
from jax.experimental.pallas import tpu as pltpu


def simple_gru_kernel(x_ref, lens_ref, wih_ref, bgi_ref,
                      whh_f_ref, whh_b_ref, bhhn_f_ref, bhhn_b_ref,
                      fcwf_ref, fcwb_ref, fcb_ref,
                      out_ref, gi_ref):
    T, B, E = x_ref.shape            # B here is the batch TILE (Bt)
    Hg = whh_f_ref.shape[0]          # lane-padded hidden size (multiple of 128)
    G = 3 * Hg                       # one direction's gate width

    # ---- hoisted input projection: one bf16 MXU matmul for all T and both directions ----
    x_flat = x_ref[...].reshape(T * B, E)                      # bf16, layout-preserving
    gi_all = jnp.dot(x_flat, wih_ref[...],
                     preferred_element_type=jnp.float32) + bgi_ref[...]
    # bf16 scratch store: halves writeback vst count + scratch VMEM (values feed sigmoid/tanh)
    gi_ref[...] = gi_all.reshape(T, B, 2 * G).astype(gi_ref.dtype)

    lens = lens_ref[...]             # (B, 1) int32
    bhhn_f = bhhn_f_ref[...]         # (1, Hg)  (broadcast hoisted out of the loop)
    bhhn_b = bhhn_b_ref[...]

    def cell(gi, h, whh_ref, bhhn):
        # gi already contains x@W_ih + b_ih + [b_hr, b_hz, 0]; only h@W_hh left per step.
        # Kept in f32: LHS is only Bt rows (EUP-latency-bound step) and f32 avoids bf16
        # rounding compounding through the recurrence.
        # TODO(synk): latch W_hh in the MXU across the unrolled loop via
        # pltpu.matmul_push_rhs/matmul_acc_lhs/matmul_pop once a bundle dump confirms
        # Mosaic re-pushes the RHS every step.
        gh = jnp.dot(h, whh_ref[...], preferred_element_type=jnp.float32)
        r = jax.nn.sigmoid(gi[:, 0:Hg] + gh[:, 0:Hg])          # bf16 + f32 -> f32
        z = jax.nn.sigmoid(gi[:, Hg:2 * Hg] + gh[:, Hg:2 * Hg])
        n = jnp.tanh(gi[:, 2 * Hg:G] + r * (gh[:, 2 * Hg:G] + bhhn))
        return (1.0 - z) * n + z * h

    def body(i, carry):
        h_f, h_b = carry
        t_b = T - 1 - i
        gi_f = gi_ref[i]             # (B, 2G), leading-axis index into VMEM scratch
        gi_b = gi_ref[t_b]
        hf_new = cell(gi_f[:, 0:G], h_f, whh_f_ref, bhhn_f)
        hb_new = cell(gi_b[:, G:2 * G], h_b, whh_b_ref, bhhn_b)
        h_f = jnp.where(lens > i, hf_new, h_f)       # freeze once past valid length
        h_b = jnp.where(lens > t_b, hb_new, h_b)     # only valid timesteps contribute
        return h_f, h_b

    h0 = jnp.zeros((B, Hg), jnp.float32)
    unroll = True if T <= 16 else 8                  # cap unroll for long sequences
    h_f, h_b = lax.fori_loop(0, T, body, (h0, h0), unroll=unroll)

    # relu(concat(hf, hb)) @ W_fc.T + b  ==  sum(relu(hf)*w1) + sum(relu(hb)*w2) + b
    hf = jnp.maximum(h_f, 0.0)
    hb = jnp.maximum(h_b, 0.0)
    logit = (jnp.sum(hf * fcwf_ref[...], axis=-1, keepdims=True)
             + jnp.sum(hb * fcwb_ref[...], axis=-1, keepdims=True)
             + fcb_ref[...])
    out_ref[...] = jnp.broadcast_to(jax.nn.sigmoid(logit), out_ref.shape)  # lane-dense store


def _ceil_to(x, m):
    return ((x + m - 1) // m) * m


def _pad_gates(w, H, Hg):
    """(rows, 3H) in [r, z, n] gate order -> (rows, 3Hg), each gate zero-padded to Hg lanes."""
    parts = [jnp.pad(w[:, g * H:(g + 1) * H], ((0, 0), (0, Hg - H))) for g in range(3)]
    return jnp.concatenate(parts, axis=1)


def prepare_kernel_params(params, Hg):
    H = params["whh_f"].shape[0]

    def one_dir(wih, whh, bih, bhh):
        wih_p = _pad_gates(wih, H, Hg)                                       # (E, 3Hg)
        whh_p = jnp.pad(_pad_gates(whh, H, Hg), ((0, Hg - H), (0, 0)))       # (Hg, 3Hg)
        # fold b_ih (all gates) + b_hh (r,z only) into the hoisted projection bias
        bhh_rz = jnp.concatenate([bhh[:, :2 * H], jnp.zeros((1, H), bhh.dtype)], axis=1)
        bgi_p = _pad_gates(bih + bhh_rz, H, Hg)                              # (1, 3Hg)
        bhhn_p = jnp.pad(bhh[:, 2 * H:], ((0, 0), (0, Hg - H)))              # (1, Hg)
        return wih_p, whh_p, bgi_p, bhhn_p

    wif, whf, bgf, bnf = one_dir(params["wih_f"], params["whh_f"],
                                 params["bih_f"], params["bhh_f"])
    wib, whb, bgb, bnb = one_dir(params["wih_b"], params["whh_b"],
                                 params["bih_b"], params["bhh_b"])
    return {
        "wih_cat": jnp.concatenate([wif, wib], axis=1).astype(jnp.bfloat16),  # (E, 6Hg) bf16
        "bgi_cat": jnp.concatenate([bgf, bgb], axis=1),   # (1, 6Hg) f32 (added post-dot)
        "whh_f": whf, "whh_b": whb,                       # f32 (recurrence kept f32)
        "bhhn_f": bnf, "bhhn_b": bnb,
        "fcw_f": jnp.pad(params["fcw_f"].T, ((0, 0), (0, Hg - H))),  # (1, Hg)
        "fcw_b": jnp.pad(params["fcw_b"].T, ((0, 0), (0, Hg - H))),
        "fcb": params["fcb"],
    }


def _vmem_estimate(T, Bt, E, Hg):
    G6 = 6 * Hg
    b = 0
    b += 2 * T * Bt * E * 2            # x (bf16, double-buffered block)
    b += 2 * Bt * 1 * 4                # lens block
    b += E * G6 * 2 + G6 * 4           # wih_cat (bf16) + bgi (resident)
    b += 2 * (Hg * 3 * Hg * 4)         # whh_f / whh_b
    b += 4 * (Hg * 4) + 4              # bhhn_f/b, fcw_f/b, fcb
    b += 2 * Bt * 128 * 4              # out block (double-buffered)
    b += T * Bt * G6 * 2               # gi scratch (bf16)
    return b


def simple_gru_forward(params, input_var, input_len, *, batch_tile=None):
    # TODO(synk): dropout1/dropout2 are treated as identity (inference / eval mode).
    # TODO(synk): for very long sequences, chunk the hoisted projection over T
    #             (pltpu.emit_pipeline with a (Tc, Bt, 6Hg) double-buffered scratch) and
    #             stream x / gather the embedding in-kernel (pl.ANY + make_async_copy);
    #             unnecessary at these sizes.
    B, T = input_var.shape
    H = params["whh_f"].shape[0]
    Hg = _ceil_to(H, 128)                  # lane-aligned gate block

    if batch_tile is None:
        # >=2 tiles once the batch allows it, so the "parallel" grid axis feeds v7x's two
        # TensorCores; cap the tile (<=256 rows) so x / gi scratch stay VMEM-resident.
        n_tiles = 1 if B <= 8 else max(2, pl.cdiv(B, 256))
        batch_tile = _ceil_to(pl.cdiv(B, n_tiles), 16 if n_tiles > 1 else 8)
    Bt = batch_tile
    n_tiles = pl.cdiv(B, Bt)
    B_pad = Bt * n_tiles

    kp = prepare_kernel_params(params, Hg)

    # gather embedding directly into time-major (T, B, E) bf16: only the int32 index matrix
    # is transposed, and the gathered activations move at half the bytes.
    x = jnp.take(params["embed"], input_var.T, axis=0).astype(jnp.bfloat16)   # (T, B, E)
    x = jnp.pad(x, ((0, 0), (0, B_pad - B), (0, 0)))
    lens = jnp.pad(input_len.astype(jnp.int32), (0, B_pad - B)).reshape(-1, 1)  # pads: len=0
    E = x.shape[-1]

    vmem_limit = min(64 * 1024 * 1024,
                     max(32 * 1024 * 1024, 2 * _vmem_estimate(T, Bt, E, Hg) + (4 << 20)))

    args = (x, lens, kp["wih_cat"], kp["bgi_cat"],
            kp["whh_f"], kp["whh_b"], kp["bhhn_f"], kp["bhhn_b"],
            kp["fcw_f"], kp["fcw_b"], kp["fcb"])

    weight_spec = pl.BlockSpec(memory_space=pltpu.MemorySpace.VMEM)   # resident, not tiled
    out = pl.pallas_call(
        simple_gru_kernel,
        out_shape=jax.ShapeDtypeStruct((B_pad, 128), jnp.float32),
        grid=(n_tiles,),
        in_specs=[
            pl.BlockSpec((T, Bt, E), lambda b: (0, b, 0)),   # x: batch-tiled
            pl.BlockSpec((Bt, 1), lambda b: (b, 0)),         # lens: batch-tiled
        ] + [weight_spec] * 9,
        out_specs=pl.BlockSpec((Bt, 128), lambda b: (b, 0)),
        scratch_shapes=[pltpu.VMEM((T, Bt, 6 * Hg), jnp.bfloat16)],   # hoisted projections
        compiler_params=pltpu.CompilerParams(
            dimension_semantics=("parallel",),                # batch tiles are independent
            vmem_limit_bytes=int(vmem_limit)),
    )(*args)
    return out[:B, :1]


def init_params(key, vocab, embed_dim, hidden):
    ks = jax.random.split(key, 12)
    s = 1.0 / float(jnp.sqrt(hidden))
    sf = 1.0 / float(jnp.sqrt(2 * hidden))

    def u(k, shape, scale):
        return jax.random.uniform(k, shape, jnp.float32, -scale, scale)

    return {
        "embed": jax.random.normal(ks[0], (vocab, embed_dim), jnp.float32) * 0.1,
        "wih_f": u(ks[1], (embed_dim, 3 * hidden), s),
        "whh_f": u(ks[2], (hidden, 3 * hidden), s),
        "bih_f": u(ks[3], (1, 3 * hidden), s),
        "bhh_f": u(ks[4], (1, 3 * hidden), s),
        "wih_b": u(ks[5], (embed_dim, 3 * hidden), s),
        "whh_b": u(ks[6], (hidden, 3 * hidden), s),
        "bih_b": u(ks[7], (1, 3 * hidden), s),
        "bhh_b": u(ks[8], (1, 3 * hidden), s),
        "fcw_f": u(ks[9], (hidden, 1), sf),
        "fcw_b": u(ks[10], (hidden, 1), sf),
        "fcb": u(ks[11], (1, 1), sf),
    }


def reference_forward(params, input_var, input_len):
    """Pure-JAX f32 reference of the PyTorch forward (eval mode)."""
    emb = jnp.take(params["embed"], input_var, axis=0)  # (B, T, E)
    B, T, _ = emb.shape
    H = params["whh_f"].shape[0]
    lens = input_len.reshape(-1, 1)

    def cell(x_t, h, wih, whh, bih, bhh):
        gi = x_t @ wih + bih
        gh = h @ whh + bhh
        r = jax.nn.sigmoid(gi[:, :H] + gh[:, :H])
        z = jax.nn.sigmoid(gi[:, H:2 * H] + gh[:, H:2 * H])
        n = jnp.tanh(gi[:, 2 * H:] + r * gh[:, 2 * H:])
        return (1.0 - z) * n + z * h

    h_f = jnp.zeros((B, H), jnp.float32)
    for t in range(T):
        h_new = cell(emb[:, t, :], h_f, params["wih_f"], params["whh_f"],
                     params["bih_f"], params["bhh_f"])
        h_f = jnp.where(lens > t, h_new, h_f)

    h_b = jnp.zeros((B, H), jnp.float32)
    for t in range(T - 1, -1, -1):
        h_new = cell(emb[:, t, :], h_b, params["wih_b"], params["whh_b"],
                     params["bih_b"], params["bhh_b"])
        h_b = jnp.where(lens > t, h_new, h_b)

    feat = jax.nn.relu(jnp.concatenate([h_f, h_b], axis=1))
    w = jnp.concatenate([params["fcw_f"], params["fcw_b"]], axis=0)  # (2H, 1)
    return jax.nn.sigmoid(feat @ w + params["fcb"])


if __name__ == "__main__":
    B, T, vocab, E, H = 2, 8, 50, 32, 32
    key = jax.random.PRNGKey(0)
    pkey, ikey = jax.random.split(key)

    params = init_params(pkey, vocab, E, H)
    input_var = jax.random.randint(ikey, (B, T), 0, vocab, dtype=jnp.int32)
    # lengths sorted descending (pack_padded_sequence contract), <= T
    input_len = jnp.array([8, 5], dtype=jnp.int32)

    out = simple_gru_forward(params, input_var, input_len)
    out = jax.block_until_ready(out)

    ref = reference_forward(params, input_var, input_len)
    assert out.shape == (B, 1)
    # tolerance slightly loosened vs the all-f32 version: the hoisted projection runs in
    # bf16 (f32 accumulation) and gi is stored in bf16; the recurrence itself stays f32.
    assert jnp.allclose(out, ref, atol=2e-3, rtol=2e-3), (out, ref)
    print("KERNEL_OK")
</pallas_src>

<mosaic_0001>
module attributes {stable_mosaic.version = 11 : i64} {
  func.func @simple_gru_kernel(%arg0: i32, %arg1: memref<8x8x32xbf16, #tpu.memory_space<vmem>>, %arg2: memref<8x1xi32, #tpu.memory_space<vmem>>, %arg3: memref<32x768xbf16, #tpu.memory_space<vmem>>, %arg4: memref<1x768xf32, #tpu.memory_space<vmem>>, %arg5: memref<128x384xf32, #tpu.memory_space<vmem>>, %arg6: memref<128x384xf32, #tpu.memory_space<vmem>>, %arg7: memref<1x128xf32, #tpu.memory_space<vmem>>, %arg8: memref<1x128xf32, #tpu.memory_space<vmem>>, %arg9: memref<1x128xf32, #tpu.memory_space<vmem>>, %arg10: memref<1x128xf32, #tpu.memory_space<vmem>>, %arg11: memref<1x1xf32, #tpu.memory_space<vmem>>, %arg12: memref<8x128xf32, #tpu.memory_space<vmem>>, %arg13: memref<8x8x768xbf16, #tpu.memory_space<vmem>>) attributes {dimension_semantics = [#tpu.dimension_semantics<parallel>], iteration_bounds = array<i64: 1>, scalar_prefetch = 0 : i64, scratch_operands = 1 : i64, tpu.core_type = #tpu.core_type<tc>, window_params = [{transform_indices = @transform_0, window_bounds = array<i64: 8, 8, 32>}, {transform_indices = @transform_1, window_bounds = array<i64: 8, 1>}, {pipeline_mode = #tpu.pipeline_mode<synchronous>, transform_indices = @transform_2, window_bounds = array<i64: 32, 768>}, {pipeline_mode = #tpu.pipeline_mode<synchronous>, transform_indices = @transform_3, window_bounds = array<i64: 1, 768>}, {pipeline_mode = #tpu.pipeline_mode<synchronous>, transform_indices = @transform_4, window_bounds = array<i64: 128, 384>}, {pipeline_mode = #tpu.pipeline_mode<synchronous>, transform_indices = @transform_5, window_bounds = array<i64: 128, 384>}, {pipeline_mode = #tpu.pipeline_mode<synchronous>, transform_indices = @transform_6, window_bounds = array<i64: 1, 128>}, {pipeline_mode = #tpu.pipeline_mode<synchronous>, transform_indices = @transform_7, window_bounds = array<i64: 1, 128>}, {pipeline_mode = #tpu.pipeline_mode<synchronous>, transform_indices = @transform_8, window_bounds = array<i64: 1, 128>}, {pipeline_mode = #tpu.pipeline_mode<synchronous>, transform_indices = @transform_9, window_bounds = array<i64: 1, 128>}, {pipeline_mode = #tpu.pipeline_mode<synchronous>, transform_indices = @transform_10, window_bounds = array<i64: 1, 1>}, {transform_indices = @transform_11, window_bounds = array<i64: 8, 128>}]} {
    %c0 = arith.constant 0 : index
    %c0_0 = arith.constant 0 : index
    %c0_1 = arith.constant 0 : index
    %0 = vector.load %arg1[%c0, %c0_0, %c0_1] : memref<8x8x32xbf16, #tpu.memory_space<vmem>>, vector<8x8x32xbf16>
    %1 = vector.shape_cast %0 : vector<8x8x32xbf16> to vector<64x32xbf16>
    %c0_2 = arith.constant 0 : index
    %c0_3 = arith.constant 0 : index
    %2 = vector.load %arg3[%c0_2, %c0_3] : memref<32x768xbf16, #tpu.memory_space<vmem>>, vector<32x768xbf16>
    %cst = arith.constant dense<0.000000e+00> : vector<64x768xf32>
    %3 = tpu.matmul %1, %2, %cst {dimension_numbers = #tpu.dot_dimension_numbers<[1], [0], [0], [1], [0, 0, 1, 1], [], []>} : vector<64x32xbf16>, vector<32x768xbf16>, vector<64x768xf32> -> vector<64x768xf32>
    %c0_4 = arith.constant 0 : index
    %c0_5 = arith.constant 0 : index
    %4 = vector.load %arg4[%c0_4, %c0_5] : memref<1x768xf32, #tpu.memory_space<vmem>>, vector<1x768xf32>
    %5 = vector.broadcast %4 : vector<1x768xf32> to vector<64x768xf32>
    %6 = arith.addf %3, %5 : vector<64x768xf32>
    %7 = vector.shape_cast %6 : vector<64x768xf32> to vector<8x8x768xf32>
    %8 = arith.truncf %7 : vector<8x8x768xf32> to vector<8x8x768xbf16>
    %c0_6 = arith.constant 0 : index
    %c0_7 = arith.constant 0 : index
    %c0_8 = arith.constant 0 : index
    %9 = vector.load %arg13[%c0_6, %c0_7, %c0_8] : memref<8x8x768xbf16, #tpu.memory_space<vmem>>, vector<8x8x768xbf16>
    tpu.vector_store %arg13[%c0_6, %c0_7, %c0_8], %8 {strides = array<i32>} : memref<8x8x768xbf16, #tpu.memory_space<vmem>>, vector<8x8x768xbf16>,
    %c0_9 = arith.constant 0 : index
    %c0_10 = arith.constant 0 : index
    %10 = vector.load %arg2[%c0_9, %c0_10] : memref<8x1xi32, #tpu.memory_space<vmem>>, vector<8x1xi32>
    %c0_11 = arith.constant 0 : index
    %c0_12 = arith.constant 0 : index
    %11 = vector.load %arg7[%c0_11, %c0_12] : memref<1x128xf32, #tpu.memory_space<vmem>>, vector<1x128xf32>
    %c0_13 = arith.constant 0 : index
    %c0_14 = arith.constant 0 : index
    %12 = vector.load %arg8[%c0_13, %c0_14] : memref<1x128xf32, #tpu.memory_space<vmem>>, vector<1x128xf32>
    %cst_15 = arith.constant 0.000000e+00 : f32
    %13 = vector.broadcast %cst_15 : f32 to vector<8x128xf32>
    %c0_i32 = arith.constant 0 : i32
    %c7_i32 = arith.constant 7 : i32
    %14 = arith.subi %c7_i32, %c0_i32 : i32
    %15 = arith.index_cast %c0_i32 : i32 to index
    %c0_16 = arith.constant 0 : index
    %c0_17 = arith.constant 0 : index
    %16 = vector.load %arg13[%15, %c0_16, %c0_17] : memref<8x8x768xbf16, #tpu.memory_space<vmem>>, vector<1x8x768xbf16>
    %17 = vector.shape_cast %16 : vector<1x8x768xbf16> to vector<8x768xbf16>
    %18 = arith.index_cast %14 : i32 to index
    %c0_18 = arith.constant 0 : index
    %c0_19 = arith.constant 0 : index
    %19 = vector.load %arg13[%18, %c0_18, %c0_19] : memref<8x8x768xbf16, #tpu.memory_space<vmem>>, vector<1x8x768xbf16>
    %20 = vector.shape_cast %19 : vector<1x8x768xbf16> to vector<8x768xbf16>
    %21 = vector.extract_strided_slice %17 {offsets = [0, 0], sizes = [8, 384], strides = [1, 1]} : vector<8x768xbf16> to vector<8x384xbf16>
    %c0_20 = arith.constant 0 : index
    %c0_21 = arith.constant 0 : index
    %22 = vector.load %arg5[%c0_20, %c0_21] : memref<128x384xf32, #tpu.memory_space<vmem>>, vector<128x384xf32>
    %cst_22 = arith.constant dense<0.000000e+00> : vector<8x384xf32>
    %23 = tpu.matmul %13, %22, %cst_22 {dimension_numbers = #tpu.dot_dimension_numbers<[1], [0], [0], [1], [0, 0, 1, 1], [], []>} : vector<8x128xf32>, vector<128x384xf32>, vector<8x384xf32> -> vector<8x384xf32>
    %24 = vector.extract_strided_slice %21 {offsets = [0, 0], sizes = [8, 128], strides = [1, 1]} : vector<8x384xbf16> to vector<8x128xbf16>
    %25 = vector.extract_strided_slice %23 {offsets = [0, 0], sizes = [8, 128], strides = [1, 1]} : vector<8x384xf32> to vector<8x128xf32>
    %26 = arith.extf %24 : vector<8x128xbf16> to vector<8x128xf32>
    %27 = arith.addf %26, %25 : vector<8x128xf32>
    %28 = arith.negf %27 : vector<8x128xf32>
    %29 = math.exp %28 : vector<8x128xf32>
    %cst_23 = arith.constant 1.000000e+00 : f32
    %30 = vector.broadcast %cst_23 : f32 to vector<8x128xf32>
    %31 = arith.addf %30, %29 : vector<8x128xf32>
    %32 = arith.divf %30, %31 : vector<8x128xf32>
    %33 = vector.extract_strided_slice %21 {offsets = [0, 128], sizes = [8, 128], strides = [1, 1]} : vector<8x384xbf16> to vector<8x128xbf16>
    %34 = vector.extract_strided_slice %23 {offsets = [0, 128], sizes = [8, 128], strides = [1, 1]} : vector<8x384xf32> to vector<8x128xf32>
    %35 = arith.extf %33 : vector<8x128xbf16> to vector<8x128xf32>
    %36 = arith.addf %35, %34 : vector<8x128xf32>
    %37 = arith.negf %36 : vector<8x128xf32>
    %38 = math.exp %37 : vector<8x128xf32>
    %cst_24 = arith.constant 1.000000e+00 : f32
    %39 = vector.broadcast %cst_24 : f32 to vector<8x128xf32>
    %40 = arith.addf %39, %38 : vector<8x128xf32>
    %41 = arith.divf %39, %40 : vector<8x128xf32>
    %42 = vector.extract_strided_slice %21 {offsets = [0, 256], sizes = [8, 128], strides = [1, 1]} : vector<8x384xbf16> to vector<8x128xbf16>
    %43 = vector.extract_strided_slice %23 {offsets = [0, 256], sizes = [8, 128], strides = [1, 1]} : vector<8x384xf32> to vector<8x128xf32>
    %44 = vector.broadcast %11 : vector<1x128xf32> to vector<8x128xf32>
    %45 = arith.addf %43, %44 : vector<8x128xf32>
    %46 = arith.mulf %32, %45 : vector<8x128xf32>
    %47 = arith.extf %42 : vector<8x128xbf16> to vector<8x128xf32>
    %48 = arith.addf %47, %46 : vector<8x128xf32>
    %49 = math.tanh %48 : vector<8x128xf32>
    %cst_25 = arith.constant 1.000000e+00 : f32
    %50 = vector.broadcast %cst_25 : f32 to vector<8x128xf32>
    %51 = arith.subf %50, %41 : vector<8x128xf32>
    %52 = arith.mulf %51, %49 : vector<8x128xf32>
    %53 = arith.mulf %41, %13 : vector<8x128xf32>
    %54 = arith.addf %52, %53 : vector<8x128xf32>
    %55 = vector.extract_strided_slice %20 {offsets = [0, 384], sizes = [8, 384], strides = [1, 1]} : vector<8x768xbf16> to vector<8x384xbf16>
    %c0_26 = arith.constant 0 : index
    %c0_27 = arith.constant 0 : index
    %56 = vector.load %arg6[%c0_26, %c0_27] : memref<128x384xf32, #tpu.memory_space<vmem>>, vector<128x384xf32>
    %cst_28 = arith.constant dense<0.000000e+00> : vector<8x384xf32>
    %57 = tpu.matmul %13, %56, %cst_28 {dimension_numbers = #tpu.dot_dimension_numbers<[1], [0], [0], [1], [0, 0, 1, 1], [], []>} : vector<8x128xf32>, vector<128x384xf32>, vector<8x384xf32> -> vector<8x384xf32>
    %58 = vector.extract_strided_slice %55 {offsets = [0, 0], sizes = [8, 128], strides = [1, 1]} : vector<8x384xbf16> to vector<8x128xbf16>
    %59 = vector.extract_strided_slice %57 {offsets = [0, 0], sizes = [8, 128], strides = [1, 1]} : vector<8x384xf32> to vector<8x128xf32>
    %60 = arith.extf %58 : vector<8x128xbf16> to vector<8x128xf32>
    %61 = arith.addf %60, %59 : vector<8x128xf32>
    %62 = arith.negf %61 : vector<8x128xf32>
    %63 = math.exp %62 : vector<8x128xf32>
    %cst_29 = arith.constant 1.000000e+00 : f32
    %64 = vector.broadcast %cst_29 : f32 to vector<8x128xf32>
    %65 = arith.addf %64, %63 : vector<8x128xf32>
    %66 = arith.divf %64, %65 : vector<8x128xf32>
    %67 = vector.extract_strided_slice %55 {offsets = [0, 128], sizes = [8, 128], strides = [1, 1]} : vector<8x384xbf16> to vector<8x128xbf16>
    %68 = vector.extract_strided_slice %57 {offsets = [0, 128], sizes = [8, 128], strides = [1, 1]} : vector<8x384xf32> to vector<8x128xf32>
    %69 = arith.extf %67 : vector<8x128xbf16> to vector<8x128xf32>
    %70 = arith.addf %69, %68 : vector<8x128xf32>
    %71 = arith.negf %70 : vector<8x128xf32>
    %72 = math.exp %71 : vector<8x128xf32>
    %cst_30 = arith.constant 1.000000e+00 : f32
    %73 = vector.broadcast %cst_30 : f32 to vector<8x128xf32>
    %74 = arith.addf %73, %72 : vector<8x128xf32>
    %75 = arith.divf %73, %74 : vector<8x128xf32>
    %76 = vector.extract_strided_slice %55 {offsets = [0, 256], sizes = [8, 128], strides = [1, 1]} : vector<8x384xbf16> to vector<8x128xbf16>
    %77 = vector.extract_strided_slice %57 {offsets = [0, 256], sizes = [8, 128], strides = [1, 1]} : vector<8x384xf32> to vector<8x128xf32>
    %78 = vector.broadcast %12 : vector<1x128xf32> to vector<8x128xf32>
    %79 = arith.addf %77, %78 : vector<8x128xf32>
    %80 = arith.mulf %66, %79 : vector<8x128xf32>
    %81 = arith.extf %76 : vector<8x128xbf16> to vector<8x128xf32>
    %82 = arith.addf %81, %80 : vector<8x128xf32>
    %83 = math.tanh %82 : vector<8x128xf32>
    %cst_31 = arith.constant 1.000000e+00 : f32
    %84 = vector.broadcast %cst_31 : f32 to vector<8x128xf32>
    %85 = arith.subf %84, %75 : vector<8x128xf32>
    %86 = arith.mulf %85, %83 : vector<8x128xf32>
    %87 = arith.mulf %75, %13 : vector<8x128xf32>
    %88 = arith.addf %86, %87 : vector<8x128xf32>
    %89 = vector.broadcast %c0_i32 : i32 to vector<8x1xi32>
    %90 = arith.cmpi sgt, %10, %89 : vector<8x1xi32>
    %91 = vector.shape_cast %90 : vector<8x1xi1> to vector<8x1xi1>
    %92 = vector.broadcast %91 : vector<8x1xi1> to vector<8x128xi1>
    %93 = arith.select %92, %54, %13 : vector<8x128xi1>, vector<8x128xf32>
    %94 = vector.broadcast %14 : i32 to vector<8x1xi32>
    %95 = arith.cmpi sgt, %10, %94 : vector<8x1xi32>
    %96 = vector.shape_cast %95 : vector<8x1xi1> to vector<8x1xi1>
    %97 = vector.broadcast %96 : vector<8x1xi1> to vector<8x128xi1>
    %98 = arith.select %97, %88, %13 : vector<8x128xi1>, vector<8x128xf32>
    %c1_i32 = arith.constant 1 : i32
    %c7_i32_32 = arith.constant 7 : i32
    %99 = arith.subi %c7_i32_32, %c1_i32 : i32
    %100 = arith.index_cast %c1_i32 : i32 to index
    %c0_33 = arith.constant 0 : index
    %c0_34 = arith.constant 0 : index
    %101 = vector.load %arg13[%100, %c0_33, %c0_34] : memref<8x8x768xbf16, #tpu.memory_space<vmem>>, vector<1x8x768xbf16>
    %102 = vector.shape_cast %101 : vector<1x8x768xbf16> to vector<8x768xbf16>
    %103 = arith.index_cast %99 : i32 to index
    %c0_35 = arith.constant 0 : index
    %c0_36 = arith.constant 0 : index
    %104 = vector.load %arg13[%103, %c0_35, %c0_36] : memref<8x8x768xbf16, #tpu.memory_space<vmem>>, vector<1x8x768xbf16>
    %105 = vector.shape_cast %104 : vector<1x8x768xbf16> to vector<8x768xbf16>
    %106 = vector.extract_strided_slice %102 {offsets = [0, 0], sizes = [8, 384], strides = [1, 1]} : vector<8x768xbf16> to vector<8x384xbf16>
    %c0_37 = arith.constant 0 : index
    %c0_38 = arith.constant 0 : index
    %107 = vector.load %arg5[%c0_37, %c0_38] : memref<128x384xf32, #tpu.memory_space<vmem>>, vector<128x384xf32>
    %cst_39 = arith.constant dense<0.000000e+00> : vector<8x384xf32>
    %108 = tpu.matmul %93, %107, %cst_39 {dimension_numbers = #tpu.dot_dimension_numbers<[1], [0], [0], [1], [0, 0, 1, 1], [], []>} : vector<8x128xf32>, vector<128x384xf32>, vector<8x384xf32> -> vector<8x384xf32>
    %109 = vector.extract_strided_slice %106 {offsets = [0, 0], sizes = [8, 128], strides = [1, 1]} : vector<8x384xbf16> to vector<8x128xbf16>
    %110 = vector.extract_strided_slice %108 {offsets = [0, 0], sizes = [8, 128], strides = [1, 1]} : vector<8x384xf32> to vector<8x128xf32>
    %111 = arith.extf %109 : vector<8x128xbf16> to vector<8x128xf32>
    %112 = arith.addf %111, %110 : vector<8x128xf32>
    %113 = arith.negf %112 : vector<8x128xf32>
    %114 = math.exp %113 : vector<8x128xf32>
    %cst_40 = arith.constant 1.000000e+00 : f32
    %115 = vector.broadcast %cst_40 : f32 to vector<8x128xf32>
    %116 = arith.addf %115, %114 : vector<8x128xf32>
    %117 = arith.divf %115, %116 : vector<8x128xf32>
    %118 = vector.extract_strided_slice %106 {offsets = [0, 128], sizes = [8, 128], strides = [1, 1]} : vector<8x384xbf16> to vector<8x128xbf16>
    %119 = vector.extract_strided_slice %108 {offsets = [0, 128], sizes = [8, 128], strides = [1, 1]} : vector<8x384xf32> to vector<8x128xf32>
    %120 = arith.extf %118 : vector<8x128xbf16> to vector<8x128xf32>
    %121 = arith.addf %120, %119 : vector<8x128xf32>
    %122 = arith.negf %121 : vector<8x128xf32>
    %123 = math.exp %122 : vector<8x128xf32>
    %cst_41 = arith.constant 1.000000e+00 : f32
    %124 = vector.broadcast %cst_41 : f32 to vector<8x128xf32>
    %125 = arith.addf %124, %123 : vector<8x128xf32>
    %126 = arith.divf %124, %125 : vector<8x128xf32>
    %127 = vector.extract_strided_slice %106 {offsets = [0, 256], sizes = [8, 128], strides = [1, 1]} : vector<8x384xbf16> to vector<8x128xbf16>
    %128 = vector.extract_strided_slice %108 {offsets = [0, 256], sizes = [8, 128], strides = [1, 1]} : vector<8x384xf32> to vector<8x128xf32>
    %129 = vector.broadcast %11 : vector<1x128xf32> to vector<8x128xf32>
    %130 = arith.addf %128, %129 : vector<8x128xf32>
    %131 = arith.mulf %117, %130 : vector<8x128xf32>
    %132 = arith.extf %127 : vector<8x128xbf16> to vector<8x128xf32>
    %133 = arith.addf %132, %131 : vector<8x128xf32>
    %134 = math.tanh %133 : vector<8x128xf32>
    %cst_42 = arith.constant 1.000000e+00 : f32
    %135 = vector.broadcast %cst_42 : f32 to vector<8x128xf32>
    %136 = arith.subf %135, %126 : vector<8x128xf32>
    %137 = arith.mulf %136, %134 : vector<8x128xf32>
    %138 = arith.mulf %126, %93 : vector<8x128xf32>
    %139 = arith.addf %137, %138 : vector<8x128xf32>
    %140 = vector.extract_strided_slice %105 {offsets = [0, 384], sizes = [8, 384], strides = [1, 1]} : vector<8x768xbf16> to vector<8x384xbf16>
    %c0_43 = arith.constant 0 : index
    %c0_44 = arith.constant 0 : index
    %141 = vector.load %arg6[%c0_43, %c0_44] : memref<128x384xf32, #tpu.memory_space<vmem>>, vector<128x384xf32>
    %cst_45 = arith.constant dense<0.000000e+00> : vector<8x384xf32>
    %142 = tpu.matmul %98, %141, %cst_45 {dimension_numbers = #tpu.dot_dimension_numbers<[1], [0], [0], [1], [0, 0, 1, 1], [], []>} : vector<8x128xf32>, vector<128x384xf32>, vector<8x384xf32> -> vector<8x384xf32>
    %143 = vector.extract_strided_slice %140 {offsets = [0, 0], sizes = [8, 128], strides = [1, 1]} : vector<8x384xbf16> to vector<8x128xbf16>
    %144 = vector.extract_strided_slice %142 {offsets = [0, 0], sizes = [8, 128], strides = [1, 1]} : vector<8x384xf32> to vector<8x128xf32>
    %145 = arith.extf %143 : vector<8x128xbf16> to vector<8x128xf32>
    %146 = arith.addf %145, %144 : vector<8x128xf32>
    %147 = arith.negf %146 : vector<8x128xf32>
    %148 = math.exp %147 : vector<8x128xf32>
    %cst_46 = arith.constant 1.000000e+00 : f32
    %149 = vector.broadcast %cst_46 : f32 to vector<8x128xf32>
    %150 = arith.addf %149, %148 : vector<8x128xf32>
    %151 = arith.divf %149, %150 : vector<8x128xf32>
    %152 = vector.extract_strided_slice %140 {offsets = [0, 128], sizes = [8, 128], strides = [1, 1]} : vector<8x384xbf16> to vector<8x128xbf16>
    %153 = vector.extract_strided_slice %142 {offsets = [0, 128], sizes = [8, 128], strides = [1, 1]} : vector<8x384xf32> to vector<8x128xf32>
    %154 = arith.extf %152 : vector<8x128xbf16> to vector<8x128xf32>
    %155 = arith.addf %154, %153 : vector<8x128xf32>
    %156 = arith.negf %155 : vector<8x128xf32>
    %157 = math.exp %156 : vector<8x128xf32>
    %cst_47 = arith.constant 1.000000e+00 : f32
    %158 = vector.broadcast %cst_47 : f32 to vector<8x128xf32>
    %159 = arith.addf %158, %157 : vector<8x128xf32>
    %160 = arith.divf %158, %159 : vector<8x128xf32>
    %161 = vector.extract_strided_slice %140 {offsets = [0, 256], sizes = [8, 128], strides = [1, 1]} : vector<8x384xbf16> to vector<8x128xbf16>
    %162 = vector.extract_strided_slice %142 {offsets = [0, 256], sizes = [8, 128], strides = [1, 1]} : vector<8x384xf32> to vector<8x128xf32>
    %163 = vector.broadcast %12 : vector<1x128xf32> to vector<8x128xf32>
    %164 = arith.addf %162, %163 : vector<8x128xf32>
    %165 = arith.mulf %151, %164 : vector<8x128xf32>
    %166 = arith.extf %161 : vector<8x128xbf16> to vector<8x128xf32>
    %167 = arith.addf %166, %165 : vector<8x128xf32>
    %168 = math.tanh %167 : vector<8x128xf32>
    %cst_48 = arith.constant 1.000000e+00 : f32
    %169 = vector.broadcast %cst_48 : f32 to vector<8x128xf32>
    %170 = arith.subf %169, %160 : vector<8x128xf32>
    %171 = arith.mulf %170, %168 : vector<8x128xf32>
    %172 = arith.mulf %160, %98 : vector<8x128xf32>
    %173 = arith.addf %171, %172 : vector<8x128xf32>
    %174 = vector.broadcast %c1_i32 : i32 to vector<8x1xi32>
    %175 = arith.cmpi sgt, %10, %174 : vector<8x1xi32>
    %176 = vector.shape_cast %175 : vector<8x1xi1> to vector<8x1xi1>
    %177 = vector.broadcast %176 : vector<8x1xi1> to vector<8x128xi1>
    %178 = arith.select %177, %139, %93 : vector<8x128xi1>, vector<8x128xf32>
    %179 = vector.broadcast %99 : i32 to vector<8x1xi32>
    %180 = arith.cmpi sgt, %10, %179 : vector<8x1xi32>
    %181 = vector.shape_cast %180 : vector<8x1xi1> to vector<8x1xi1>
    %182 = vector.broadcast %181 : vector<8x1xi1> to vector<8x128xi1>
    %183 = arith.select %182, %173, %98 : vector<8x128xi1>, vector<8x128xf32>
    %c2_i32 = arith.constant 2 : i32
    %c7_i32_49 = arith.constant 7 : i32
    %184 = arith.subi %c7_i32_49, %c2_i32 : i32
    %185 = arith.index_cast %c2_i32 : i32 to index
    %c0_50 = arith.constant 0 : index
    %c0_51 = arith.constant 0 : index
    %186 = vector.load %arg13[%185, %c0_50, %c0_51] : memref<8x8x768xbf16, #tpu.memory_space<vmem>>, vector<1x8x768xbf16>
    %187 = vector.shape_cast %186 : vector<1x8x768xbf16> to vector<8x768xbf16>
    %188 = arith.index_cast %184 : i32 to index
    %c0_52 = arith.constant 0 : index
    %c0_53 = arith.constant 0 : index
    %189 = vector.load %arg13[%188, %c0_52, %c0_53] : memref<8x8x768xbf16, #tpu.memory_space<vmem>>, vector<1x8x768xbf16>
    %190 = vector.shape_cast %189 : vector<1x8x768xbf16> to vector<8x768xbf16>
    %191 = vector.extract_strided_slice %187 {offsets = [0, 0], sizes = [8, 384], strides = [1, 1]} : vector<8x768xbf16> to vector<8x384xbf16>
    %c0_54 = arith.constant 0 : index
    %c0_55 = arith.constant 0 : index
    %192 = vector.load %arg5[%c0_54, %c0_55] : memref<128x384xf32, #tpu.memory_space<vmem>>, vector<128x384xf32>
    %cst_56 = arith.constant dense<0.000000e+00> : vector<8x384xf32>
    %193 = tpu.matmul %178, %192, %cst_56 {dimension_numbers = #tpu.dot_dimension_numbers<[1], [0], [0], [1], [0, 0, 1, 1], [], []>} : vector<8x128xf32>, vector<128x384xf32>, vector<8x384xf32> -> vector<8x384xf32>
    %194 = vector.extract_strided_slice %191 {offsets = [0, 0], sizes = [8, 128], strides = [1, 1]} : vector<8x384xbf16> to vector<8x128xbf16>
    %195 = vector.extract_strided_slice %193 {offsets = [0, 0], sizes = [8, 128], strides = [1, 1]} : vector<8x384xf32> to vector<8x128xf32>
    %196 = arith.extf %194 : vector<8x128xbf16> to vector<8x128xf32>
    %197 = arith.addf %196, %195 : vector<8x128xf32>
    %198 = arith.negf %197 : vector<8x128xf32>
    %199 = math.exp %198 : vector<8x128xf32>
    %cst_57 = arith.constant 1.000000e+00 : f32
    %200 = vector.broadcast %cst_57 : f32 to vector<8x128xf32>
    %201 = arith.addf %200, %199 : vector<8x128xf32>
    %202 = arith.divf %200, %201 : vector<8x128xf32>
    %203 = vector.extract_strided_slice %191 {offsets = [0, 128], sizes = [8, 128], strides = [1, 1]} : vector<8x384xbf16> to vector<8x128xbf16>
    %204 = vector.extract_strided_slice %193 {offsets = [0, 128], sizes = [8, 128], strides = [1, 1]} : vector<8x384xf32> to vector<8x128xf32>
    %205 = arith.extf %203 : vector<8x128xbf16> to vector<8x128xf32>
    %206 = arith.addf %205, %204 : vector<8x128xf32>
    %207 = arith.negf %206 : vector<8x128xf32>
    %208 = math.exp %207 : vector<8x128xf32>
    %cst_58 = arith.constant 1.000000e+00 : f32
    %209 = vector.broadcast %cst_58 : f32 to vector<8x128xf32>
    %210 = arith.addf %209, %208 : vector<8x128xf32>
    %211 = arith.divf %209, %210 : vector<8x128xf32>
    %212 = vector.extract_strided_slice %191 {offsets = [0, 256], sizes = [8, 128], strides = [1, 1]} : vector<8x384xbf16> to vector<8x128xbf16>
    %213 = vector.extract_strided_slice %193 {offsets = [0, 256], sizes = [8, 128], strides = [1, 1]} : vector<8x384xf32> to vector<8x128xf32>
    %214 = vector.broadcast %11 : vector<1x128xf32> to vector<8x128xf32>
    %215 = arith.addf %213, %214 : vector<8x128xf32>
    %216 = arith.mulf %202, %215 : vector<8x128xf32>
    %217 = arith.extf %212 : vector<8x128xbf16> to vector<8x128xf32>
    %218 = arith.addf %217, %216 : vector<8x128xf32>
    %219 = math.tanh %218 : vector<8x128xf32>
    %cst_59 = arith.constant 1.000000e+00 : f32
    %220 = vector.broadcast %cst_59 : f32 to vector<8x128xf32>
    %221 = arith.subf %220, %211 : vector<8x128xf32>
    %222 = arith.mulf %221, %219 : vector<8x128xf32>
    %223 = arith.mulf %211, %178 : vector<8x128xf32>
    %224 = arith.addf %222, %223 : vector<8x128xf32>
    %225 = vector.extract_strided_slice %190 {offsets = [0, 384], sizes = [8, 384], strides = [1, 1]} : vector<8x768xbf16> to vector<8x384xbf16>
    %c0_60 = arith.constant 0 : index
    %c0_61 = arith.constant 0 : index
    %226 = vector.load %arg6[%c0_60, %c0_61] : memref<128x384xf32, #tpu.memory_space<vmem>>, vector<128x384xf32>
    %cst_62 = arith.constant dense<0.000000e+00> : vector<8x384xf32>
    %227 = tpu.matmul %183, %226, %cst_62 {dimension_numbers = #tpu.dot_dimension_numbers<[1], [0], [0], [1], [0, 0, 1, 1], [], []>} : vector<8x128xf32>, vector<128x384xf32>, vector<8x384xf32> -> vector<8x384xf32>
    %228 = vector.extract_strided_slice %225 {offsets = [0, 0], sizes = [8, 128], strides = [1, 1]} : vector<8x384xbf16> to vector<8x128xbf16>
    %229 = vector.extract_strided_slice %227 {offsets = [0, 0], sizes = [8, 128], strides = [1, 1]} : vector<8x384xf32> to vector<8x128xf32>
    %230 = arith.extf %228 : vector<8x128xbf16> to vector<8x128xf32>
    %231 = arith.addf %230, %229 : vector<8x128xf32>
    %232 = arith.negf %231 : vector<8x128xf32>
    %233 = math.exp %232 : vector<8x128xf32>
    %cst_63 = arith.constant 1.000000e+00 : f32
    %234 = vector.broadcast %cst_63 : f32 to vector<8x128xf32>
    %235 = arith.addf %234, %233 : vector<8x128xf32>
    %236 = arith.divf %234, %235 : vector<8x128xf32>
    %237 = vector.extract_strided_slice %225 {offsets = [0, 128], sizes = [8, 128], strides = [1, 1]} : vector<8x384xbf16> to vector<8x128xbf16>
    %238 = vector.extract_strided_slice %227 {offsets = [0, 128], sizes = [8, 128], strides = [1, 1]} : vector<8x384xf32> to vector<8x128xf32>
    %239 = arith.extf %237 : vector<8x128xbf16> to vector<8x128xf32>
    %240 = arith.addf %239, %238 : vector<8x128xf32>
    %241 = arith.negf %240 : vector<8x128xf32>
    %242 = math.exp %241 : vector<8x128xf32>
    %cst_64 = arith.constant 1.000000e+00 : f32
    %243 = vector.broadcast %cst_64 : f32 to vector<8x128xf32>
    %244 = arith.addf %243, %242 : vector<8x128xf32>
    %245 = arith.divf %243, %244 : vector<8x128xf32>
    %246 = vector.extract_strided_slice %225 {offsets = [0, 256], sizes = [8, 128], strides = [1, 1]} : vector<8x384xbf16> to vector<8x128xbf16>
    %247 = vector.extract_strided_slice %227 {offsets = [0, 256], sizes = [8, 128], strides = [1, 1]} : vector<8x384xf32> to vector<8x128xf32>
    %248 = vector.broadcast %12 : vector<1x128xf32> to vector<8x128xf32>
    %249 = arith.addf %247, %248 : vector<8x128xf32>
    %250 = arith.mulf %236, %249 : vector<8x128xf32>
    %251 = arith.extf %246 : vector<8x128xbf16> to vector<8x128xf32>
    %252 = arith.addf %251, %250 : vector<8x128xf32>
    %253 = math.tanh %252 : vector<8x128xf32>
    %cst_65 = arith.constant 1.000000e+00 : f32
    %254 = vector.broadcast %cst_65 : f32 to vector<8x128xf32>
    %255 = arith.subf %254, %245 : vector<8x128xf32>
    %256 = arith.mulf %255, %253 : vector<8x128xf32>
    %257 = arith.mulf %245, %183 : vector<8x128xf32>
    %258 = arith.addf %256, %257 : vector<8x128xf32>
    %259 = vector.broadcast %c2_i32 : i32 to vector<8x1xi32>
    %260 = arith.cmpi sgt, %10, %259 : vector<8x1xi32>
    %261 = vector.shape_cast %260 : vector<8x1xi1> to vector<8x1xi1>
    %262 = vector.broadcast %261 : vector<8x1xi1> to vector<8x128xi1>
    %263 = arith.select %262, %224, %178 : vector<8x128xi1>, vector<8x128xf32>
    %264 = vector.broadcast %184 : i32 to vector<8x1xi32>
    %265 = arith.cmpi sgt, %10, %264 : vector<8x1xi32>
    %266 = vector.shape_cast %265 : vector<8x1xi1> to vector<8x1xi1>
    %267 = vector.broadcast %266 : vector<8x1xi1> to vector<8x128xi1>
    %268 = arith.select %267, %258, %183 : vector<8x128xi1>, vector<8x128xf32>
    %c3_i32 = arith.constant 3 : i32
    %c7_i32_66 = arith.constant 7 : i32
    %269 = arith.subi %c7_i32_66, %c3_i32 : i32
    %270 = arith.index_cast %c3_i32 : i32 to index
    %c0_67 = arith.constant 0 : index
    %c0_68 = arith.constant 0 : index
    %271 = vector.load %arg13[%270, %c0_67, %c0_68] : memref<8x8x768xbf16, #tpu.memory_space<vmem>>, vector<1x8x768xbf16>
    %272 = vector.shape_cast %271 : vector<1x8x768xbf16> to vector<8x768xbf16>
    %273 = arith.index_cast %269 : i32 to index
    %c0_69 = arith.constant 0 : index
    %c0_70 = arith.constant 0 : index
    %274 = vector.load %arg13[%273, %c0_69, %c0_70] : memref<8x8x768xbf16, #tpu.memory_space<vmem>>, vector<1x8x768xbf16>
    %275 = vector.shape_cast %274 : vector<1x8x768xbf16> to vector<8x768xbf16>
    %276 = vector.extract_strided_slice %272 {offsets = [0, 0], sizes = [8, 384], strides = [1, 1]} : vector<8x768xbf16> to vector<8x384xbf16>
    %c0_71 = arith.constant 0 : index
    %c0_72 = arith.constant 0 : index
    %277 = vector.load %arg5[%c0_71, %c0_72] : memref<128x384xf32, #tpu.memory_space<vmem>>, vector<128x384xf32>
    %cst_73 = arith.constant dense<0.000000e+00> : vector<8x384xf32>
    %278 = tpu.matmul %263, %277, %cst_73 {dimension_numbers = #tpu.dot_dimension_numbers<[1], [0], [0], [1], [0, 0, 1, 1], [], []>} : vector<8x128xf32>, vector<128x384xf32>, vector<8x384xf32> -> vector<8x384xf32>
    %279 = vector.extract_strided_slice %276 {offsets = [0, 0], sizes = [8, 128], strides = [1, 1]} : vector<8x384xbf16> to vector<8x128xbf16>
    %280 = vector.extract_strided_slice %278 {offsets = [0, 0], sizes = [8, 128], strides = [1, 1]} : vector<8x384xf32> to vector<8x128xf32>
    %281 = arith.extf %279 : vector<8x128xbf16> to vector<8x128xf32>
    %282 = arith.addf %281, %280 : vector<8x128xf32>
    %283 = arith.negf %282 : vector<8x128xf32>
    %284 = math.exp %283 : vector<8x128xf32>
    %cst_74 = arith.constant 1.000000e+00 : f32
    %285 = vector.broadcast %cst_74 : f32 to vector<8x128xf32>
    %286 = arith.addf %285, %284 : vector<8x128xf32>
    %287 = arith.divf %285, %286 : vector<8x128xf32>
    %288 = vector.extract_strided_slice %276 {offsets = [0, 128], sizes = [8, 128], strides = [1, 1]} : vector<8x384xbf16> to vector<8x128xbf16>
    %289 = vector.extract_strided_slice %278 {offsets = [0, 128], sizes = [8, 128], strides = [1, 1]} : vector<8x384xf32> to vector<8x128xf32>
    %290 = arith.extf %288 : vector<8x128xbf16> to vector<8x128xf32>
    %291 = arith.addf %290, %289 : vector<8x128xf32>
    %292 = arith.negf %291 : vector<8x128xf32>
    %293 = math.exp %292 : vector<8x128xf32>
    %cst_75 = arith.constant 1.000000e+00 : f32
    %294 = vector.broadcast %cst_75 : f32 to vector<8x128xf32>
    %295 = arith.addf %294, %293 : vector<8x128xf32>
    %296 = arith.divf %294, %295 : vector<8x128xf32>
    %297 = vector.extract_strided_slice %276 {offsets = [0, 256], sizes = [8, 128], strides = [1, 1]} : vector<8x384xbf16> to vector<8x128xbf16>
    %298 = vector.extract_strided_slice %278 {offsets = [0, 256], sizes = [8, 128], strides = [1, 1]} : vector<8x384xf32> to vector<8x128xf32>
    %299 = vector.broadcast %11 : vector<1x128xf32> to vector<8x128xf32>
    %300 = arith.addf %298, %299 : vector<8x128xf32>
    %301 = arith.mulf %287, %300 : vector<8x128xf32>
    %302 = arith.extf %297 : vector<8x128xbf16> to vector<8x128xf32>
    %303 = arith.addf %302, %301 : vector<8x128xf32>
    %304 = math.tanh %303 : vector<8x128xf32>
    %cst_76 = arith.constant 1.000000e+00 : f32
    %305 = vector.broadcast %cst_76 : f32 to vector<8x128xf32>
    %306 = arith.subf %305, %296 : vector<8x128xf32>
    %307 = arith.mulf %306, %304 : vector<8x128xf32>
    %308 = arith.mulf %296, %263 : vector<8x128xf32>
    %309 = arith.addf %307, %308 : vector<8x128xf32>
    %310 = vector.extract_strided_slice %275 {offsets = [0, 384], sizes = [8, 384], strides = [1, 1]} : vector<8x768xbf16> to vector<8x384xbf16>
    %c0_77 = arith.constant 0 : index
    %c0_78 = arith.constant 0 : index
    %311 = vector.load %arg6[%c0_77, %c0_78] : memref<128x384xf32, #tpu.memory_space<vmem>>, vector<128x384xf32>
    %cst_79 = arith.constant dense<0.000000e+00> : vector<8x384xf32>
    %312 = tpu.matmul %268, %311, %cst_79 {dimension_numbers = #tpu.dot_dimension_numbers<[1], [0], [0], [1], [0, 0, 1, 1], [], []>} : vector<8x128xf32>, vector<128x384xf32>, vector<8x384xf32> -> vector<8x384xf32>
    %313 = vector.extract_strided_slice %310 {offsets = [0, 0], sizes = [8, 128], strides = [1, 1]} : vector<8x384xbf16> to vector<8x128xbf16>
    %314 = vector.extract_strided_slice %312 {offsets = [0, 0], sizes = [8, 128], strides = [1, 1]} : vector<8x384xf32> to vector<8x128xf32>
    %315 = arith.extf %313 : vector<8x128xbf16> to vector<8x128xf32>
    %316 = arith.addf %315, %314 : vector<8x128xf32>
    %317 = arith.negf %316 : vector<8x128xf32>
    %318 = math.exp %317 : vector<8x128xf32>
    %cst_80 = arith.constant 1.000000e+00 : f32
    %319 = vector.broadcast %cst_80 : f32 to vector<8x128xf32>
    %320 = arith.addf %319, %318 : vector<8x128xf32>
    %321 = arith.divf %319, %320 : vector<8x128xf32>
    %322 = vector.extract_strided_slice %310 {offsets = [0, 128], sizes = [8, 128], strides = [1, 1]} : vector<8x384xbf16> to vector<8x128xbf16>
    %323 = vector.extract_strided_slice %312 {offsets = [0, 128], sizes = [8, 128], strides = [1, 1]} : vector<8x384xf32> to vector<8x128xf32>
    %324 = arith.extf %322 : vector<8x128xbf16> to vector<8x128xf32>
    %325 = arith.addf %324, %323 : vector<8x128xf32>
    %326 = arith.negf %325 : vector<8x128xf32>
    %327 = math.exp %326 : vector<8x128xf32>
    %cst_81 = arith.constant 1.000000e+00 : f32
    %328 = vector.broadcast %cst_81 : f32 to vector<8x128xf32>
    %329 = arith.addf %328, %327 : vector<8x128xf32>
    %330 = arith.divf %328, %329 : vector<8x128xf32>
    %331 = vector.extract_strided_slice %310 {offsets = [0, 256], sizes = [8, 128], strides = [1, 1]} : vector<8x384xbf16> to vector<8x128xbf16>
    %332 = vector.extract_strided_slice %312 {offsets = [0, 256], sizes = [8, 128], strides = [1, 1]} : vector<8x384xf32> to vector<8x128xf32>
    %333 = vector.broadcast %12 : vector<1x128xf32> to vector<8x128xf32>
    %334 = arith.addf %332, %333 : vector<8x128xf32>
    %335 = arith.mulf %321, %334 : vector<8x128xf32>
    %336 = arith.extf %331 : vector<8x128xbf16> to vector<8x128xf32>
    %337 = arith.addf %336, %335 : vector<8x128xf32>
    %338 = math.tanh %337 : vector<8x128xf32>
    %cst_82 = arith.constant 1.000000e+00 : f32
    %339 = vector.broadcast %cst_82 : f32 to vector<8x128xf32>
    %340 = arith.subf %339, %330 : vector<8x128xf32>
    %341 = arith.mulf %340, %338 : vector<8x128xf32>
    %342 = arith.mulf %330, %268 : vector<8x128xf32>
    %343 = arith.addf %341, %342 : vector<8x128xf32>
    %344 = vector.broadcast %c3_i32 : i32 to vector<8x1xi32>
    %345 = arith.cmpi sgt, %10, %344 : vector<8x1xi32>
    %346 = vector.shape_cast %345 : vector<8x1xi1> to vector<8x1xi1>
    %347 = vector.broadcast %346 : vector<8x1xi1> to vector<8x128xi1>
    %348 = arith.select %347, %309, %263 : vector<8x128xi1>, vector<8x128xf32>
    %349 = vector.broadcast %269 : i32 to vector<8x1xi32>
    %350 = arith.cmpi sgt, %10, %349 : vector<8x1xi32>
    %351 = vector.shape_cast %350 : vector<8x1xi1> to vector<8x1xi1>
    %352 = vector.broadcast %351 : vector<8x1xi1> to vector<8x128xi1>
    %353 = arith.select %352, %343, %268 : vector<8x128xi1>, vector<8x128xf32>
    %c4_i32 = arith.constant 4 : i32
    %c7_i32_83 = arith.constant 7 : i32
    %354 = arith.subi %c7_i32_83, %c4_i32 : i32
    %355 = arith.index_cast %c4_i32 : i32 to index
    %c0_84 = arith.constant 0 : index
    %c0_85 = arith.constant 0 : index
    %356 = vector.load %arg13[%355, %c0_84, %c0_85] : memref<8x8x768xbf16, #tpu.memory_space<vmem>>, vector<1x8x768xbf16>
    %357 = vector.shape_cast %356 : vector<1x8x768xbf16> to vector<8x768xbf16>
    %358 = arith.index_cast %354 : i32 to index
    %c0_86 = arith.constant 0 : index
    %c0_87 = arith.constant 0 : index
    %359 = vector.load %arg13[%358, %c0_86, %c0_87] : memref<8x8x768xbf16, #tpu.memory_space<vmem>>, vector<1x8x768xbf16>
    %360 = vector.shape_cast %359 : vector<1x8x768xbf16> to vector<8x768xbf16>
    %361 = vector.extract_strided_slice %357 {offsets = [0, 0], sizes = [8, 384], strides = [1, 1]} : vector<8x768xbf16> to vector<8x384xbf16>
    %c0_88 = arith.constant 0 : index
    %c0_89 = arith.constant 0 : index
    %362 = vector.load %arg5[%c0_88, %c0_89] : memref<128x384xf32, #tpu.memory_space<vmem>>, vector<128x384xf32>
    %cst_90 = arith.constant dense<0.000000e+00> : vector<8x384xf32>
    %363 = tpu.matmul %348, %362, %cst_90 {dimension_numbers = #tpu.dot_dimension_numbers<[1], [0], [0], [1], [0, 0, 1, 1], [], []>} : vector<8x128xf32>, vector<128x384xf32>, vector<8x384xf32> -> vector<8x384xf32>
    %364 = vector.extract_strided_slice %361 {offsets = [0, 0], sizes = [8, 128], strides = [1, 1]} : vector<8x384xbf16> to vector<8x128xbf16>
    %365 = vector.extract_strided_slice %363 {offsets = [0, 0], sizes = [8, 128], strides = [1, 1]} : vector<8x384xf32> to vector<8x128xf32>
    %366 = arith.extf %364 : vector<8x128xbf16> to vector<8x128xf32>
    %367 = arith.addf %366, %365 : vector<8x128xf32>
    %368 = arith.negf %367 : vector<8x128xf32>
    %369 = math.exp %368 : vector<8x128xf32>
    %cst_91 = arith.constant 1.000000e+00 : f32
    %370 = vector.broadcast %cst_91 : f32 to vector<8x128xf32>
    %371 = arith.addf %370, %369 : vector<8x128xf32>
    %372 = arith.divf %370, %371 : vector<8x128xf32>
    %373 = vector.extract_strided_slice %361 {offsets = [0, 128], sizes = [8, 128], strides = [1, 1]} : vector<8x384xbf16> to vector<8x128xbf16>
    %374 = vector.extract_strided_slice %363 {offsets = [0, 128], sizes = [8, 128], strides = [1, 1]} : vector<8x384xf32> to vector<8x128xf32>
    %375 = arith.extf %373 : vector<8x128xbf16> to vector<8x128xf32>
    %376 = arith.addf %375, %374 : vector<8x128xf32>
    %377 = arith.negf %376 : vector<8x128xf32>
    %378 = math.exp %377 : vector<8x128xf32>
    %cst_92 = arith.constant 1.000000e+00 : f32
    %379 = vector.broadcast %cst_92 : f32 to vector<8x128xf32>
    %380 = arith.addf %379, %378 : vector<8x128xf32>
    %381 = arith.divf %379, %380 : vector<8x128xf32>
    %382 = vector.extract_strided_slice %361 {offsets = [0, 256], sizes = [8, 128], strides = [1, 1]} : vector<8x384xbf16> to vector<8x128xbf16>
    %383 = vector.extract_strided_slice %363 {offsets = [0, 256], sizes = [8, 128], strides = [1, 1]} : vector<8x384xf32> to vector<8x128xf32>
    %384 = vector.broadcast %11 : vector<1x128xf32> to vector<8x128xf32>
    %385 = arith.addf %383, %384 : vector<8x128xf32>
    %386 = arith.mulf %372, %385 : vector<8x128xf32>
    %387 = arith.extf %382 : vector<8x128xbf16> to vector<8x128xf32>
    %388 = arith.addf %387, %386 : vector<8x128xf32>
    %389 = math.tanh %388 : vector<8x128xf32>
    %cst_93 = arith.constant 1.000000e+00 : f32
    %390 = vector.broadcast %cst_93 : f32 to vector<8x128xf32>
    %391 = arith.subf %390, %381 : vector<8x128xf32>
    %392 = arith.mulf %391, %389 : vector<8x128xf32>
    %393 = arith.mulf %381, %348 : vector<8x128xf32>
    %394 = arith.addf %392, %393 : vector<8x128xf32>
    %395 = vector.extract_strided_slice %360 {offsets = [0, 384], sizes = [8, 384], strides = [1, 1]} : vector<8x768xbf16> to vector<8x384xbf16>
    %c0_94 = arith.constant 0 : index
    %c0_95 = arith.constant 0 : index
    %396 = vector.load %arg6[%c0_94, %c0_95] : memref<128x384xf32, #tpu.memory_space<vmem>>, vector<128x384xf32>
    %cst_96 = arith.constant dense<0.000000e+00> : vector<8x384xf32>
    %397 = tpu.matmul %353, %396, %cst_96 {dimension_numbers = #tpu.dot_dimension_numbers<[1], [0], [0], [1], [0, 0, 1, 1], [], []>} : vector<8x128xf32>, vector<128x384xf32>, vector<8x384xf32> -> vector<8x384xf32>
    %398 = vector.extract_strided_slice %395 {offsets = [0, 0], sizes = [8, 128], strides = [1, 1]} : vector<8x384xbf16> to vector<8x128xbf16>
    %399 = vector.extract_strided_slice %397 {offsets = [0, 0], sizes = [8, 128], strides = [1, 1]} : vector<8x384xf32> to vector<8x128xf32>
    %400 = arith.extf %398 : vector<8x128xbf16> to vector<8x128xf32>
    %401 = arith.addf %400, %399 : vector<8x128xf32>
    %402 = arith.negf %401 : vector<8x128xf32>
    %403 = math.exp %402 : vector<8x128xf32>
    %cst_97 = arith.constant 1.000000e+00 : f32
    %404 = vector.broadcast %cst_97 : f32 to vector<8x128xf32>
    %405 = arith.addf %404, %403 : vector<8x128xf32>
    %406 = arith.divf %404, %405 : vector<8x128xf32>
    %407 = vector.extract_strided_slice %395 {offsets = [0, 128], sizes = [8, 128], strides = [1, 1]} : vector<8x384xbf16> to vector<8x128xbf16>
    %408 = vector.extract_strided_slice %397 {offsets = [0, 128], sizes = [8, 128], strides = [1, 1]} : vector<8x384xf32> to vector<8x128xf32>
    %409 = arith.extf %407 : vector<8x128xbf16> to vector<8x128xf32>
    %410 = arith.addf %409, %408 : vector<8x128xf32>
    %411 = arith.negf %410 : vector<8x128xf32>
    %412 = math.exp %411 : vector<8x128xf32>
    %cst_98 = arith.constant 1.000000e+00 : f32
    %413 = vector.broadcast %cst_98 : f32 to vector<8x128xf32>
    %414 = arith.addf %413, %412 : vector<8x128xf32>
    %415 = arith.divf %413, %414 : vector<8x128xf32>
    %416 = vector.extract_strided_slice %395 {offsets = [0, 256], sizes = [8, 128], strides = [1, 1]} : vector<8x384xbf16> to vector<8x128xbf16>
    %417 = vector.extract_strided_slice %397 {offsets = [0, 256], sizes = [8, 128], strides = [1, 1]} : vector<8x384xf32> to vector<8x128xf32>
    %418 = vector.broadcast %12 : vector<1x128xf32> to vector<8x128xf32>
    %419 = arith.addf %417, %418 : vector<8x128xf32>
    %420 = arith.mulf %406, %419 : vector<8x128xf32>
    %421 = arith.extf %416 : vector<8x128xbf16> to vector<8x128xf32>
    %422 = arith.addf %421, %420 : vector<8x128xf32>
    %423 = math.tanh %422 : vector<8x128xf32>
    %cst_99 = arith.constant 1.000000e+00 : f32
    %424 = vector.broadcast %cst_99 : f32 to vector<8x128xf32>
    %425 = arith.subf %424, %415 : vector<8x128xf32>
    %426 = arith.mulf %425, %423 : vector<8x128xf32>
    %427 = arith.mulf %415, %353 : vector<8x128xf32>
    %428 = arith.addf %426, %427 : vector<8x128xf32>
    %429 = vector.broadcast %c4_i32 : i32 to vector<8x1xi32>
    %430 = arith.cmpi sgt, %10, %429 : vector<8x1xi32>
    %431 = vector.shape_cast %430 : vector<8x1xi1> to vector<8x1xi1>
    %432 = vector.broadcast %431 : vector<8x1xi1> to vector<8x128xi1>
    %433 = arith.select %432, %394, %348 : vector<8x128xi1>, vector<8x128xf32>
    %434 = vector.broadcast %354 : i32 to vector<8x1xi32>
    %435 = arith.cmpi sgt, %10, %434 : vector<8x1xi32>
    %436 = vector.shape_cast %435 : vector<8x1xi1> to vector<8x1xi1>
    %437 = vector.broadcast %436 : vector<8x1xi1> to vector<8x128xi1>
    %438 = arith.select %437, %428, %353 : vector<8x128xi1>, vector<8x128xf32>
    %c5_i32 = arith.constant 5 : i32
    %c7_i32_100 = arith.constant 7 : i32
    %439 = arith.subi %c7_i32_100, %c5_i32 : i32
    %440 = arith.index_cast %c5_i32 : i32 to index
    %c0_101 = arith.constant 0 : index
    %c0_102 = arith.constant 0 : index
    %441 = vector.load %arg13[%440, %c0_101, %c0_102] : memref<8x8x768xbf16, #tpu.memory_space<vmem>>, vector<1x8x768xbf16>
    %442 = vector.shape_cast %441 : vector<1x8x768xbf16> to vector<8x768xbf16>
    %443 = arith.index_cast %439 : i32 to index
    %c0_103 = arith.constant 0 : index
    %c0_104 = arith.constant 0 : index
    %444 = vector.load %arg13[%443, %c0_103, %c0_104] : memref<8x8x768xbf16, #tpu.memory_space<vmem>>, vector<1x8x768xbf16>
    %445 = vector.shape_cast %444 : vector<1x8x768xbf16> to vector<8x768xbf16>
    %446 = vector.extract_strided_slice %442 {offsets = [0, 0], sizes = [8, 384], strides = [1, 1]} : vector<8x768xbf16> to vector<8x384xbf16>
    %c0_105 = arith.constant 0 : index
    %c0_106 = arith.constant 0 : index
    %447 = vector.load %arg5[%c0_105, %c0_106] : memref<128x384xf32, #tpu.memory_space<vmem>>, vector<128x384xf32>
    %cst_107 = arith.constant dense<0.000000e+00> : vector<8x384xf32>
    %448 = tpu.matmul %433, %447, %cst_107 {dimension_numbers = #tpu.dot_dimension_numbers<[1], [0], [0], [1], [0, 0, 1, 1], [], []>} : vector<8x128xf32>, vector<128x384xf32>, vector<8x384xf32> -> vector<8x384xf32>
    %449 = vector.extract_strided_slice %446 {offsets = [0, 0], sizes = [8, 128], strides = [1, 1]} : vector<8x384xbf16> to vector<8x128xbf16>
    %450 = vector.extract_strided_slice %448 {offsets = [0, 0], sizes = [8, 128], strides = [1, 1]} : vector<8x384xf32> to vector<8x128xf32>
    %451 = arith.extf %449 : vector<8x128xbf16> to vector<8x128xf32>
    %452 = arith.addf %451, %450 : vector<8x128xf32>
    %453 = arith.negf %452 : vector<8x128xf32>
    %454 = math.exp %453 : vector<8x128xf32>
    %cst_108 = arith.constant 1.000000e+00 : f32
    %455 = vector.broadcast %cst_108 : f32 to vector<8x128xf32>
    %456 = arith.addf %455, %454 : vector<8x128xf32>
    %457 = arith.divf %455, %456 : vector<8x128xf32>
    %458 = vector.extract_strided_slice %446 {offsets = [0, 128], sizes = [8, 128], strides = [1, 1]} : vector<8x384xbf16> to vector<8x128xbf16>
    %459 = vector.extract_strided_slice %448 {offsets = [0, 128], sizes = [8, 128], strides = [1, 1]} : vector<8x384xf32> to vector<8x128xf32>
    %460 = arith.extf %458 : vector<8x128xbf16> to vector<8x128xf32>
    %461 = arith.addf %460, %459 : vector<8x128xf32>
    %462 = arith.negf %461 : vector<8x128xf32>
    %463 = math.exp %462 : vector<8x128xf32>
    %cst_109 = arith.constant 1.000000e+00 : f32
    %464 = vector.broadcast %cst_109 : f32 to vector<8x128xf32>
    %465 = arith.addf %464, %463 : vector<8x128xf32>
    %466 = arith.divf %464, %465 : vector<8x128xf32>
    %467 = vector.extract_strided_slice %446 {offsets = [0, 256], sizes = [8, 128], strides = [1, 1]} : vector<8x384xbf16> to vector<8x128xbf16>
    %468 = vector.extract_strided_slice %448 {offsets = [0, 256], sizes = [8, 128], strides = [1, 1]} : vector<8x384xf32> to vector<8x128xf32>
    %469 = vector.broadcast %11 : vector<1x128xf32> to vector<8x128xf32>
    %470 = arith.addf %468, %469 : vector<8x128xf32>
    %471 = arith.mulf %457, %470 : vector<8x128xf32>
    %472 = arith.extf %467 : vector<8x128xbf16> to vector<8x128xf32>
    %473 = arith.addf %472, %471 : vector<8x128xf32>
    %474 = math.tanh %473 : vector<8x128xf32>
    %cst_110 = arith.constant 1.000000e+00 : f32
    %475 = vector.broadcast %cst_110 : f32 to vector<8x128xf32>
    %476 = arith.subf %475, %466 : vector<8x128xf32>
    %477 = arith.mulf %476, %474 : vector<8x128xf32>
    %478 = arith.mulf %466, %433 : vector<8x128xf32>
    %479 = arith.addf %477, %478 : vector<8x128xf32>
    %480 = vector.extract_strided_slice %445 {offsets = [0, 384], sizes = [8, 384], strides = [1, 1]} : vector<8x768xbf16> to vector<8x384xbf16>
    %c0_111 = arith.constant 0 : index
    %c0_112 = arith.constant 0 : index
    %481 = vector.load %arg6[%c0_111, %c0_112] : memref<128x384xf32, #tpu.memory_space<vmem>>, vector<128x384xf32>
    %cst_113 = arith.constant dense<0.000000e+00> : vector<8x384xf32>
    %482 = tpu.matmul %438, %481, %cst_113 {dimension_numbers = #tpu.dot_dimension_numbers<[1], [0], [0], [1], [0, 0, 1, 1], [], []>} : vector<8x128xf32>, vector<128x384xf32>, vector<8x384xf32> -> vector<8x384xf32>
    %483 = vector.extract_strided_slice %480 {offsets = [0, 0], sizes = [8, 128], strides = [1, 1]} : vector<8x384xbf16> to vector<8x128xbf16>
    %484 = vector.extract_strided_slice %482 {offsets = [0, 0], sizes = [8, 128], strides = [1, 1]} : vector<8x384xf32> to vector<8x128xf32>
    %485 = arith.extf %483 : vector<8x128xbf16> to vector<8x128xf32>
    %486 = arith.addf %485, %484 : vector<8x128xf32>
    %487 = arith.negf %486 : vector<8x128xf32>
    %488 = math.exp %487 : vector<8x128xf32>
    %cst_114 = arith.constant 1.000000e+00 : f32
    %489 = vector.broadcast %cst_114 : f32 to vector<8x128xf32>
    %490 = arith.addf %489, %488 : vector<8x128xf32>
    %491 = arith.divf %489, %490 : vector<8x128xf32>
    %492 = vector.extract_strided_slice %480 {offsets = [0, 128], sizes = [8, 128], strides = [1, 1]} : vector<8x384xbf16> to vector<8x128xbf16>
    %493 = vector.extract_strided_slice %482 {offsets = [0, 128], sizes = [8, 128], strides = [1, 1]} : vector<8x384xf32> to vector<8x128xf32>
    %494 = arith.extf %492 : vector<8x128xbf16> to vector<8x128xf32>
    %495 = arith.addf %494, %493 : vector<8x128xf32>
    %496 = arith.negf %495 : vector<8x128xf32>
    %497 = math.exp %496 : vector<8x128xf32>
    %cst_115 = arith.constant 1.000000e+00 : f32
    %498 = vector.broadcast %cst_115 : f32 to vector<8x128xf32>
    %499 = arith.addf %498, %497 : vector<8x128xf32>
    %500 = arith.divf %498, %499 : vector<8x128xf32>
    %501 = vector.extract_strided_slice %480 {offsets = [0, 256], sizes = [8, 128], strides = [1, 1]} : vector<8x384xbf16> to vector<8x128xbf16>
    %502 = vector.extract_strided_slice %482 {offsets = [0, 256], sizes = [8, 128], strides = [1, 1]} : vector<8x384xf32> to vector<8x128xf32>
    %503 = vector.broadcast %12 : vector<1x128xf32> to vector<8x128xf32>
    %504 = arith.addf %502, %503 : vector<8x128xf32>
    %505 = arith.mulf %491, %504 : vector<8x128xf32>
    %506 = arith.extf %501 : vector<8x128xbf16> to vector<8x128xf32>
    %507 = arith.addf %506, %505 : vector<8x128xf32>
    %508 = math.tanh %507 : vector<8x128xf32>
    %cst_116 = arith.constant 1.000000e+00 : f32
    %509 = vector.broadcast %cst_116 : f32 to vector<8x128xf32>
    %510 = arith.subf %509, %500 : vector<8x128xf32>
    %511 = arith.mulf %510, %508 : vector<8x128xf32>
    %512 = arith.mulf %500, %438 : vector<8x128xf32>
    %513 = arith.addf %511, %512 : vector<8x128xf32>
    %514 = vector.broadcast %c5_i32 : i32 to vector<8x1xi32>
    %515 = arith.cmpi sgt, %10, %514 : vector<8x1xi32>
    %516 = vector.shape_cast %515 : vector<8x1xi1> to vector<8x1xi1>
    %517 = vector.broadcast %516 : vector<8x1xi1> to vector<8x128xi1>
    %518 = arith.select %517, %479, %433 : vector<8x128xi1>, vector<8x128xf32>
    %519 = vector.broadcast %439 : i32 to vector<8x1xi32>
    %520 = arith.cmpi sgt, %10, %519 : vector<8x1xi32>
    %521 = vector.shape_cast %520 : vector<8x1xi1> to vector<8x1xi1>
    %522 = vector.broadcast %521 : vector<8x1xi1> to vector<8x128xi1>
    %523 = arith.select %522, %513, %438 : vector<8x128xi1>, vector<8x128xf32>
    %c6_i32 = arith.constant 6 : i32
    %c7_i32_117 = arith.constant 7 : i32
    %524 = arith.subi %c7_i32_117, %c6_i32 : i32
    %525 = arith.index_cast %c6_i32 : i32 to index
    %c0_118 = arith.constant 0 : index
    %c0_119 = arith.constant 0 : index
    %526 = vector.load %arg13[%525, %c0_118, %c0_119] : memref<8x8x768xbf16, #tpu.memory_space<vmem>>, vector<1x8x768xbf16>
    %527 = vector.shape_cast %526 : vector<1x8x768xbf16> to vector<8x768xbf16>
    %528 = arith.index_cast %524 : i32 to index
    %c0_120 = arith.constant 0 : index
    %c0_121 = arith.constant 0 : index
    %529 = vector.load %arg13[%528, %c0_120, %c0_121] : memref<8x8x768xbf16, #tpu.memory_space<vmem>>, vector<1x8x768xbf16>
    %530 = vector.shape_cast %529 : vector<1x8x768xbf16> to vector<8x768xbf16>
    %531 = vector.extract_strided_slice %527 {offsets = [0, 0], sizes = [8, 384], strides = [1, 1]} : vector<8x768xbf16> to vector<8x384xbf16>
    %c0_122 = arith.constant 0 : index
    %c0_123 = arith.constant 0 : index
    %532 = vector.load %arg5[%c0_122, %c0_123] : memref<128x384xf32, #tpu.memory_space<vmem>>, vector<128x384xf32>
    %cst_124 = arith.constant dense<0.000000e+00> : vector<8x384xf32>
    %533 = tpu.matmul %518, %532, %cst_124 {dimension_numbers = #tpu.dot_dimension_numbers<[1], [0], [0], [1], [0, 0, 1, 1], [], []>} : vector<8x128xf32>, vector<128x384xf32>, vector<8x384xf32> -> vector<8x384xf32>
    %534 = vector.extract_strided_slice %531 {offsets = [0, 0], sizes = [8, 128], strides = [1, 1]} : vector<8x384xbf16> to vector<8x128xbf16>
    %535 = vector.extract_strided_slice %533 {offsets = [0, 0], sizes = [8, 128], strides = [1, 1]} : vector<8x384xf32> to vector<8x128xf32>
    %536 = arith.extf %534 : vector<8x128xbf16> to vector<8x128xf32>
    %537 = arith.addf %536, %535 : vector<8x128xf32>
    %538 = arith.negf %537 : vector<8x128xf32>
    %539 = math.exp %538 : vector<8x128xf32>
    %cst_125 = arith.constant 1.000000e+00 : f32
    %540 = vector.broadcast %cst_125 : f32 to vector<8x128xf32>
    %541 = arith.addf %540, %539 : vector<8x128xf32>
    %542 = arith.divf %540, %541 : vector<8x128xf32>
    %543 = vector.extract_strided_slice %531 {offsets = [0, 128], sizes = [8, 128], strides = [1, 1]} : vector<8x384xbf16> to vector<8x128xbf16>
    %544 = vector.extract_strided_slice %533 {offsets = [0, 128], sizes = [8, 128], strides = [1, 1]} : vector<8x384xf32> to vector<8x128xf32>
    %545 = arith.extf %543 : vector<8x128xbf16> to vector<8x128xf32>
    %546 = arith.addf %545, %544 : vector<8x128xf32>
    %547 = arith.negf %546 : vector<8x128xf32>
    %548 = math.exp %547 : vector<8x128xf32>
    %cst_126 = arith.constant 1.000000e+00 : f32
    %549 = vector.broadcast %cst_126 : f32 to vector<8x128xf32>
    %550 = arith.addf %549, %548 : vector<8x128xf32>
    %551 = arith.divf %549, %550 : vector<8x128xf32>
    %552 = vector.extract_strided_slice %531 {offsets = [0, 256], sizes = [8, 128], strides = [1, 1]} : vector<8x384xbf16> to vector<8x128xbf16>
    %553 = vector.extract_strided_slice %533 {offsets = [0, 256], sizes = [8, 128], strides = [1, 1]} : vector<8x384xf32> to vector<8x128xf32>
    %554 = vector.broadcast %11 : vector<1x128xf32> to vector<8x128xf32>
    %555 = arith.addf %553, %554 : vector<8x128xf32>
    %556 = arith.mulf %542, %555 : vector<8x128xf32>
    %557 = arith.extf %552 : vector<8x128xbf16> to vector<8x128xf32>
    %558 = arith.addf %557, %556 : vector<8x128xf32>
    %559 = math.tanh %558 : vector<8x128xf32>
    %cst_127 = arith.constant 1.000000e+00 : f32
    %560 = vector.broadcast %cst_127 : f32 to vector<8x128xf32>
    %561 = arith.subf %560, %551 : vector<8x128xf32>
    %562 = arith.mulf %561, %559 : vector<8x128xf32>
    %563 = arith.mulf %551, %518 : vector<8x128xf32>
    %564 = arith.addf %562, %563 : vector<8x128xf32>
    %565 = vector.extract_strided_slice %530 {offsets = [0, 384], sizes = [8, 384], strides = [1, 1]} : vector<8x768xbf16> to vector<8x384xbf16>
    %c0_128 = arith.constant 0 : index
    %c0_129 = arith.constant 0 : index
    %566 = vector.load %arg6[%c0_128, %c0_129] : memref<128x384xf32, #tpu.memory_space<vmem>>, vector<128x384xf32>
    %cst_130 = arith.constant dense<0.000000e+00> : vector<8x384xf32>
    %567 = tpu.matmul %523, %566, %cst_130 {dimension_numbers = #tpu.dot_dimension_numbers<[1], [0], [0], [1], [0, 0, 1, 1], [], []>} : vector<8x128xf32>, vector<128x384xf32>, vector<8x384xf32> -> vector<8x384xf32>
    %568 = vector.extract_strided_slice %565 {offsets = [0, 0], sizes = [8, 128], strides = [1, 1]} : vector<8x384xbf16> to vector<8x128xbf16>
    %569 = vector.extract_strided_slice %567 {offsets = [0, 0], sizes = [8, 128], strides = [1, 1]} : vector<8x384xf32> to vector<8x128xf32>
    %570 = arith.extf %568 : vector<8x128xbf16> to vector<8x128xf32>
    %571 = arith.addf %570, %569 : vector<8x128xf32>
    %572 = arith.negf %571 : vector<8x128xf32>
    %573 = math.exp %572 : vector<8x128xf32>
    %cst_131 = arith.constant 1.000000e+00 : f32
    %574 = vector.broadcast %cst_131 : f32 to vector<8x128xf32>
    %575 = arith.addf %574, %573 : vector<8x128xf32>
    %576 = arith.divf %574, %575 : vector<8x128xf32>
    %577 = vector.extract_strided_slice %565 {offsets = [0, 128], sizes = [8, 128], strides = [1, 1]} : vector<8x384xbf16> to vector<8x128xbf16>
    %578 = vector.extract_strided_slice %567 {offsets = [0, 128], sizes = [8, 128], strides = [1, 1]} : vector<8x384xf32> to vector<8x128xf32>
    %579 = arith.extf %577 : vector<8x128xbf16> to vector<8x128xf32>
    %580 = arith.addf %579, %578 : vector<8x128xf32>
    %581 = arith.negf %580 : vector<8x128xf32>
    %582 = math.exp %581 : vector<8x128xf32>
    %cst_132 = arith.constant 1.000000e+00 : f32
    %583 = vector.broadcast %cst_132 : f32 to vector<8x128xf32>
    %584 = arith.addf %583, %582 : vector<8x128xf32>
    %585 = arith.divf %583, %584 : vector<8x128xf32>
    %586 = vector.extract_strided_slice %565 {offsets = [0, 256], sizes = [8, 128], strides = [1, 1]} : vector<8x384xbf16> to vector<8x128xbf16>
    %587 = vector.extract_strided_slice %567 {offsets = [0, 256], sizes = [8, 128], strides = [1, 1]} : vector<8x384xf32> to vector<8x128xf32>
    %588 = vector.broadcast %12 : vector<1x128xf32> to vector<8x128xf32>
    %589 = arith.addf %587, %588 : vector<8x128xf32>
    %590 = arith.mulf %576, %589 : vector<8x128xf32>
    %591 = arith.extf %586 : vector<8x128xbf16> to vector<8x128xf32>
    %592 = arith.addf %591, %590 : vector<8x128xf32>
    %593 = math.tanh %592 : vector<8x128xf32>
    %cst_133 = arith.constant 1.000000e+00 : f32
    %594 = vector.broadcast %cst_133 : f32 to vector<8x128xf32>
    %595 = arith.subf %594, %585 : vector<8x128xf32>
    %596 = arith.mulf %595, %593 : vector<8x128xf32>
    %597 = arith.mulf %585, %523 : vector<8x128xf32>
    %598 = arith.addf %596, %597 : vector<8x128xf32>
    %599 = vector.broadcast %c6_i32 : i32 to vector<8x1xi32>
    %600 = arith.cmpi sgt, %10, %599 : vector<8x1xi32>
    %601 = vector.shape_cast %600 : vector<8x1xi1> to vector<8x1xi1>
    %602 = vector.broadcast %601 : vector<8x1xi1> to vector<8x128xi1>
    %603 = arith.select %602, %564, %518 : vector<8x128xi1>, vector<8x128xf32>
    %604 = vector.broadcast %524 : i32 to vector<8x1xi32>
    %605 = arith.cmpi sgt, %10, %604 : vector<8x1xi32>
    %606 = vector.shape_cast %605 : vector<8x1xi1> to vector<8x1xi1>
    %607 = vector.broadcast %606 : vector<8x1xi1> to vector<8x128xi1>
    %608 = arith.select %607, %598, %523 : vector<8x128xi1>, vector<8x128xf32>
    %c7_i32_134 = arith.constant 7 : i32
    %c7_i32_135 = arith.constant 7 : i32
    %609 = arith.subi %c7_i32_135, %c7_i32_134 : i32
    %610 = arith.index_cast %c7_i32_134 : i32 to index
    %c0_136 = arith.constant 0 : index
    %c0_137 = arith.constant 0 : index
    %611 = vector.load %arg13[%610, %c0_136, %c0_137] : memref<8x8x768xbf16, #tpu.memory_space<vmem>>, vector<1x8x768xbf16>
    %612 = vector.shape_cast %611 : vector<1x8x768xbf16> to vector<8x768xbf16>
    %613 = arith.index_cast %609 : i32 to index
    %c0_138 = arith.constant 0 : index
    %c0_139 = arith.constant 0 : index
    %614 = vector.load %arg13[%613, %c0_138, %c0_139] : memref<8x8x768xbf16, #tpu.memory_space<vmem>>, vector<1x8x768xbf16>
    %615 = vector.shape_cast %614 : vector<1x8x768xbf16> to vector<8x768xbf16>
    %616 = vector.extract_strided_slice %612 {offsets = [0, 0], sizes = [8, 384], strides = [1, 1]} : vector<8x768xbf16> to vector<8x384xbf16>
    %c0_140 = arith.constant 0 : index
    %c0_141 = arith.constant 0 : index
    %617 = vector.load %arg5[%c0_140, %c0_141] : memref<128x384xf32, #tpu.memory_space<vmem>>, vector<128x384xf32>
    %cst_142 = arith.constant dense<0.000000e+00> : vector<8x384xf32>
    %618 = tpu.matmul %603, %617, %cst_142 {dimension_numbers = #tpu.dot_dimension_numbers<[1], [0], [0], [1], [0, 0, 1, 1], [], []>} : vector<8x128xf32>, vector<128x384xf32>, vector<8x384xf32> -> vector<8x384xf32>
    %619 = vector.extract_strided_slice %616 {offsets = [0, 0], sizes = [8, 128], strides = [1, 1]} : vector<8x384xbf16> to vector<8x128xbf16>
    %620 = vector.extract_strided_slice %618 {offsets = [0, 0], sizes = [8, 128], strides = [1, 1]} : vector<8x384xf32> to vector<8x128xf32>
    %621 = arith.extf %619 : vector<8x128xbf16> to vector<8x128xf32>
    %622 = arith.addf %621, %620 : vector<8x128xf32>
    %623 = arith.negf %622 : vector<8x128xf32>
    %624 = math.exp %623 : vector<8x128xf32>
    %cst_143 = arith.constant 1.000000e+00 : f32
    %625 = vector.broadcast %cst_143 : f32 to vector<8x128xf32>
    %626 = arith.addf %625, %624 : vector<8x128xf32>
    %627 = arith.divf %625, %626 : vector<8x128xf32>
    %628 = vector.extract_strided_slice %616 {offsets = [0, 128], sizes = [8, 128], strides = [1, 1]} : vector<8x384xbf16> to vector<8x128xbf16>
    %629 = vector.extract_strided_slice %618 {offsets = [0, 128], sizes = [8, 128], strides = [1, 1]} : vector<8x384xf32> to vector<8x128xf32>
    %630 = arith.extf %628 : vector<8x128xbf16> to vector<8x128xf32>
    %631 = arith.addf %630, %629 : vector<8x128xf32>
    %632 = arith.negf %631 : vector<8x128xf32>
    %633 = math.exp %632 : vector<8x128xf32>
    %cst_144 = arith.constant 1.000000e+00 : f32
    %634 = vector.broadcast %cst_144 : f32 to vector<8x128xf32>
    %635 = arith.addf %634, %633 : vector<8x128xf32>
    %636 = arith.divf %634, %635 : vector<8x128xf32>
    %637 = vector.extract_strided_slice %616 {offsets = [0, 256], sizes = [8, 128], strides = [1, 1]} : vector<8x384xbf16> to vector<8x128xbf16>
    %638 = vector.extract_strided_slice %618 {offsets = [0, 256], sizes = [8, 128], strides = [1, 1]} : vector<8x384xf32> to vector<8x128xf32>
    %639 = vector.broadcast %11 : vector<1x128xf32> to vector<8x128xf32>
    %640 = arith.addf %638, %639 : vector<8x128xf32>
    %641 = arith.mulf %627, %640 : vector<8x128xf32>
    %642 = arith.extf %637 : vector<8x128xbf16> to vector<8x128xf32>
    %643 = arith.addf %642, %641 : vector<8x128xf32>
    %644 = math.tanh %643 : vector<8x128xf32>
    %cst_145 = arith.constant 1.000000e+00 : f32
    %645 = vector.broadcast %cst_145 : f32 to vector<8x128xf32>
    %646 = arith.subf %645, %636 : vector<8x128xf32>
    %647 = arith.mulf %646, %644 : vector<8x128xf32>
    %648 = arith.mulf %636, %603 : vector<8x128xf32>
    %649 = arith.addf %647, %648 : vector<8x128xf32>
    %650 = vector.extract_strided_slice %615 {offsets = [0, 384], sizes = [8, 384], strides = [1, 1]} : vector<8x768xbf16> to vector<8x384xbf16>
    %c0_146 = arith.constant 0 : index
    %c0_147 = arith.constant 0 : index
    %651 = vector.load %arg6[%c0_146, %c0_147] : memref<128x384xf32, #tpu.memory_space<vmem>>, vector<128x384xf32>
    %cst_148 = arith.constant dense<0.000000e+00> : vector<8x384xf32>
    %652 = tpu.matmul %608, %651, %cst_148 {dimension_numbers = #tpu.dot_dimension_numbers<[1], [0], [0], [1], [0, 0, 1, 1], [], []>} : vector<8x128xf32>, vector<128x384xf32>, vector<8x384xf32> -> vector<8x384xf32>
    %653 = vector.extract_strided_slice %650 {offsets = [0, 0], sizes = [8, 128], strides = [1, 1]} : vector<8x384xbf16> to vector<8x128xbf16>
    %654 = vector.extract_strided_slice %652 {offsets = [0, 0], sizes = [8, 128], strides = [1, 1]} : vector<8x384xf32> to vector<8x128xf32>
    %655 = arith.extf %653 : vector<8x128xbf16> to vector<8x128xf32>
    %656 = arith.addf %655, %654 : vector<8x128xf32>
    %657 = arith.negf %656 : vector<8x128xf32>
    %658 = math.exp %657 : vector<8x128xf32>
    %cst_149 = arith.constant 1.000000e+00 : f32
    %659 = vector.broadcast %cst_149 : f32 to vector<8x128xf32>
    %660 = arith.addf %659, %658 : vector<8x128xf32>
    %661 = arith.divf %659, %660 : vector<8x128xf32>
    %662 = vector.extract_strided_slice %650 {offsets = [0, 128], sizes = [8, 128], strides = [1, 1]} : vector<8x384xbf16> to vector<8x128xbf16>
    %663 = vector.extract_strided_slice %652 {offsets = [0, 128], sizes = [8, 128], strides = [1, 1]} : vector<8x384xf32> to vector<8x128xf32>
    %664 = arith.extf %662 : vector<8x128xbf16> to vector<8x128xf32>
    %665 = arith.addf %664, %663 : vector<8x128xf32>
    %666 = arith.negf %665 : vector<8x128xf32>
    %667 = math.exp %666 : vector<8x128xf32>
    %cst_150 = arith.constant 1.000000e+00 : f32
    %668 = vector.broadcast %cst_150 : f32 to vector<8x128xf32>
    %669 = arith.addf %668, %667 : vector<8x128xf32>
    %670 = arith.divf %668, %669 : vector<8x128xf32>
    %671 = vector.extract_strided_slice %650 {offsets = [0, 256], sizes = [8, 128], strides = [1, 1]} : vector<8x384xbf16> to vector<8x128xbf16>
    %672 = vector.extract_strided_slice %652 {offsets = [0, 256], sizes = [8, 128], strides = [1, 1]} : vector<8x384xf32> to vector<8x128xf32>
    %673 = vector.broadcast %12 : vector<1x128xf32> to vector<8x128xf32>
    %674 = arith.addf %672, %673 : vector<8x128xf32>
    %675 = arith.mulf %661, %674 : vector<8x128xf32>
    %676 = arith.extf %671 : vector<8x128xbf16> to vector<8x128xf32>
    %677 = arith.addf %676, %675 : vector<8x128xf32>
    %678 = math.tanh %677 : vector<8x128xf32>
    %cst_151 = arith.constant 1.000000e+00 : f32
    %679 = vector.broadcast %cst_151 : f32 to vector<8x128xf32>
    %680 = arith.subf %679, %670 : vector<8x128xf32>
    %681 = arith.mulf %680, %678 : vector<8x128xf32>
    %682 = arith.mulf %670, %608 : vector<8x128xf32>
    %683 = arith.addf %681, %682 : vector<8x128xf32>
    %684 = vector.broadcast %c7_i32_134 : i32 to vector<8x1xi32>
    %685 = arith.cmpi sgt, %10, %684 : vector<8x1xi32>
    %686 = vector.shape_cast %685 : vector<8x1xi1> to vector<8x1xi1>
    %687 = vector.broadcast %686 : vector<8x1xi1> to vector<8x128xi1>
    %688 = arith.select %687, %649, %603 : vector<8x128xi1>, vector<8x128xf32>
    %689 = vector.broadcast %609 : i32 to vector<8x1xi32>
    %690 = arith.cmpi sgt, %10, %689 : vector<8x1xi32>
    %691 = vector.shape_cast %690 : vector<8x1xi1> to vector<8x1xi1>
    %692 = vector.broadcast %691 : vector<8x1xi1> to vector<8x128xi1>
    %693 = arith.select %692, %683, %608 : vector<8x128xi1>, vector<8x128xf32>
    %c8_i32 = arith.constant 8 : i32
    %cst_152 = arith.constant 0.000000e+00 : f32
    %694 = vector.broadcast %cst_152 : f32 to vector<8x128xf32>
    %695 = arith.maximumf %688, %694 : vector<8x128xf32>
    %cst_153 = arith.constant 0.000000e+00 : f32
    %696 = vector.broadcast %cst_153 : f32 to vector<8x128xf32>
    %697 = arith.maximumf %693, %696 : vector<8x128xf32>
    %c0_154 = arith.constant 0 : index
    %c0_155 = arith.constant 0 : index
    %698 = vector.load %arg9[%c0_154, %c0_155] : memref<1x128xf32, #tpu.memory_space<vmem>>, vector<1x128xf32>
    %699 = vector.broadcast %698 : vector<1x128xf32> to vector<8x128xf32>
    %700 = arith.mulf %695, %699 : vector<8x128xf32>
    %cst_156 = arith.constant dense<0.000000e+00> : vector<8xf32>
    %701 = vector.multi_reduction <add>, %700, %cst_156 [1] : vector<8x128xf32> to vector<8xf32>
    %702 = vector.shape_cast %701 : vector<8xf32> to vector<8x1xf32>
    %c0_157 = arith.constant 0 : index
    %c0_158 = arith.constant 0 : index
    %703 = vector.load %arg10[%c0_157, %c0_158] : memref<1x128xf32, #tpu.memory_space<vmem>>, vector<1x128xf32>
    %704 = vector.broadcast %703 : vector<1x128xf32> to vector<8x128xf32>
    %705 = arith.mulf %697, %704 : vector<8x128xf32>
    %cst_159 = arith.constant dense<0.000000e+00> : vector<8xf32>
    %706 = vector.multi_reduction <add>, %705, %cst_159 [1] : vector<8x128xf32> to vector<8xf32>
    %707 = vector.shape_cast %706 : vector<8xf32> to vector<8x1xf32>
    %708 = arith.addf %702, %707 : vector<8x1xf32>
    %c0_160 = arith.constant 0 : index
    %c0_161 = arith.constant 0 : index
    %709 = vector.load %arg11[%c0_160, %c0_161] : memref<1x1xf32, #tpu.memory_space<vmem>>, vector<1x1xf32>
    %710 = vector.broadcast %709 : vector<1x1xf32> to vector<8x1xf32>
    %711 = arith.addf %708, %710 : vector<8x1xf32>
    %712 = arith.negf %711 : vector<8x1xf32>
    %713 = math.exp %712 : vector<8x1xf32>
    %cst_162 = arith.constant 1.000000e+00 : f32
    %714 = vector.broadcast %cst_162 : f32 to vector<8x1xf32>
    %715 = arith.addf %714, %713 : vector<8x1xf32>
    %716 = arith.divf %714, %715 : vector<8x1xf32>
    %717 = vector.shape_cast %716 : vector<8x1xf32> to vector<8x1xf32>
    %718 = vector.broadcast %717 : vector<8x1xf32> to vector<8x128xf32>
    %c0_163 = arith.constant 0 : index
    %c0_164 = arith.constant 0 : index
    %719 = vector.load %arg12[%c0_163, %c0_164] : memref<8x128xf32, #tpu.memory_space<vmem>>, vector<8x128xf32>
    tpu.vector_store %arg12[%c0_163, %c0_164], %718 {strides = array<i32>} : memref<8x128xf32, #tpu.memory_space<vmem>>, vector<8x128xf32>,
    return
  }
  func.func @transform_0(%arg0: i32) -> (i32, i32, i32) {
    %c0_i32 = arith.constant 0 : i32
    %c0_i32_0 = arith.constant 0 : i32
    %c0_i32_1 = arith.constant 0 : i32
    return %c0_i32, %arg0, %c0_i32_0 : i32, i32, i32
  }
  func.func @transform_1(%arg0: i32) -> (i32, i32) {
    %c0_i32 = arith.constant 0 : i32
    %c0_i32_0 = arith.constant 0 : i32
    return %arg0, %c0_i32 : i32, i32
  }
  func.func @transform_2(%arg0: i32) -> (i32, i32) {
    %c0_i32 = arith.constant 0 : i32
    %c0_i32_0 = arith.constant 0 : i32
    %c0_i32_1 = arith.constant 0 : i32
    return %c0_i32, %c0_i32_0 : i32, i32
  }
  func.func @transform_3(%arg0: i32) -> (i32, i32) {
    %c0_i32 = arith.constant 0 : i32
    %c0_i32_0 = arith.constant 0 : i32
    %c0_i32_1 = arith.constant 0 : i32
    return %c0_i32, %c0_i32_0 : i32, i32
  }
  func.func @transform_4(%arg0: i32) -> (i32, i32) {
    %c0_i32 = arith.constant 0 : i32
    %c0_i32_0 = arith.constant 0 : i32
    %c0_i32_1 = arith.constant 0 : i32
    return %c0_i32, %c0_i32_0 : i32, i32
  }
  func.func @transform_5(%arg0: i32) -> (i32, i32) {
    %c0_i32 = arith.constant 0 : i32
    %c0_i32_0 = arith.constant 0 : i32
    %c0_i32_1 = arith.constant 0 : i32
    return %c0_i32, %c0_i32_0 : i32, i32
  }
  func.func @transform_6(%arg0: i32) -> (i32, i32) {
    %c0_i32 = arith.constant 0 : i32
    %c0_i32_0 = arith.constant 0 : i32
    %c0_i32_1 = arith.constant 0 : i32
    return %c0_i32, %c0_i32_0 : i32, i32
  }
  func.func @transform_7(%arg0: i32) -> (i32, i32) {
    %c0_i32 = arith.constant 0 : i32
    %c0_i32_0 = arith.constant 0 : i32
    %c0_i32_1 = arith.constant 0 : i32
    return %c0_i32, %c0_i32_0 : i32, i32
  }
  func.func @transform_8(%arg0: i32) -> (i32, i32) {
    %c0_i32 = arith.constant 0 : i32
    %c0_i32_0 = arith.constant 0 : i32
    %c0_i32_1 = arith.constant 0 : i32
    return %c0_i32, %c0_i32_0 : i32, i32
  }
  func.func @transform_9(%arg0: i32) -> (i32, i32) {
    %c0_i32 = arith.constant 0 : i32
    %c0_i32_0 = arith.constant 0 : i32
    %c0_i32_1 = arith.constant 0 : i32
    return %c0_i32, %c0_i32_0 : i32, i32
  }
  func.func @transform_10(%arg0: i32) -> (i32, i32) {
    %c0_i32 = arith.constant 0 : i32
    %c0_i32_0 = arith.constant 0 : i32
    %c0_i32_1 = arith.constant 0 : i32
    return %c0_i32, %c0_i32_0 : i32, i32
  }
  func.func @transform_11(%arg0: i32) -> (i32, i32) {
    %c0_i32 = arith.constant 0 : i32
    %c0_i32_0 = arith.constant 0 : i32
    return %arg0, %c0_i32 : i32, i32
  }
}

</mosaic_0001>

<bundles_post_ra>
// kernel: tpu_custom_call.1
= control target key start
LH: loop header
LB: loop body
LE: loop exit
PB: predicated region body
PF: predicated region fallthrough
CT: control target
= control target key end

     0   :  { %s5196_s0 = inlined_call_operand.hbm [shape: bf16[8,8,32], index: 0, kind: input, shape index: {}]   ;;  %s5197_s1 = inlined_call_operand.vmem [shape: s32[8,1], index: 1, kind: input, shape index: {}]   ;;  %s5198_s2 = inlined_call_operand.hbm [shape: bf16[32,768], index: 2, kind: input, shape index: {}]   ;;  %s5199_s3 = inlined_call_operand.vmem [shape: f32[1,768], index: 3, kind: input, shape index: {}]   ;;  %s5200_s4 = inlined_call_operand.hbm [shape: f32[128,384], index: 4, kind: input, shape index: {}]   ;;  %s5201_s5 = inlined_call_operand.hbm [shape: f32[128,384], index: 5, kind: input, shape index: {}]   ;;  %s5202_s6 = inlined_call_operand.vmem [shape: f32[1,128], index: 6, kind: input, shape index: {}]   ;;  %s5203_s7 = inlined_call_operand.vmem [shape: f32[1,128], index: 7, kind: input, shape index: {}]   ;;  %s5204_s8 = inlined_call_operand.vmem [shape: f32[1,128], index: 8, kind: input, shape index: {}]   ;;  %s5205_s9 = inlined_call_operand.vmem [shape: f32[1,128], index: 9, kind: input, shape index: {}]   ;;  %s5206_s10 = inlined_call_operand.<no memory space> [shape: f32[1,1], index: 10, kind: input, shape index: {}]   ;;  %s5207_s11 = inlined_call_operand.hbm [shape: f32[8,128], index: 11, kind: output, shape index: {}]  }
   0x1   :  { %v16_v0 = vstv %s5206_s10 }
   0x2   :  { %17 = vst [vmem:[#allocation3] sm:$0x1] %v16_v0 }
   0x3   :  { %18 = vsyncpa [#allocation5], 0 }
   0x4   :  { %19 = vsyncpa [#allocation8], 0 }
   0x5   :  { %20 = vsyncpa [#allocation11], 0  ;;  %s41_s21 = sshll.u32 %s5198_s2, 4  ;;  %s42_s21 = int_to_ptr.hbm [resolvable:$true] %s41_s21 }
   0x6   :  { %21 = vsyncpa [#allocation6], 0  ;;  %s3219_s22 = smov [#allocation7]   ;;  %s26_s26 = sshll.u32 %s5196_s0, 4  ;;  %s27_s26 = int_to_ptr.hbm [resolvable:$true] %s26_s26 }
   0x7   :  { %s43_s23 = sshll.u32 %s3219_s22, 4  ;;  %s3220_s27 = smov 384   ;;  %s44_s23 = int_to_ptr.vmem [resolvable:$true] %s43_s23 }
   0x8   :  { %s3221_s28 = smov 24   ;;  %s3222_s10 = smov [#allocation4]  }
   0x9   :  { %49 = dma.hbm_to_vmem [thread:$0]  %s42_s21, 1536, %s44_s23, [#allocation8], %s3220_s27, %s3220_s27, %s3221_s28  }
   0xa   :  { %s28_s29 = sshll.u32 %s3222_s10, 4  ;;  %s3223_s30 = smov 64   ;;  %s29_s29 = int_to_ptr.vmem [resolvable:$true] %s28_s29 }
   0xb   :  { %s3224_s12 = smov 4   ;;  %s56_s14 = sshll.u32 %s5200_s4, 4  ;;  %s57_s14 = int_to_ptr.hbm [resolvable:$true] %s56_s14 }
   0xc   :  { %34 = dma.hbm_to_vmem [thread:$0]  %s27_s26, 512, %s29_s29, [#allocation5], %s3223_s30, %s3223_s30, %s3224_s12  }
   0xd   :  { %s3225_s15 = smov [#allocation9]   ;;  %s69_s18 = sshll.u32 %s5201_s5, 4  ;;  %s70_s18 = int_to_ptr.hbm [resolvable:$true] %s69_s18 }
   0xe   :  { %s58_s16 = sshll.u32 %s3225_s15, 4  ;;  %s3226_s19 = smov [#allocation10]   ;;  %s59_s16 = int_to_ptr.vmem [resolvable:$true] %s58_s16 }
   0xf   :  { %64 = dma.hbm_to_vmem [thread:$0]  %s57_s14, 6144, %s59_s16, [#allocation8], %s3220_s27, %s3220_s27, %s3221_s28  }
  0x10   :  { %s71_s20 = sshll.u32 %s3226_s19, 4  ;;  %s72_s20 = int_to_ptr.vmem [resolvable:$true] %s71_s20 }
  0x11   :  { %77 = dma.hbm_to_vmem [thread:$0]  %s70_s18, 6144, %s72_s20, [#allocation11], %s3220_s27, %s3220_s27, %s3221_s28  }
  0x12   :  { %3211 = dma.done.wait [#allocation5], 512  }
  0x13   :  { %3212 = vsyncadd [#allocation5], 4294966784 }
  0x14   :  { %3213 = dma.done.wait [#allocation8], 7680  }
  0x15   :  { %3214 = vsyncadd [#allocation8], 4294959616 }
  0x16   :  { %3215 = dma.done.wait [#allocation11], 6144  }
  0x17   :  { %3216 = vsyncadd [#allocation11], 4294961152  ;;  %v2610_v1 = vld [vmem:[#allocation7 + $0x30] sm:$0xf]  ;;  %v2708_v2 = vld [vmem:[#allocation7 + $0x44] sm:$0xf0] }
  0x18   :  { %v2705_v3 = vld [vmem:[#allocation7 + $0x34] sm:$0xf]  ;;  %v2611_v4 = vor.u32 %v2708_v2, %v2610_v1  ;;  %v2612_v5 = vld [vmem:[#allocation7 + $0x48] sm:$0xf0]  ;;  %v2618_v6 = vld [vmem:[#allocation7 + $0x38] sm:$0xf] }
  0x19   :  { %v2709_v7 = vld [vmem:[#allocation7 + $0x4c] sm:$0xf0]  ;;  %v2615_v8 = vor.u32 %v2705_v3, %v2612_v5  ;;  %v2706_v10 = vld [vmem:[#allocation7 + $0x3c] sm:$0xf]  ;;  %v2620_v11 = vld [vmem:[#allocation7 + $0x50] sm:$0xf0] }
  0x1a   :  { %v2619_v9 = vor.u32 %v2709_v7, %v2618_v6  ;;  %v2586_v12 = vld [vmem:[#allocation7] sm:$0xf]  ;;  %238 = vmatpush.bf16.msra.mxu0 %v2611_v4  ;;  %v2623_v13 = vor.u32 %v2706_v10, %v2620_v11  ;;  %v2702_v14 = vld [vmem:[#allocation7 + $0x14] sm:$0xf0]  ;;  %v2699_v15 = vld [vmem:[#allocation7 + $0x4] sm:$0xf] }
  0x1b   :  { %v2588_v16 = vld [vmem:[#allocation7 + $0x18] sm:$0xf0]  ;;  %267 = vmatpush.bf16.msra.mxu1 %v2615_v8  ;;  %v2587_v17 = vor.u32 %v2702_v14, %v2586_v12  ;;  %v2594_v19 = vld [vmem:[#allocation7 + $0x8] sm:$0xf]  ;;  %v2703_v20 = vld [vmem:[#allocation7 + $0x1c] sm:$0xf0] }
  0x1c   :  { %296 = vmatpush.bf16.msra.mxu2 %v2619_v9  ;;  %v2591_v18 = vor.u32 %v2699_v15, %v2588_v16  ;;  %v2700_v21 = vld [vmem:[#allocation7 + $0xc] sm:$0xf]  ;;  %325 = vmatpush.bf16.msra.mxu3 %v2623_v13  ;;  %v2595_v22 = vor.u32 %v2703_v20, %v2594_v19  ;;  %v2596_v23 = vld [vmem:[#allocation7 + $0x20] sm:$0xf0]  ;;  %v2626_v25 = vld [vmem:[#allocation7 + $0x40] sm:$0xf] }
  0x1d   :  { %v3305_v24 = vld [vmem:[#allocation4] sm:$0xff]  ;;  %v2599_v26 = vor.u32 %v2700_v21, %v2596_v23  ;;  %v2710_v27 = vld [vmem:[#allocation7 + $0x54] sm:$0xf0]  ;;  %v2628_v29 = vld [vmem:[#allocation7 + $0x58] sm:$0xf0]  ;;  %vm219_vm0 = vcmask 261120  }
  0x1e   :  { %v2707_v28 = vld [vmem:[#allocation7 + $0x44] sm:$0xf]  ;;  %239 = vmatpush.bf16.msra.mxu0 %v2587_v17  ;;  %v2627_v30 = vor.u32 %v2710_v27, %v2626_v25  ;;  %v3307_v32 = vld [vmem:[#allocation9 + $0x170] sm:$0xff]  ;;  %v3309_v33 = vld [vmem:[#allocation9 + $0x168] sm:$0xff]  ;;  %s2556_s0 = sshll.u32 %s5207_s11, 4  ;;  %s2557_s0 = int_to_ptr.hbm [resolvable:$true] %s2556_s0 }
  0x1f   :  { %v2631_v31 = vor.u32 %v2707_v28, %v2628_v29  ;;  %268 = vmatpush.bf16.msra.mxu1 %v2591_v18  ;;  %5475 = vst [vmem:[#allocation17_spill] sm:$0xff] %v3307_v32  ;;  %v3317_v34 = vld [vmem:[#allocation9 + $0x158] sm:$0xff]  ;;  %v3319_v35 = vld [vmem:[#allocation9 + $0x150] sm:$0xff]  ;;  %v2704_v37 = vld [vmem:[#allocation7 + $0x24] sm:$0xf0] }
  0x20   :  { %297 = vmatpush.bf16.msra.mxu2 %v2595_v22  ;;  %326 = vmatpush.bf16.msra.mxu3 %v2599_v26  ;;  %5476 = vst [vmem:[#allocation18_spill] sm:$0xff] %v3317_v34  ;;  %v2602_v36 = vld [vmem:[#allocation7 + $0x10] sm:$0xf]  ;;  %v2701_v38 = vld [vmem:[#allocation7 + $0x14] sm:$0xf]  ;;  %v3325_v41 = vld [vmem:[#allocation9 + $0x138] sm:$0xff] }
  0x21   :  { %2632 = vmatmul.msk.bf16.vlgmr.msra.gmra.mxu0 %vm219_vm0, %v3305_v24  ;;  %v2603_v39 = vor.u32 %v2704_v37, %v2602_v36  ;;  %v2604_v40 = vld [vmem:[#allocation7 + $0x28] sm:$0xf0]  ;;  %5477 = vst [vmem:[#allocation19_spill] sm:$0xff] %v3325_v41  ;;  %v3327_v42 = vld [vmem:[#allocation9 + $0x140] sm:$0xff]  ;;  %v3339_v47 = vld [vmem:[#allocation9 + $0x110] sm:$0xff] }
  0x22   :  { %354 = vmatpush.bf16.msrb.mxu0 %v2627_v30  ;;  %2636 = vmatmul.msk.bf16.vlgmr.msra.gmra.mxu1 %vm219_vm0, %v3305_v24  ;;  %5478 = vst [vmem:[#allocation20_spill] sm:$0xff] %v3327_v42  ;;  %v2607_v43 = vor.u32 %v2701_v38, %v2604_v40  ;;  %v3331_v44 = vld [vmem:[#allocation9 + $0x120] sm:$0xff]  ;;  %v3333_v45 = vld [vmem:[#allocation9 + $0x128] sm:$0xff]  ;;  %v3343_v48 = vld [vmem:[#allocation9 + $0xf0] sm:$0xff] }
  0x23   :  { %383 = vmatpush.bf16.msrb.mxu1 %v2631_v31  ;;  %2640 = vmatmul.msk.bf16.vlgmr.msra.gmra.mxu2 %vm219_vm0, %v3305_v24  ;;  %5479 = vst [vmem:[#allocation21_spill] sm:$0xff] %v3331_v44  ;;  %v3337_v46 = vld [vmem:[#allocation9 + $0x108] sm:$0xff]  ;;  %v3345_v49 = vld [vmem:[#allocation9 + $0xf8] sm:$0xff]  ;;  %v3353_v52 = vld [vmem:[#allocation9 + $0xe0] sm:$0xff] }
  0x24   :  { %2644 = vmatmul.msk.bf16.vlgmr.msra.gmra.mxu3 %vm219_vm0, %v3305_v24  ;;  %512 = vmatpush.msrb.mxu2 %v3309_v33  ;;  %5480 = vst [vmem:[#allocation22_spill] sm:$0xff] %v3333_v45  ;;  %v3349_v50 = vld [vmem:[#allocation9 + $0xd8] sm:$0xff]  ;;  %v3351_v51 = vld [vmem:[#allocation4 + $0x8] sm:$0xff]  ;;  %v3357_v53 = vld [vmem:[#allocation9 + $0xc0] sm:$0xff] }
  0x25   :  { %532 = vmatpush.msrb.mxu3 %v3307_v32  ;;  %5481 = vst [vmem:[#allocation23_spill] sm:$0xff] %v3337_v46  ;;  %v3361_v54 = vld [vmem:[#allocation9 + $0xa8] sm:$0xff]  ;;  %v3372_v56 = vld [vmem:[#allocation9 + $0x90] sm:$0xff]  ;;  %v3380_v58 = vld [vmem:[#allocation9 + $0x78] sm:$0xff] }
  0x26   :  { %513 = vmatpush.msrb.mxu2 %v3319_v35  ;;  %355 = vmatpush.bf16.msrb.mxu0 %v2603_v39  ;;  %5482 = vst [vmem:[#allocation24_spill] sm:$0xff] %v3339_v47  ;;  %v3365_v55 = vld [vmem:[#allocation9 + $0xc8] sm:$0xff]  ;;  %v3376_v57 = vld [vmem:[#allocation9 + $0xb0] sm:$0xff]  ;;  %v3382_v59 = vld [vmem:[#allocation9 + $0x98] sm:$0xff] }
  0x27   :  { %533 = vmatpush.msrb.mxu3 %v3317_v34  ;;  %384 = vmatpush.bf16.msrb.mxu1 %v2607_v43  ;;  %5483 = vst [vmem:[#allocation25_spill] sm:$0xff] %v3343_v48  ;;  %v3386_v60 = vld [vmem:[#allocation9 + $0x60] sm:$0xff]  ;;  %v3392_v62 = vld [vmem:[#allocation9 + $0x48] sm:$0xff]  ;;  %v3398_v0 = vld [vmem:[#allocation9 + $0x30] sm:$0xff] }
  0x28   :  { %514 = vmatpush.msrb.mxu2 %v3325_v41  ;;  %v3388_v61 = vld [vmem:[#allocation9 + $0x80] sm:$0xff]  ;;  %v3394_v63 = vld [vmem:[#allocation9 + $0x68] sm:$0xff]  ;;  %v3400_v1 = vld [vmem:[#allocation9 + $0x50] sm:$0xff] }
  0x29   :  { %534 = vmatpush.msrb.mxu3 %v3327_v42  ;;  %v3404_v2 = vld [vmem:[#allocation9 + $0x18] sm:$0xff]  ;;  %v3406_v3 = vld [vmem:[#allocation4 + $0x10] sm:$0xff]  ;;  %v3412_v5 = vld [vmem:[#allocation9] sm:$0xff] }
  0x2a   :  { %515 = vmatpush.msrb.mxu2 %v3331_v44  ;;  %v3408_v4 = vld [vmem:[#allocation9 + $0x38] sm:$0xff]  ;;  %v3420_v7 = vld [vmem:[#allocation9 + $0x20] sm:$0xff]  ;;  %v3431_v9 = vld [vmem:[#allocation9 + $0x8] sm:$0xff] }
  0x2b   :  { %535 = vmatpush.msrb.mxu3 %v3333_v45  ;;  %v3416_v6 = vld [vmem:[#allocation9 + $0x178] sm:$0xff]  ;;  %v3427_v8 = vld [vmem:[#allocation9 + $0x160] sm:$0xff]  ;;  %v3434_v10 = vld [vmem:[#allocation10 + $0x170] sm:$0xff] }
  0x2c   :  { %516 = vmatpush.msrb.mxu2 %v3337_v46  ;;  %5484 = vst [vmem:[#allocation26_spill] sm:$0xff] %v3427_v8  ;;  %v3437_v11 = vld [vmem:[#allocation10 + $0x168] sm:$0xff]  ;;  %697 = vmatpush.msra.mxu0 %v3434_v10  ;;  %v3442_v13 = vld [vmem:[#allocation10 + $0x158] sm:$0xff]  ;;  %v3446_v14 = vld [vmem:[#allocation10 + $0x150] sm:$0xff] }
  0x2d   :  { %536 = vmatpush.msrb.mxu3 %v3339_v47  ;;  %v3440_v12 = vld [vmem:[#allocation9 + $0x148] sm:$0xff]  ;;  %v3448_v15 = vld [vmem:[#allocation9 + $0x130] sm:$0xff]  ;;  %v3451_v16 = vld [vmem:[#allocation10 + $0x140] sm:$0xff] }
  0x2e   :  { %517 = vmatpush.msrb.mxu2 %v3343_v48  ;;  %698 = vmatpush.msra.mxu0 %v3442_v13  ;;  %5485 = vst [vmem:[#allocation27_spill] sm:$0xff] %v3451_v16  ;;  %v3455_v17 = vld [vmem:[#allocation10 + $0x138] sm:$0xff]  ;;  %v3460_v19 = vld [vmem:[#allocation10 + $0x128] sm:$0xff]  ;;  %v3464_v20 = vld [vmem:[#allocation10 + $0x120] sm:$0xff] }
  0x2f   :  { %537 = vmatpush.msrb.mxu3 %v3345_v49  ;;  %v3457_v18 = vld [vmem:[#allocation9 + $0x118] sm:$0xff]  ;;  %5486 = vst [vmem:[#allocation28_spill] sm:$0xff] %v3460_v19  ;;  %v3466_v21 = vld [vmem:[#allocation9 + $0x100] sm:$0xff]  ;;  %v3471_v22 = vld [vmem:[#allocation10 + $0x108] sm:$0xff] }
  0x30   :  { %518 = vmatpush.msrb.mxu2 %v3349_v50  ;;  %699 = vmatpush.msra.mxu0 %v3451_v16  ;;  %5487 = vst [vmem:[#allocation29_spill] sm:$0xff] %v3466_v21  ;;  %v3473_v23 = vld [vmem:[#allocation9 + $0xe8] sm:$0xff]  ;;  %v3475_v25 = vld [vmem:[#allocation4 + $0x18] sm:$0xff]  ;;  %v3479_v26 = vld [vmem:[#allocation10 + $0xf0] sm:$0xff] }
  0x31   :  { %538 = vmatpush.msrb.mxu3 %v3353_v52  ;;  %2633 = vmatmul.msk.bf16.gmra.mxu0 %vm219_vm0, %v3351_v51  ;;  %5488 = vst [vmem:[#allocation30_spill] sm:$0xff] %v3471_v22  ;;  %v3483_v27 = vld [vmem:[#allocation9 + $0xd0] sm:$0xff]  ;;  %v3488_v28 = vld [vmem:[#allocation10 + $0xd8] sm:$0xff]  ;;  %v3500_v31 = vld [vmem:[#allocation10 + $0xc0] sm:$0xff] }
  0x32   :  { %519 = vmatpush.msrb.mxu2 %v3357_v53  ;;  %2637 = vmatmul.msk.bf16.gmra.mxu1 %vm219_vm0, %v3351_v51  ;;  %5489 = vst [vmem:[#allocation31_spill] sm:$0xff] %v3473_v23  ;;  %v3494_v29 = vld [vmem:[#allocation9 + $0xb8] sm:$0xff]  ;;  %v3496_v30 = vld [vmem:[#allocation10 + $0x110] sm:$0xff]  ;;  %v3506_v37 = vld [vmem:[#allocation9 + $0xa0] sm:$0xff] }
  0x33   :  { %2641 = vmatmul.msk.bf16.gmra.mxu2 %vm219_vm0, %v3351_v51  ;;  %539 = vmatpush.msrb.mxu3 %v3365_v55  ;;  %5490 = vst [vmem:[#allocation32_spill] sm:$0xff] %v3475_v25  ;;  %v3503_v36 = vld [vmem:[#allocation10 + $0x178] sm:$0xff]  ;;  %v3511_v39 = vld [vmem:[#allocation10 + $0xa8] sm:$0xff]  ;;  %v3515_v40 = vld [vmem:[#allocation10 + $0x160] sm:$0xff] }
  0x34   :  { %2645 = vmatmul.msk.bf16.gmra.mxu3 %vm219_vm0, %v3351_v51  ;;  %520 = vmatpush.msrb.mxu2 %v3361_v54  ;;  %5491 = vst [vmem:[#allocation33_spill] sm:$0xff] %v3479_v26  ;;  %v3509_v38 = vld [vmem:[#allocation10 + $0xf8] sm:$0xff]  ;;  %v3517_v43 = vld [vmem:[#allocation10 + $0xe0] sm:$0xff]  ;;  %v3532_v16 = vld [vmem:[#allocation9 + $0x70] sm:$0xff] }
  0x35   :  { %540 = vmatpush.msrb.mxu3 %v3376_v57  ;;  %700 = vmatpush.msra.mxu0 %v3460_v19  ;;  %5492 = vst [vmem:[#allocation34_spill] sm:$0xff] %v3483_v27  ;;  %v3529_v19 = vld [vmem:[#allocation10 + $0xc8] sm:$0xff] }
  0x36   :  { %521 = vmatpush.msrb.mxu2 %v3372_v56  ;;  %5493 = vst [vmem:[#allocation35_spill] sm:$0xff] %v3488_v28  ;;  %717 = vmatpush.msra.mxu1 %v3503_v36 }
  0x37   :  { %541 = vmatpush.msrb.mxu3 %v3382_v59  ;;  %5494 = vst [vmem:[#allocation36_spill] sm:$0xff] %v3494_v29  ;;  %701 = vmatpush.msra.mxu0 %v3496_v30 }
  0x38   :  { %522 = vmatpush.msrb.mxu2 %v3380_v58  ;;  %5495 = vst [vmem:[#allocation37_spill] sm:$0xff] %v3496_v30  ;;  %v3525_v30 = vld [vmem:[#allocation10 + $0x90] sm:$0xff]  ;;  %718 = vmatpush.msra.mxu1 %v3515_v40 }
  0x39   :  { %542 = vmatpush.msrb.mxu3 %v3388_v61  ;;  %5496 = vst [vmem:[#allocation38_spill] sm:$0xff] %v3500_v31  ;;  %702 = vmatpush.msra.mxu0 %v3509_v38 }
  0x3a   :  { %523 = vmatpush.msrb.mxu2 %v3386_v60  ;;  %5497 = vst [vmem:[#allocation39_spill] sm:$0xff] %v3506_v37 }
  0x3b   :  { %543 = vmatpush.msrb.mxu3 %v3394_v63  ;;  %5498 = vst [vmem:[#allocation40_spill] sm:$0xff] %v3509_v38  ;;  %703 = vmatpush.msra.mxu0 %v3517_v43  ;;  %v3542_v38 = vld [vmem:[#allocation9 + $0x58] sm:$0xff] }
  0x3c   :  { %524 = vmatpush.msrb.mxu2 %v3392_v62  ;;  %5499 = vst [vmem:[#allocation41_spill] sm:$0xff] %v3511_v39 }
  0x3d   :  { %544 = vmatpush.msrb.mxu3 %v3400_v1  ;;  %5500 = vst [vmem:[#allocation42_spill] sm:$0xff] %v3515_v40  ;;  %704 = vmatpush.msra.mxu0 %v3529_v19  ;;  %v3545_v40 = vld [vmem:[#allocation10 + $0x60] sm:$0xff] }
  0x3e   :  { %525 = vmatpush.msrb.mxu2 %v3398_v0  ;;  %5501 = vst [vmem:[#allocation43_spill] sm:$0xff] %v3517_v43  ;;  %v3552_v43 = vld [vmem:[#allocation10 + $0x48] sm:$0xff] }
  0x3f   :  { %545 = vmatpush.msrb.mxu3 %v3408_v4  ;;  %5504 = vst [vmem:[#allocation46_spill] sm:$0xff] %v3525_v30 }
  0x40   :  { %526 = vmatpush.msrb.mxu2 %v3404_v2  ;;  %5505 = vst [vmem:[#allocation47_spill] sm:$0xff] %v3529_v19  ;;  %v3560_v19 = vld [vmem:[#allocation9 + $0x10] sm:$0xff] }
  0x41   :  { %2634 = vmatmul.msk.bf16.gmra.mxu0 %vm219_vm0, %v3406_v3  ;;  %546 = vmatpush.msrb.mxu3 %v3420_v7  ;;  %5506 = vst [vmem:[#allocation48_spill] sm:$0xff] %v3532_v16 }
  0x42   :  { %527 = vmatpush.msrb.mxu2 %v3412_v5  ;;  %2638 = vmatmul.msk.bf16.gmra.mxu1 %vm219_vm0, %v3406_v3  ;;  %5509 = vst [vmem:[#allocation51_spill] sm:$0xff] %v3542_v38 }
  0x43   :  { %2642 = vmatmul.msk.bf16.gmra.mxu2 %vm219_vm0, %v3406_v3  ;;  %547 = vmatpush.msrb.mxu3 %v3431_v9  ;;  %5510 = vst [vmem:[#allocation52_spill] sm:$0xff] %v3545_v40 }
  0x44   :  { %2646 = vmatmul.msk.bf16.gmra.mxu3 %vm219_vm0, %v3406_v3  ;;  %552 = vmatpush.msra.mxu2 %v3416_v6  ;;  %5512 = vst [vmem:[#allocation54_spill] sm:$0xff] %v3552_v43 }
  0x45   :  { %677 = vmatpush.msra.mxu3 %v3437_v11  ;;  %5514 = vst [vmem:[#allocation56_spill] sm:$0xff] %v3560_v19 }
  0x46   :  { %553 = vmatpush.msra.mxu2 %v3427_v8 }
  0x47   :  { %678 = vmatpush.msra.mxu3 %v3446_v14 }
  0x48   :  { %554 = vmatpush.msra.mxu2 %v3440_v12 }
  0x49   :  { %679 = vmatpush.msra.mxu3 %v3455_v17 }
  0x4a   :  { %555 = vmatpush.msra.mxu2 %v3448_v15 }
  0x4b   :  { %680 = vmatpush.msra.mxu3 %v3464_v20 }
  0x4c   :  { %556 = vmatpush.msra.mxu2 %v3457_v18 }
  0x4d   :  { %681 = vmatpush.msra.mxu3 %v3471_v22 }
  0x4e   :  { %557 = vmatpush.msra.mxu2 %v3466_v21 }
  0x4f   :  { %682 = vmatpush.msra.mxu3 %v3479_v26  ;;  %v3520_v26 = vld [vmem:[#allocation9 + $0x88] sm:$0xff] }
  0x50   :  { %558 = vmatpush.msra.mxu2 %v3473_v23  ;;  %5502 = vst [vmem:[#allocation44_spill] sm:$0xff] %v3520_v26 }
  0x51   :  { %2635 = vmatmul.msk.bf16.gmra.mxu0 %vm219_vm0, %v3475_v25  ;;  %683 = vmatpush.msra.mxu3 %v3488_v28  ;;  %v3523_v28 = vld [vmem:[#allocation10 + $0x148] sm:$0xff] }
  0x52   :  { %2639 = vmatmul.msk.bf16.gmra.mxu1 %vm219_vm0, %v3475_v25  ;;  %559 = vmatpush.msra.mxu2 %v3483_v27  ;;  %5503 = vst [vmem:[#allocation45_spill] sm:$0xff] %v3523_v28 }
  0x53   :  { %2643 = vmatmul.msk.bf16.gmra.mxu2 %vm219_vm0, %v3475_v25  ;;  %684 = vmatpush.msra.mxu3 %v3500_v31  ;;  %v3535_v31 = vld [vmem:[#allocation10 + $0x130] sm:$0xff] }
  0x54   :  { %2647 = vmatmul.msk.bf16.gmra.mxu3 %vm219_vm0, %v3475_v25  ;;  %560 = vmatpush.msra.mxu2 %v3494_v29  ;;  %5507 = vst [vmem:[#allocation49_spill] sm:$0xff] %v3535_v31  ;;  %v3537_v25 = vld [vmem:[#allocation10 + $0x78] sm:$0xff] }
  0x55   :  { %685 = vmatpush.msra.mxu3 %v3511_v39  ;;  %5508 = vst [vmem:[#allocation50_spill] sm:$0xff] %v3537_v25  ;;  %719 = vmatpush.msra.mxu1 %v3523_v28  ;;  %v3550_v39 = vld [vmem:[#allocation9 + $0x40] sm:$0xff]  ;;  %v3578_v28 = vld [vmem:[#allocation10 + $0x98] sm:$0xff] }
  0x56   :  { %561 = vmatpush.msra.mxu2 %v3506_v37  ;;  %5511 = vst [vmem:[#allocation53_spill] sm:$0xff] %v3550_v39 }
  0x57   :  { %686 = vmatpush.msra.mxu3 %v3525_v30  ;;  %720 = vmatpush.msra.mxu1 %v3535_v31  ;;  %v3556_v30 = vld [vmem:[#allocation9 + $0x28] sm:$0xff]  ;;  %v5247_v31 = vmov 0.0   ;;  %5518 = vst [vmem:[#allocation60_spill] sm:$0xff] %v3578_v28 }
  0x58   :  { %562 = vmatpush.msra.mxu2 %v3520_v26  ;;  %5513 = vst [vmem:[#allocation55_spill] sm:$0xff] %v3556_v30 }
  0x59   :  { %687 = vmatpush.msra.mxu3 %v3537_v25  ;;  %v3564_v25 = vld [vmem:[#allocation10 + $0x30] sm:$0xff] }
  0x5a   :  { %563 = vmatpush.msra.mxu2 %v3532_v16  ;;  %5515 = vst [vmem:[#allocation57_spill] sm:$0xff] %v3564_v25 }
  0x5b   :  { %688 = vmatpush.msra.mxu3 %v3545_v40  ;;  %v3570_v40 = vld [vmem:[#allocation10 + $0xb0] sm:$0xff] }
  0x5c   :  { %564 = vmatpush.msra.mxu2 %v3542_v38  ;;  %5516 = vst [vmem:[#allocation58_spill] sm:$0xff] %v3570_v40  ;;  %705 = vmatpush.msra.mxu0 %v3570_v40  ;;  %v3587_v38 = vld [vmem:[#allocation10 + $0x80] sm:$0xff]  ;;  %v3600_v40 = vld [vmem:[#allocation10 + $0xd0] sm:$0xff] }
  0x5d   :  { %689 = vmatpush.msra.mxu3 %v3552_v43  ;;  %v3575_v43 = vld [vmem:[#allocation10 + $0x18] sm:$0xff]  ;;  %5520 = vst [vmem:[#allocation62_spill] sm:$0xff] %v3587_v38 }
  0x5e   :  { %565 = vmatpush.msra.mxu2 %v3550_v39  ;;  %v3572_v39 = vld [vmem:[#allocation10 + $0x118] sm:$0xff]  ;;  %5517 = vst [vmem:[#allocation59_spill] sm:$0xff] %v3575_v43  ;;  %706 = vmatpush.msra.mxu0 %v3578_v28 }
  0x5f   :  { %690 = vmatpush.msra.mxu3 %v3564_v25  ;;  %721 = vmatpush.msra.mxu1 %v3572_v39  ;;  %v3595_v25 = vld [vmem:[#allocation10 + $0x68] sm:$0xff]  ;;  %5523 = vst [vmem:[#allocation65_spill] sm:$0xff] %v3600_v40 }
  0x60   :  { %566 = vmatpush.msra.mxu2 %v3556_v30  ;;  %v3584_v30 = vld [vmem:[#allocation10] sm:$0xff]  ;;  %5522 = vst [vmem:[#allocation64_spill] sm:$0xff] %v3595_v25  ;;  %707 = vmatpush.msra.mxu0 %v3587_v38 }
  0x61   :  { %2648 = vmatmul.msk.bf16.vlgmr.msrb.gmra.mxu0 %vm219_vm0, %v3305_v24  ;;  %5519 = vst [vmem:[#allocation61_spill] sm:$0xff] %v3584_v30  ;;  %691 = vmatpush.msra.mxu3 %v3575_v43  ;;  %v5524_v43 = vmov 0.0  }
  0x62   :  { %2652 = vmatmul.msk.bf16.vlgmr.msrb.gmra.mxu1 %vm219_vm0, %v3305_v24  ;;  %567 = vmatpush.msra.mxu2 %v3560_v19  ;;  %v3582_v24 = vld [vmem:[#allocation10 + $0x100] sm:$0xff] }
  0x63   :  { %528 = vmatmul.f32.vlgmr.msrb.gmra.mxu2 %v5247_v31  ;;  %722 = vmatpush.msra.mxu1 %v3582_v24 }
  0x64   :  { %548 = vmatmul.f32.vlgmr.msrb.gmra.mxu3 %v5247_v31  ;;  %819 = vmatpush.msrb.mxu2 %v3309_v33  ;;  %v3592_v31 = vld [vmem:[#allocation10 + $0xe8] sm:$0xff] }
  0x65   :  { %5521 = vst [vmem:[#allocation63_spill] sm:$0xff] %v3592_v31  ;;  %692 = vmatpush.msra.mxu3 %v3584_v30  ;;  %723 = vmatpush.msra.mxu1 %v3592_v31  ;;  %v3620_v30 = vld [vmem:[#allocation10 + $0xb8] sm:$0xff] }
  0x66   :  { %820 = vmatpush.msrb.mxu2 %v3319_v35  ;;  %708 = vmatpush.msra.mxu0 %v3595_v25  ;;  %5526 = vst [vmem:[#allocation67_spill] sm:$0xff] %v3620_v30 }
  0x67   :  { %839 = vmatpush.msrb.mxu3 %v3307_v32  ;;  %724 = vmatpush.msra.mxu1 %v3600_v40  ;;  %v3618_v32 = vld [vmem:[#allocation10 + $0x50] sm:$0xff] }
  0x68   :  { %821 = vmatpush.msrb.mxu2 %v3325_v41  ;;  %5525 = vst [vmem:[#allocation66_spill] sm:$0xff] %v3618_v32  ;;  %709 = vmatpush.msra.mxu0 %v3618_v32  ;;  %v3644_v41 = vld [vmem:[#allocation10 + $0x8] sm:$0xff]  ;;  %v3657_v32 = vld [vmem:[#allocation10 + $0x40] sm:$0xff] }
  0x69   :  { %840 = vmatpush.msrb.mxu3 %v3317_v34  ;;  %v3622_v34 = vld [vmem:[#allocation10 + $0xa0] sm:$0xff]  ;;  %725 = vmatpush.msra.mxu1 %v3620_v30  ;;  %5531 = vst [vmem:[#allocation72_spill] sm:$0xff] %v3644_v41 }
  0x6a   :  { %822 = vmatpush.msrb.mxu2 %v3331_v44  ;;  %5527 = vst [vmem:[#allocation68_spill] sm:$0xff] %v3622_v34  ;;  %v5271_v44 = vmov 0  }
  0x6b   :  { %568 = vmatmul.f32.vlgmr.msra.gmra.mxu2 %v5524_v43  ;;  %841 = vmatpush.msrb.mxu3 %v3327_v42  ;;  %v3629_v42 = vld [vmem:[#allocation10 + $0x88] sm:$0xff]  ;;  %5533 = vst [vmem:[#allocation74_spill] sm:$0xff] %v3657_v32 }
  0x6c   :  { %693 = vmatmul.f32.vlgmr.msra.gmra.mxu3 %v5524_v43  ;;  %823 = vmatpush.msrb.mxu2 %v3337_v46  ;;  %5529 = vst [vmem:[#allocation70_spill] sm:$0xff] %v3629_v42  ;;  %v3631_v46 = vld [vmem:[#allocation10 + $0x20] sm:$0xff] }
  0x6d   :  { %842 = vmatpush.msrb.mxu3 %v3333_v45  ;;  %v3627_v45 = vld [vmem:[#allocation10 + $0x38] sm:$0xff]  ;;  %2722 = vset.pattern.permute.xlu0 %v5271_v44 }
  0x6e   :  { %5528 = vst [vmem:[#allocation69_spill] sm:$0xff] %v3627_v45  ;;  %824 = vmatpush.msrb.mxu2 %v3343_v48  ;;  %726 = vmatpush.msra.mxu1 %v3622_v34 }
  0x6f   :  { %843 = vmatpush.msrb.mxu3 %v3339_v47  ;;  %710 = vmatpush.msra.mxu0 %v3627_v45  ;;  %v3642_v47 = vld [vmem:[#allocation10 + $0x70] sm:$0xff]  ;;  %v3652_v45 = vld [vmem:[#allocation10 + $0x58] sm:$0xff] }
  0x70   :  { %5530 = vst [vmem:[#allocation71_spill] sm:$0xff] %v3642_v47  ;;  %825 = vmatpush.msrb.mxu2 %v3349_v50  ;;  %727 = vmatpush.msra.mxu1 %v3629_v42 }
  0x71   :  { %2649 = vmatmul.msk.bf16.gmra.mxu0 %vm219_vm0, %v3351_v51  ;;  %844 = vmatpush.msrb.mxu3 %v3345_v49  ;;  %5532 = vst [vmem:[#allocation73_spill] sm:$0xff] %v3652_v45 }
  0x72   :  { %2653 = vmatmul.msk.bf16.gmra.mxu1 %vm219_vm0, %v3351_v51  ;;  %v3640_v51 = vld [vmem:[%s5197_s1] sm:$0xff]  ;;  %711 = vmatpush.msra.mxu0 %v3631_v46 }
  0x73   :  { %vm797_vm1 = vcmp.gt.s32.totalorder %v3640_v51, 0  ;;  %845 = vmatpush.msrb.mxu3 %v3353_v52  ;;  %728 = vmatpush.msra.mxu1 %v3642_v47  ;;  %vm804_vm2 = vcmp.gt.s32.totalorder %v3640_v51, 7  ;;  %vm1556_vm3 = vcmp.gt.s32.totalorder %v3640_v51, 3  ;;  %vm1050_vm13 = vcmp.gt.s32.totalorder %v3640_v51, 1 }
  0x74   :  { %v798_v48 = vsel %vm797_vm1, 1, %v5271_v44  ;;  %712 = vmatpush.msra.mxu0 %v3644_v41  ;;  %826 = vmatpush.msrb.mxu2 %v3357_v53 }
  0x75   :  { %800 = vperm.xlu0 %2722, %v798_v48   ;;  %729 = vmatpush.msra.mxu1 %v3652_v45  ;;  %v3669_v48 = vld [vmem:[#allocation10 + $0x28] sm:$0xff] }
  0x76   :  { %859 = vmatpush.msrb.mxu0 %v3416_v6  ;;  %846 = vmatpush.msrb.mxu3 %v3365_v55  ;;  %5534 = vst [vmem:[#allocation75_spill] sm:$0xff] %v3669_v48 }
  0x77   :  { %827 = vmatpush.msrb.mxu2 %v3361_v54  ;;  %730 = vmatpush.msra.mxu1 %v3657_v32 }
  0x78   :  { %860 = vmatpush.msrb.mxu0 %v3427_v8  ;;  %847 = vmatpush.msrb.mxu3 %v3376_v57  ;;  %v3677_v8 = vld [vmem:[#allocation10 + $0x10] sm:$0xff] }
  0x79   :  { %828 = vmatpush.msrb.mxu2 %v3372_v56  ;;  %2723 = vset.pattern.permute.xlu1 %v5271_v44  ;;  %v5536_v44 = vld [vmem:[#allocation32_spill] sm:$0xff] }
  0x7a   :  { %861 = vmatpush.msrb.mxu0 %v3440_v12  ;;  %848 = vmatpush.msrb.mxu3 %v3382_v59 }
  0x7b   :  { %731 = vmatpush.msra.mxu1 %v3669_v48  ;;  %829 = vmatpush.msrb.mxu2 %v3380_v58 }
  0x7c   :  { %862 = vmatpush.msrb.mxu0 %v3448_v15  ;;  %849 = vmatpush.msrb.mxu3 %v3388_v61 }
  0x7d   :  { %732 = vmatpush.msra.mxu1 %v3677_v8  ;;  %830 = vmatpush.msrb.mxu2 %v3386_v60 }
  0x7e   :  { %863 = vmatpush.msrb.mxu0 %v3457_v18  ;;  %850 = vmatpush.msrb.mxu3 %v3394_v63 }
  0x7f   :  { %933 = vmatpush.msrb.mxu1 %v3437_v11  ;;  %831 = vmatpush.msrb.mxu2 %v3392_v62 }
  0x80   :  { %864 = vmatpush.msrb.mxu0 %v3466_v21  ;;  %851 = vmatpush.msrb.mxu3 %v3400_v1  ;;  %v5545_v21 = vld [vmem:[#allocation55_spill] sm:$0xff] }
  0x81   :  { %2650 = vmatmul.msk.bf16.gmra.mxu0 %vm219_vm0, %v3406_v3  ;;  %934 = vmatpush.msrb.mxu1 %v3446_v14 }
  0x82   :  { %2654 = vmatmul.msk.bf16.gmra.mxu1 %vm219_vm0, %v3406_v3  ;;  %865 = vmatpush.msrb.mxu0 %v3473_v23  ;;  %v5535_v3 = vld [vmem:[#allocation42_spill] sm:$0xff]  ;;  %v5542_v23 = vld [vmem:[#allocation33_spill] sm:$0xff] }
  0x83   :  { %832 = vmatpush.msrb.mxu2 %v3398_v0  ;;  %852 = vmatpush.msrb.mxu3 %v3408_v4 }
  0x84   :  { %866 = vmatpush.msrb.mxu0 %v3483_v27  ;;  %935 = vmatpush.msrb.mxu1 %v3455_v17  ;;  %v5541_v27 = vld [vmem:[#allocation53_spill] sm:$0xff] }
  0x85   :  { %833 = vmatpush.msrb.mxu2 %v3404_v2  ;;  %853 = vmatpush.msrb.mxu3 %v3420_v7 }
  0x86   :  { %867 = vmatpush.msrb.mxu0 %v3494_v29  ;;  %936 = vmatpush.msrb.mxu1 %v3464_v20  ;;  %v5538_v29 = vld [vmem:[#allocation51_spill] sm:$0xff] }
  0x87   :  { %834 = vmatpush.msrb.mxu2 %v3412_v5  ;;  %854 = vmatpush.msrb.mxu3 %v3431_v9 }
  0x88   :  { %868 = vmatpush.msrb.mxu0 %v3506_v37  ;;  %937 = vmatpush.msrb.mxu1 %v3471_v22  ;;  %v5537_v37 = vld [vmem:[#allocation27_spill] sm:$0xff] }
  0x89   :  { %953 = vmatpush.msra.mxu2 %v3434_v10  ;;  %973 = vmatpush.msra.mxu3 %v3503_v36  ;;  %v5540_v36 = vld [vmem:[#allocation28_spill] sm:$0xff]  ;;  %v5546_v22 = vld [vmem:[#allocation35_spill] sm:$0xff] }
  0x8a   :  { %869 = vmatpush.msrb.mxu0 %v3520_v26  ;;  %v5539_v26 = vld [vmem:[#allocation45_spill] sm:$0xff]  ;;  %938 = vmatpush.msrb.mxu1 %v5542_v23 }
  0x8b   :  { %954 = vmatpush.msra.mxu2 %v3442_v13  ;;  %974 = vmatpush.msra.mxu3 %v5535_v3  ;;  %v5544_v3 = vld [vmem:[#allocation37_spill] sm:$0xff] }
  0x8c   :  { %870 = vmatpush.msrb.mxu0 %v3532_v16  ;;  %v5543_v16 = vld [vmem:[#allocation49_spill] sm:$0xff]  ;;  %939 = vmatpush.msrb.mxu1 %v5546_v22  ;;  %v5553_v22 = vld [vmem:[#allocation46_spill] sm:$0xff] }
  0x8d   :  { %955 = vmatpush.msra.mxu2 %v5537_v37  ;;  %975 = vmatpush.msra.mxu3 %v5539_v26  ;;  %v5548_v26 = vld [vmem:[#allocation38_spill] sm:$0xff] }
  0x8e   :  { %871 = vmatpush.msrb.mxu0 %v5538_v29  ;;  %940 = vmatpush.msrb.mxu1 %v5548_v26  ;;  %v5550_v29 = vld [vmem:[#allocation41_spill] sm:$0xff]  ;;  %v5555_v26 = vld [vmem:[#allocation50_spill] sm:$0xff] }
  0x8f   :  { %956 = vmatpush.msra.mxu2 %v5540_v36  ;;  %976 = vmatpush.msra.mxu3 %v5543_v16  ;;  %v5551_v16 = vmov 0  }
  0x90   :  { %872 = vmatpush.msrb.mxu0 %v5541_v27  ;;  %v5549_v27 = vld [vmem:[#allocation43_spill] sm:$0xff]  ;;  %941 = vmatpush.msrb.mxu1 %v5550_v29  ;;  %v5556_v29 = vld [vmem:[#allocation52_spill] sm:$0xff] }
  0x91   :  { %2651 = vmatmul.msk.bf16.gmra.mxu0 %vm219_vm0, %v5536_v44  ;;  %957 = vmatpush.msra.mxu2 %v5544_v3 }
  0x92   :  { %2655 = vmatmul.msk.bf16.gmra.mxu1 %vm219_vm0, %v5536_v44  ;;  %873 = vmatpush.msrb.mxu0 %v5545_v21  ;;  %v5547_v44 = vld [vmem:[#allocation40_spill] sm:$0xff]  ;;  %v5552_v21 = vld [vmem:[#allocation47_spill] sm:$0xff]  ;;  %vm1057_vm0 = vcmp.gt.s32.totalorder %v3640_v51, 6 }
  0x93   :  { %977 = vmatpush.msra.mxu3 %v3572_v39  ;;  %958 = vmatpush.msra.mxu2 %v5547_v44  ;;  %v5554_v39 = vld [vmem:[#allocation58_spill] sm:$0xff] }
  0x94   :  { %874 = vmatpush.msrb.mxu0 %v3560_v19  ;;  %2724 = vset.pattern.permute.xlu2 %v5551_v16 }
  0x95   :  { %978 = vmatpush.msra.mxu3 %v3582_v24  ;;  %959 = vmatpush.msra.mxu2 %v5549_v27 }
  0x96   :  { %942 = vmatpush.msrb.mxu1 %v5553_v22 }
  0x97   :  { %979 = vmatpush.msra.mxu3 %v3592_v31  ;;  %960 = vmatpush.msra.mxu2 %v5552_v21  ;;  %v805_v31 = vsel %vm804_vm2, 1, %v5551_v16 }
  0x98   :  { %943 = vmatpush.msrb.mxu1 %v5555_v26  ;;  %807 = vperm.xlu0 %2722, %v805_v31  }
  0x99   :  { %980 = vmatpush.msra.mxu3 %v3600_v40  ;;  %961 = vmatpush.msra.mxu2 %v5554_v39  ;;  %v3751_v40 = vld [vmem:[%s5199_s3] sm:$0x3f] }
  0x9a   :  { %944 = vmatpush.msrb.mxu1 %v5556_v29  ;;  %v3756_v26 = vperm.slane %v3751_v40, 2  ;;  %v5557_v29 = vld [vmem:[#allocation54_spill] sm:$0xff]  ;;  %v3767_v31 = vperm.slane %v3751_v40, 0 }
  0x9b   :  { %981 = vmatpush.msra.mxu3 %v3620_v30  ;;  %962 = vmatpush.msra.mxu2 %v3578_v28  ;;  %v3760_v30 = vperm.slane %v3751_v40, 3  ;;  %v5558_v28 = vld [vmem:[#allocation57_spill] sm:$0xff] }
  0x9c   :  { %945 = vmatpush.msrb.mxu1 %v5557_v29 }
  0x9d   :  { %982 = vmatpush.msra.mxu3 %v3622_v34  ;;  %963 = vmatpush.msra.mxu2 %v3587_v38  ;;  %v3772_v34 = vperm.slane %v3751_v40, 1 }
  0x9e   :  { %v3738_v19 = vpop.f32.mrf.mxu0  ;;  %946 = vmatpush.msrb.mxu1 %v5558_v28  ;;  %v5560_v28 = vld [vmem:[#allocation59_spill] sm:$0xff] }
  0x9f   :  { %v3741_v24 = vpop.f32.mrf.mxu1  ;;  %983 = vmatpush.msra.mxu3 %v3629_v42  ;;  %964 = vmatpush.msra.mxu2 %v3595_v25  ;;  %v5559_v25 = vld [vmem:[#allocation66_spill] sm:$0xff] }
  0xa0   :  { %947 = vmatpush.msrb.mxu1 %v5560_v28 }
  0xa1   :  { %713 = vmatmul.f32.vlgmr.msra.gmra.mxu0 %v5524_v43  ;;  %984 = vmatpush.msra.mxu3 %v3642_v47  ;;  %v5561_v47 = vld [vmem:[#allocation19_spill] sm:$0xff] }
  0xa2   :  { %733 = vmatmul.f32.vlgmr.msra.gmra.mxu1 %v5524_v43  ;;  %1072 = vmatpush.msra.mxu0 %v3309_v33 }
  0xa3   :  { %965 = vmatpush.msra.mxu2 %v5559_v25  ;;  %985 = vmatpush.msra.mxu3 %v3652_v45  ;;  %v5565_v25 = vld [vmem:[#allocation61_spill] sm:$0xff] }
  0xa4   :  { %1073 = vmatpush.msra.mxu0 %v3319_v35  ;;  %948 = vmatpush.msrb.mxu1 %v5565_v25  ;;  %v5567_v45 = vld [vmem:[#allocation21_spill] sm:$0xff] }
  0xa5   :  { %986 = vmatpush.msra.mxu3 %v3657_v32  ;;  %v5570_v32 = vld [vmem:[#allocation20_spill] sm:$0xff] }
  0xa6   :  { %v299_v43 = vpop.f32.mrf.mxu2  ;;  %v243_v39 = vpop.f32.mrf.mxu0  ;;  %1074 = vmatpush.msra.mxu0 %v5561_v47 }
  0xa7   :  { %v300_v22 = vadd.f32 %v299_v43, %v3756_v26  ;;  %v328_v38 = vpop.f32.mrf.mxu3  ;;  %v244_v42 = vadd.f32 %v243_v39, %v3767_v31  ;;  %v272_v29 = vpop.f32.mrf.mxu1  ;;  %v1557_v43 = vsel %vm1556_vm3, 1, %v5551_v16  ;;  %987 = vmatpush.msra.mxu3 %v3669_v48  ;;  %vm1563_vm3 = vcmp.gt.s32.totalorder %v3640_v51, 4 }
  0xa8   :  { %v329_v33 = vadd.f32 %v328_v38, %v3760_v30  ;;  %v273_v21 = vadd.f32 %v272_v29, %v3772_v34  ;;  %1559 = vperm.xlu0 %2722, %v1557_v43   ;;  %v5563_v38 = vld [vmem:[#allocation69_spill] sm:$0xff]  ;;  %1075 = vmatpush.msra.mxu0 %v5567_v45  ;;  %v5569_v43 = vld [vmem:[#allocation23_spill] sm:$0xff] }
  0xa9   :  { %966 = vmatpush.msra.mxu2 %v5563_v38  ;;  %v5566_v29 = vld [vmem:[#allocation17_spill] sm:$0xff]  ;;  %988 = vmatpush.msra.mxu3 %v3677_v8 }
  0xaa   :  { %v3786_v35 = vpack.c.bf16 %v329_v33, %v300_v22  ;;  %v3789_v39 = vpack.c.bf16 %v273_v21, %v244_v42  ;;  %1092 = vmatpush.msra.mxu1 %v5566_v29  ;;  %v5568_v22 = vld [vmem:[#allocation18_spill] sm:$0xff]  ;;  %1076 = vmatpush.msra.mxu0 %v5569_v43  ;;  %v5575_v43 = vld [vmem:[#allocation24_spill] sm:$0xff] }
  0xab   :  { %967 = vmatpush.msra.mxu2 %v3631_v46 }
  0xac   :  { %5562 = vst [vmem:[#allocation42_spill] sm:$0xff] %v3786_v35  ;;  %1093 = vmatpush.msra.mxu1 %v5568_v22 }
  0xad   :  { %5564 = vst [vmem:[#allocation32_spill] sm:$0xff] %v3789_v39  ;;  %968 = vmatpush.msra.mxu2 %v3644_v41  ;;  %v5571_v41 = vld [vmem:[#allocation25_spill] sm:$0xff] }
  0xae   :  { %v301_v47 = vpop.f32.mrf.mxu2  ;;  %v246_v33 = vpop.f32.mrf.mxu0  ;;  %1094 = vmatpush.msra.mxu1 %v5570_v32  ;;  %1077 = vmatpush.msra.mxu0 %v5571_v41 }
  0xaf   :  { %v302_v42 = vadd.f32 %v301_v47, %v3756_v26  ;;  %v330_v21 = vpop.f32.mrf.mxu3  ;;  %v247_v29 = vadd.f32 %v246_v33, %v3767_v31  ;;  %v275_v48 = vpop.f32.mrf.mxu1  ;;  %v5573_v47 = vld [vmem:[#allocation22_spill] sm:$0xff] }
  0xb0   :  { %v331_v39 = vadd.f32 %v330_v21, %v3760_v30  ;;  %v276_v45 = vadd.f32 %v275_v48, %v3772_v34  ;;  %1095 = vmatpush.msra.mxu1 %v5573_v47  ;;  %1078 = vmatpush.msra.mxu0 %v3349_v50 }
  0xb2   :  { %v3807_v22 = vpack.c.bf16 %v331_v39, %v302_v42  ;;  %v3810_v25 = vpack.c.bf16 %v276_v45, %v247_v29  ;;  %1096 = vmatpush.msra.mxu1 %v5575_v43  ;;  %1079 = vmatpush.msra.mxu0 %v3357_v53 }
  0xb4   :  { %5572 = vst [vmem:[#allocation27_spill] sm:$0xff] %v3807_v22  ;;  %1097 = vmatpush.msra.mxu1 %v3345_v49  ;;  %1080 = vmatpush.msra.mxu0 %v3361_v54 }
  0xb5   :  { %5574 = vst [vmem:[#allocation45_spill] sm:$0xff] %v3810_v25 }
  0xb6   :  { %v304_v21 = vpop.f32.mrf.mxu2  ;;  %v248_v33 = vpop.f32.mrf.mxu0  ;;  %1098 = vmatpush.msra.mxu1 %v3353_v52  ;;  %1081 = vmatpush.msra.mxu0 %v3372_v56 }
  0xb7   :  { %v305_v32 = vadd.f32 %v304_v21, %v3756_v26  ;;  %v333_v48 = vpop.f32.mrf.mxu3  ;;  %v249_v39 = vadd.f32 %v248_v33, %v3767_v31  ;;  %v277_v42 = vpop.f32.mrf.mxu1 }
  0xb8   :  { %v334_v41 = vadd.f32 %v333_v48, %v3760_v30  ;;  %v278_v50 = vadd.f32 %v277_v42, %v3772_v34  ;;  %1099 = vmatpush.msra.mxu1 %v3365_v55  ;;  %1082 = vmatpush.msra.mxu0 %v3380_v58 }
  0xba   :  { %v3823_v53 = vpack.c.bf16 %v334_v41, %v305_v32  ;;  %v3826_v49 = vpack.c.bf16 %v278_v50, %v249_v39  ;;  %1100 = vmatpush.msra.mxu1 %v3376_v57  ;;  %1083 = vmatpush.msra.mxu0 %v3386_v60 }
  0xbc   :  { %5576 = vst [vmem:[#allocation28_spill] sm:$0xff] %v3823_v53  ;;  %1101 = vmatpush.msra.mxu1 %v3382_v59  ;;  %1084 = vmatpush.msra.mxu0 %v3392_v62 }
  0xbd   :  { %5577 = vst [vmem:[#allocation33_spill] sm:$0xff] %v3826_v49 }
  0xbe   :  { %v306_v54 = vpop.f32.mrf.mxu2  ;;  %v251_v45 = vpop.f32.mrf.mxu0  ;;  %1102 = vmatpush.msra.mxu1 %v3388_v61  ;;  %1085 = vmatpush.msra.mxu0 %v3398_v0 }
  0xbf   :  { %v307_v52 = vadd.f32 %v306_v54, %v3756_v26  ;;  %v335_v29 = vpop.f32.mrf.mxu3  ;;  %v252_v55 = vadd.f32 %v251_v45, %v3767_v31  ;;  %v280_v47 = vpop.f32.mrf.mxu1 }
  0xc0   :  { %v336_v56 = vadd.f32 %v335_v29, %v3760_v30  ;;  %v281_v57 = vadd.f32 %v280_v47, %v3772_v34  ;;  %1103 = vmatpush.msra.mxu1 %v3394_v63  ;;  %1086 = vmatpush.msra.mxu0 %v3404_v2 }
  0xc2   :  { %v3839_v58 = vpack.c.bf16 %v336_v56, %v307_v52  ;;  %v3842_v59 = vpack.c.bf16 %v281_v57, %v252_v55  ;;  %1104 = vmatpush.msra.mxu1 %v3400_v1  ;;  %1087 = vmatpush.msra.mxu0 %v3412_v5 }
  0xc4   :  { %5578 = vst [vmem:[#allocation49_spill] sm:$0xff] %v3839_v58  ;;  %1105 = vmatpush.msra.mxu1 %v3408_v4 }
  0xc5   :  { %5579 = vst [vmem:[#allocation37_spill] sm:$0xff] %v3842_v59 }
  0xc6   :  { %v309_v60 = vpop.f32.mrf.mxu2  ;;  %v253_v43 = vpop.f32.mrf.mxu0  ;;  %1106 = vmatpush.msra.mxu1 %v3420_v7 }
  0xc7   :  { %v310_v61 = vadd.f32 %v309_v60, %v3756_v26  ;;  %v338_v62 = vpop.f32.mrf.mxu3  ;;  %v254_v21 = vadd.f32 %v253_v43, %v3767_v31  ;;  %v282_v63 = vpop.f32.mrf.mxu1  ;;  %v242_v60 = vadd.f32 %v3738_v19, %v3767_v31 }
  0xc8   :  { %v339_v0 = vadd.f32 %v338_v62, %v3760_v30  ;;  %v283_v2 = vadd.f32 %v282_v63, %v3772_v34  ;;  %1107 = vmatpush.msra.mxu1 %v3431_v9 }
  0xca   :  { %v3853_v32 = vpack.c.bf16 %v339_v0, %v310_v61  ;;  %v3856_v1 = vpack.c.bf16 %v283_v2, %v254_v21  ;;  %v271_v61 = vadd.f32 %v3741_v24, %v3772_v34  ;;  %v3879_v0 = vperm.slane %v3751_v40, 4 }
  0xcb   :  { %v3882_v21 = vperm.slane %v3751_v40, 5 }
  0xcc   :  { %5580 = vst [vmem:[#allocation40_spill] sm:$0xff] %v3853_v32  ;;  %v406_v63 = vpack.c.bf16 %v271_v61, %v242_v60 }
  0xcd   :  { %5581 = vst [vmem:[#allocation43_spill] sm:$0xff] %v3856_v1 }
  0xce   :  { %v311_v4 = vpop.f32.mrf.mxu2  ;;  %v256_v33 = vpop.f32.mrf.mxu0 }
  0xcf   :  { %v312_v5 = vadd.f32 %v311_v4, %v3756_v26  ;;  %v340_v48 = vpop.f32.mrf.mxu3  ;;  %v257_v39 = vadd.f32 %v256_v33, %v3767_v31  ;;  %v285_v42 = vpop.f32.mrf.mxu1  ;;  %v572_v33 = vunpack.c.l.bf16 %v406_v63 }
  0xd0   :  { %v341_v41 = vadd.f32 %v340_v48, %v3760_v30  ;;  %v286_v7 = vadd.f32 %v285_v42, %v3772_v34 }
  0xd2   :  { %v3862_v50 = vpack.c.bf16 %v341_v41, %v312_v5  ;;  %v3864_v54 = vpack.c.bf16 %v286_v7, %v257_v39 }
  0xd4   :  { %5582 = vst [vmem:[#allocation59_spill] sm:$0xff] %v3862_v50 }
  0xd5   :  { %5583 = vst [vmem:[#allocation19_spill] sm:$0xff] %v3864_v54 }
  0xd6   :  { %v314_v52 = vpop.f32.mrf.mxu2  ;;  %v258_v45 = vpop.f32.mrf.mxu0 }
  0xd7   :  { %v315_v9 = vadd.f32 %v314_v52, %v3756_v26  ;;  %v343_v29 = vpop.f32.mrf.mxu3  ;;  %v259_v55 = vadd.f32 %v258_v45, %v3767_v31  ;;  %v287_v47 = vpop.f32.mrf.mxu1 }
  0xd8   :  { %v344_v56 = vadd.f32 %v343_v29, %v3760_v30  ;;  %v288_v57 = vadd.f32 %v287_v47, %v3772_v34  ;;  %v594_v34 = vrot.slane %v406_v63, 4 }
  0xda   :  { %v3874_v62 = vpack.c.bf16 %v344_v56, %v315_v9  ;;  %v3876_v43 = vpack.c.bf16 %v288_v57, %v259_v55  ;;  %v596_v39 = vunpack.c.l.bf16 %v594_v34 }
  0xdc   :  { %5584 = vst [vmem:[#allocation69_spill] sm:$0xff] %v3874_v62 }
  0xdd   :  { %5585 = vst [vmem:[#allocation17_spill] sm:$0xff] %v3876_v43 }
  0xde   :  { %v316_v2 = vpop.f32.mrf.mxu2  ;;  %v357_v5 = vpop.f32.mrf.mxu0 }
  0xdf   :  { %v345_v4 = vpop.f32.mrf.mxu3  ;;  %v358_v48 = vadd.f32 %v357_v5, %v3879_v0  ;;  %v386_v19 = vpop.f32.mrf.mxu1  ;;  %v317_v57 = vadd.f32 %v316_v2, %v3756_v26 }
  0xe0   :  { %v387_v31 = vadd.f32 %v386_v19, %v3882_v21  ;;  %v346_v60 = vadd.f32 %v345_v4, %v3760_v30 }
  0xe2   :  { %v3886_v24 = vpack.c.bf16 %v387_v31, %v358_v48 }
  0xe4   :  { %5586 = vst [vmem:[#allocation21_spill] sm:$0xff] %v3886_v24 }
  0xe6   :  { %v529_v41 = vpop.f32.mrf.mxu2  ;;  %v359_v52 = vpop.f32.mrf.mxu0 }
  0xe7   :  { %v573_v42 = vadd.f32 %v572_v33, %v529_v41  ;;  %v549_v7 = vpop.f32.mrf.mxu3  ;;  %v360_v9 = vadd.f32 %v359_v52, %v3879_v0  ;;  %v388_v29 = vpop.f32.mrf.mxu1  ;;  %v3896_v33 = vpack.c.bf16 %v346_v60, %v317_v57  ;;  %v3908_v57 = vld [vmem:[%s5202_s6] ss:$0 sm:$0xff] }
  0xe8   :  { %v597_v40 = vadd.f32 %v596_v39, %v549_v7  ;;  %v389_v56 = vadd.f32 %v388_v29, %v3882_v21 }
  0xe9   :  { %v2656_v45 = vmul.f32 -1.442695, %v573_v42  ;;  %5588 = vst [vmem:[#allocation23_spill] sm:$0xff] %v3896_v33  ;;  %v738_v26 = vrot.slane %v3896_v33, 4 }
  0xea   :  { %v2657_v55 = vmul.f32 -1.442695, %v597_v40  ;;  %v3890_v47 = vpack.c.bf16 %v389_v56, %v360_v9 }
  0xeb   :  { %2730 = vpow2.f32 %v2656_v45  ;;  %v740_v9 = vunpack.c.l.bf16 %v738_v26 }
  0xec   :  { %5587 = vst [vmem:[#allocation18_spill] sm:$0xff] %v3890_v47  ;;  %2732 = vpow2.f32 %v2657_v55  ;;  %v5654_v47 = vld [vmem:[#allocation32_spill] sm:$0xff] }
  0xed   :  { %v879_v54 = vunpack.c.l.bf16 %v5654_v47 }
  0xee   :  { %v362_v61 = vpop.f32.mrf.mxu0 }
  0xef   :  { %v363_v63 = vadd.f32 %v362_v61, %v3879_v0  ;;  %v391_v5 = vpop.f32.mrf.mxu1  ;;  %v694_v56 = vpop.f32.mrf.mxu3 }
  0xf0   :  { %v392_v19 = vadd.f32 %v391_v5, %v3882_v21  ;;  %v569_v61 = vpop.f32.mrf.mxu2  ;;  %v741_v5 = vadd.f32 %v740_v9, %v694_v56 }
  0xf1   :  { %v2731_v48 = vpop.eup %2730 }
  0xf2   :  { %v2733_v31 = vpop.eup %2732  ;;  %v577_v34 = vadd.f32 1.0, %v2731_v48  ;;  %v3898_v39 = vpack.c.bf16 %v392_v19, %v363_v63 }
  0xf3   :  { %v601_v41 = vadd.f32 1.0, %v2733_v31 }
  0xf4   :  { %5589 = vst [vmem:[#allocation20_spill] sm:$0xff] %v3898_v39  ;;  %2734 = vrcp.f32 %v577_v34  ;;  %v589_v63 = vand.u32 2147483648, %v577_v34  ;;  %v587_v31 = vand.u32 2147483647, %v577_v34  ;;  %vm583_vm5 = vweird.f32 %v577_v34 }
  0xf5   :  { %2736 = vrcp.f32 %v601_v41  ;;  %vm607_vm9 = vweird.f32 %v601_v41 }
  0xf6   :  { %v364_v42 = vpop.f32.mrf.mxu0  ;;  %v590_v24 = vor.u32 1.1754944e-38, %v589_v63  ;;  %vm588_vm7 = vcmp.eq.f32.partialorder %v587_v31, 8.507059e+37 }
  0xf7   :  { %v365_v30 = vadd.f32 %v364_v42, %v3879_v0  ;;  %v393_v2 = vpop.f32.mrf.mxu1 }
  0xf8   :  { %v394_v4 = vadd.f32 %v393_v2, %v3882_v21 }
  0xfa   :  { %v2735_v7 = vpop.eup %2734  ;;  %v3903_v40 = vpack.c.bf16 %v394_v4, %v365_v30 }
  0xfb   :  { %v2737_v52 = vpop.eup %2736  ;;  %v579_v29 = vmul.f32 %v2735_v7, %v577_v34  ;;  %vm584_vm4 = vweird.f32 %v2735_v7 }
  0xfc   :  { %5590 = vst [vmem:[#allocation25_spill] sm:$0xff] %v3903_v40  ;;  %v603_v45 = vmul.f32 %v2737_v52, %v601_v41  ;;  %vm585_vm6 = vmor %vm583_vm5, %vm584_vm4  ;;  %vm608_vm8 = vweird.f32 %v2737_v52 }
  0xfd   :  { %v580_v55 = vsub.f32 1.0, %v579_v29  ;;  %v620_v29 = vadd.f32 %v3908_v57, %v569_v61  ;;  %vm609_vm10 = vmor %vm607_vm9, %vm608_vm8 }
  0xfe   :  { %v604_v60 = vsub.f32 1.0, %v603_v45  ;;  %v367_v48 = vpop.f32.mrf.mxu0  ;;  %v2658_v45 = vmul.f32 -1.442695, %v741_v5 }
  0xff   :  { %v581_v19 = vmul.f32 %v2735_v7, %v580_v55  ;;  %v368_v26 = vadd.f32 %v367_v48, %v3879_v0  ;;  %v396_v30 = vpop.f32.mrf.mxu1  ;;  %v613_v48 = vand.u32 2147483648, %v601_v41 }
 0x100   :  { %v605_v42 = vmul.f32 %v2737_v52, %v604_v60  ;;  %v397_v2 = vadd.f32 %v396_v30, %v3882_v21  ;;  %v622_v60 = vunpack.c.l.bf16 %v3786_v35  ;;  %v611_v30 = vand.u32 2147483647, %v601_v41  ;;  %v4159_v35 = vld [vmem:[#allocation9 + $0x8] sm:$0xff] }
 0x101   :  { %v582_v4 = vadd.f32 %v2735_v7, %v581_v19  ;;  %2738 = vpow2.f32 %v2658_v45 }
 0x102   :  { %v3913_v33 = vpack.c.bf16 %v397_v2, %v368_v26  ;;  %v606_v56 = vadd.f32 %v2737_v52, %v605_v42  ;;  %v614_v26 = vor.u32 1.1754944e-38, %v613_v48  ;;  %vm612_vm11 = vcmp.eq.f32.partialorder %v611_v30, 8.507059e+37 }
 0x103   :  { %v586_v9 = vsel %vm585_vm6, %v2735_v7, %v582_v4  ;;  %v3920_v4 = vpop.permute.xlu0 %800 }
 0x104   :  { %5591 = vst [vmem:[#allocation22_spill] sm:$0xff] %v3913_v33  ;;  %v591_v55 = vsel %vm588_vm7, %v590_v24, %v586_v9  ;;  %v610_v19 = vsel %vm609_vm10, %v2737_v52, %v606_v56  ;;  %vm802_vm12 = vcmp.eq.s32.totalorder %v3920_v4, 1 }
 0x105   :  { %v621_v43 = vmul.f32 %v620_v29, %v591_v55  ;;  %v615_v24 = vsel %vm612_vm11, %v614_v26, %v610_v19  ;;  %5593 = vst [vmem:[#allocation76_spill] sm:$0xff] %v3920_v4  ;;  %v5603_v26 = vld [vmem:[#allocation41_spill] sm:$0xff]  ;;  %v4236_v4 = vld [vmem:[#allocation10 + $0xf0] sm:$0xff] }
 0x106   :  { %v369_v61 = vpop.f32.mrf.mxu0  ;;  %v625_v2 = vsub.f32 1.0, %v615_v24  ;;  %v627_v56 = vmul.f32 0.0, %v615_v24 }
 0x107   :  { %v623_v34 = vadd.f32 %v622_v60, %v621_v43  ;;  %v370_v63 = vadd.f32 %v369_v61, %v3879_v0  ;;  %v398_v5 = vpop.f32.mrf.mxu1  ;;  %v2739_v42 = vpop.eup %2738 }
 0x108   :  { %v399_v7 = vadd.f32 %v398_v5, %v3882_v21  ;;  %v3922_v43 = vadd.f32 1.0, %v2739_v42  ;;  %v5606_v42 = vld [vmem:[#allocation46_spill] sm:$0xff] }
 0x109   :  { %2740 = vtanh.f32 %v623_v34  ;;  %v5594_v34 = vld [vmem:[#allocation26_spill] sm:$0xff] }
 0x10a   :  { %v3918_v31 = vpack.c.bf16 %v399_v7, %v370_v63  ;;  %2742 = vrcp.f32 %v3922_v43  ;;  %v5604_v7 = vld [vmem:[#allocation58_spill] sm:$0xff]  ;;  %vm751_vm14 = vweird.f32 %v3922_v43  ;;  %v757_v24 = vand.u32 2147483648, %v3922_v43 }
 0x10c   :  { %5592 = vst [vmem:[#allocation24_spill] sm:$0xff] %v3918_v31 }
 0x10e   :  { %v372_v29 = vpop.f32.mrf.mxu0 }
 0x10f   :  { %v2741_v41 = vpop.eup %2740  ;;  %v373_v45 = vadd.f32 %v372_v29, %v3879_v0  ;;  %v401_v9 = vpop.f32.mrf.mxu1  ;;  %v755_v29 = vand.u32 2147483647, %v3922_v43 }
 0x110   :  { %v626_v52 = vmul.f32 %v2741_v41, %v625_v2  ;;  %v402_v55 = vadd.f32 %v401_v9, %v3882_v21  ;;  %v3950_v5 = vpop.eup %2742  ;;  %v5607_v2 = vld [vmem:[#allocation60_spill] sm:$0xff] }
 0x111   :  { %vm752_vm15 = vweird.f32 %v3950_v5  ;;  %vm756_vm2 = vcmp.eq.f32.partialorder %v755_v29, 8.507059e+37 }
 0x112   :  { %v3927_v60 = vadd.f32 %v627_v56, %v626_v52  ;;  %v3929_v48 = vpack.c.bf16 %v402_v55, %v373_v45  ;;  %v3991_v52 = vld [vmem:[%s5203_s7] ss:$0 sm:$0xff]  ;;  %v5609_v45 = vld [vmem:[#allocation44_spill] sm:$0xff]  ;;  %vm3995_vm1 = vmor %vm751_vm14, %vm752_vm15  ;;  %v4024_v55 = vpop.permute.xlu0 %807 }
 0x113   :  { %5608 = vst [vmem:[#allocation26_spill] sm:$0xff] %v3991_v52  ;;  %vm809_vm8 = vcmp.eq.s32.totalorder %v4024_v55, 1 }
 0x114   :  { %2660 = vmatmul.msk.f32.vlgmr.msrb.gmra.mxu2 %vm802_vm12, %v3927_v60  ;;  %2661 = vmatmul.msk.f32.vlgmr.msrb.gmra.mxu3 %vm802_vm12, %v3927_v60 }
 0x115   :  { %2662 = vmatmul.msk.f32.vlgmr.msrb.gmra.mxu0 %vm802_vm12, %v3927_v60  ;;  %1112 = vmatpush.msrb.mxu2 %v3416_v6 }
 0x116   :  { %1186 = vmatpush.msrb.mxu3 %v3437_v11  ;;  %1206 = vmatpush.msrb.mxu0 %v3434_v10  ;;  %v374_v30 = vpop.f32.mrf.mxu0  ;;  %v747_v10 = vmul.f32 %v3950_v5, %v3922_v43 }
 0x117   :  { %1113 = vmatpush.msrb.mxu2 %v5594_v34  ;;  %v375_v61 = vadd.f32 %v374_v30, %v3879_v0  ;;  %v403_v19 = vpop.f32.mrf.mxu1  ;;  %v5601_v0 = vld [vmem:[#allocation47_spill] sm:$0xff]  ;;  %v5612_v30 = vld [vmem:[#allocation50_spill] sm:$0xff] }
 0x118   :  { %1187 = vmatpush.msrb.mxu3 %v3446_v14  ;;  %1207 = vmatpush.msrb.mxu0 %v3442_v13  ;;  %v404_v63 = vadd.f32 %v403_v19, %v3882_v21  ;;  %v5596_v14 = vld [vmem:[#allocation29_spill] sm:$0xff]  ;;  %v5613_v34 = vld [vmem:[#allocation62_spill] sm:$0xff]  ;;  %v758_v19 = vor.u32 1.1754944e-38, %v757_v24 }
 0x119   :  { %1114 = vmatpush.msrb.mxu2 %v3440_v12  ;;  %v5595_v12 = vld [vmem:[#allocation30_spill] sm:$0xff] }
 0x11a   :  { %1188 = vmatpush.msrb.mxu3 %v3455_v17  ;;  %1208 = vmatpush.msrb.mxu0 %v5537_v37  ;;  %v3954_v6 = vpack.c.bf16 %v404_v63, %v375_v61  ;;  %v5614_v61 = vld [vmem:[#allocation48_spill] sm:$0xff]  ;;  %v1058_v63 = vsel %vm1057_vm0, 1, %v5551_v16  ;;  %5626 = vst [vmem:[#allocation30_spill] sm:$0xff] %v4024_v55 }
 0x11b   :  { %1115 = vmatpush.msrb.mxu2 %v3448_v15  ;;  %v748_v15 = vsub.f32 1.0, %v747_v10  ;;  %v5615_v10 = vld [vmem:[#allocation52_spill] sm:$0xff] }
 0x11c   :  { %1189 = vmatpush.msrb.mxu3 %v3464_v20  ;;  %1209 = vmatpush.msrb.mxu0 %v5540_v36  ;;  %v761_v11 = vunpack.c.l.bf16 %v3954_v6  ;;  %v5597_v20 = vld [vmem:[#allocation31_spill] sm:$0xff] }
 0x11d   :  { %1116 = vmatpush.msrb.mxu2 %v3457_v18  ;;  %v5598_v36 = vld [vmem:[#allocation35_spill] sm:$0xff]  ;;  %v5599_v18 = vld [vmem:[#allocation34_spill] sm:$0xff]  ;;  %v749_v21 = vmul.f32 %v3950_v5, %v748_v15 }
 0x11e   :  { %1190 = vmatpush.msrb.mxu3 %v5595_v12  ;;  %1210 = vmatpush.msrb.mxu0 %v5544_v3  ;;  %v714_v13 = vpop.f32.mrf.mxu0  ;;  %v5600_v3 = vld [vmem:[#allocation38_spill] sm:$0xff] }
 0x11f   :  { %1117 = vmatpush.msrb.mxu2 %v5596_v14  ;;  %v762_v17 = vadd.f32 %v761_v11, %v714_v13  ;;  %v750_v41 = vadd.f32 %v3950_v5, %v749_v21  ;;  %v734_v56 = vpop.f32.mrf.mxu1  ;;  %v5616_v11 = vld [vmem:[#allocation64_spill] sm:$0xff]  ;;  %v5617_v14 = vld [vmem:[#allocation51_spill] sm:$0xff]  ;;  %v5619_v15 = vld [vmem:[#allocation66_spill] sm:$0xff] }
 0x120   :  { %1191 = vmatpush.msrb.mxu3 %v5542_v23  ;;  %1211 = vmatpush.msrb.mxu0 %v5547_v44  ;;  %v5602_v23 = vld [vmem:[#allocation36_spill] sm:$0xff]  ;;  %v1051_v44 = vsel %vm1050_vm13, 1, %v5551_v16  ;;  %v785_v13 = vadd.f32 %v3991_v52, %v734_v56  ;;  %5653 = vst [vmem:[#allocation64_spill] sm:$0xff] %v4159_v35 }
 0x121   :  { %1118 = vmatpush.msrb.mxu2 %v5597_v20  ;;  %v2659_v37 = vmul.f32 -1.442695, %v762_v17  ;;  %1053 = vperm.xlu1 %2723, %v1051_v44   ;;  %v754_v12 = vsel %vm3995_vm1, %v3950_v5, %v750_v41  ;;  %v5618_v17 = vld [vmem:[#allocation54_spill] sm:$0xff]  ;;  %v788_v20 = vrot.slane %v3954_v6, 4  ;;  %v5623_v6 = vld [vmem:[#allocation56_spill] sm:$0xff]  ;;  %v1564_v44 = vsel %vm1563_vm3, 1, %v5551_v16 }
 0x122   :  { %1192 = vmatpush.msrb.mxu3 %v5598_v36  ;;  %1212 = vmatpush.msrb.mxu0 %v5549_v27  ;;  %v5605_v27 = vld [vmem:[#allocation39_spill] sm:$0xff]  ;;  %v759_v36 = vsel %vm756_vm2, %v758_v19, %v754_v12  ;;  %v4047_v19 = vld [vmem:[#allocation10 + $0x160] sm:$0xff] }
 0x123   :  { %1119 = vmatpush.msrb.mxu2 %v5599_v18  ;;  %2744 = vpow2.f32 %v2659_v37  ;;  %v5620_v37 = vld [vmem:[#allocation53_spill] sm:$0xff]  ;;  %v786_v5 = vmul.f32 %v785_v13, %v759_v36  ;;  %v790_v21 = vunpack.c.l.bf16 %v788_v20  ;;  %v4059_v12 = vld [vmem:[#allocation9 + $0x138] sm:$0xff]  ;;  %v4062_v13 = vld [vmem:[#allocation9 + $0x140] sm:$0xff] }
 0x124   :  { %1193 = vmatpush.msrb.mxu3 %v5600_v3  ;;  %1213 = vmatpush.msrb.mxu0 %v5601_v0  ;;  %v5621_v18 = vld [vmem:[#allocation57_spill] sm:$0xff]  ;;  %v5622_v3 = vld [vmem:[#allocation55_spill] sm:$0xff]  ;;  %v4080_v36 = vld [vmem:[#allocation9 + $0x110] sm:$0xff] }
 0x125   :  { %1120 = vmatpush.msrb.mxu2 %v5602_v23  ;;  %v4074_v20 = vld [vmem:[#allocation10 + $0x118] sm:$0xff] }
 0x126   :  { %1194 = vmatpush.msrb.mxu3 %v5603_v26  ;;  %1214 = vmatpush.msrb.mxu0 %v5604_v7  ;;  %v5624_v26 = vld [vmem:[#allocation61_spill] sm:$0xff]  ;;  %v5625_v7 = vld [vmem:[#allocation72_spill] sm:$0xff] }
 0x127   :  { %1121 = vmatpush.msrb.mxu2 %v5605_v27 }
 0x128   :  { %1195 = vmatpush.msrb.mxu3 %v5606_v42  ;;  %1215 = vmatpush.msrb.mxu0 %v5607_v2 }
 0x129   :  { %1122 = vmatpush.msrb.mxu2 %v5609_v45  ;;  %v2745_v9 = vpop.eup %2744  ;;  %1060 = vperm.xlu1 %2723, %v1058_v63   ;;  %v4050_v63 = vld [vmem:[#allocation9 + $0x150] sm:$0xff] }
 0x12a   :  { %1196 = vmatpush.msrb.mxu3 %v5612_v30  ;;  %1216 = vmatpush.msrb.mxu0 %v5613_v34  ;;  %v766_v43 = vadd.f32 1.0, %v2745_v9  ;;  %v4038_v34 = vld [vmem:[#allocation10 + $0x178] sm:$0xff] }
 0x12b   :  { %1123 = vmatpush.msrb.mxu2 %v5614_v61  ;;  %v4044_v61 = vld [vmem:[#allocation9 + $0x170] sm:$0xff] }
 0x12c   :  { %1197 = vmatpush.msrb.mxu3 %v5615_v10  ;;  %1217 = vmatpush.msrb.mxu0 %v5616_v11  ;;  %2746 = vrcp.f32 %v766_v43  ;;  %v778_v51 = vand.u32 2147483648, %v766_v43  ;;  %vm772_vm5 = vweird.f32 %v766_v43  ;;  %v4053_v10 = vld [vmem:[#allocation9 + $0x158] sm:$0xff]  ;;  %v4056_v11 = vld [vmem:[#allocation10 + $0x148] sm:$0xff] }
 0x12d   :  { %1124 = vmatpush.msrb.mxu2 %v5617_v14  ;;  %v4065_v14 = vld [vmem:[#allocation10 + $0x130] sm:$0xff] }
 0x12e   :  { %1198 = vmatpush.msrb.mxu3 %v5618_v17  ;;  %1218 = vmatpush.msrb.mxu0 %v5619_v15  ;;  %v779_v42 = vor.u32 1.1754944e-38, %v778_v51  ;;  %v4068_v17 = vld [vmem:[#allocation9 + $0x120] sm:$0xff]  ;;  %v4071_v15 = vld [vmem:[#allocation9 + $0x128] sm:$0xff] }
 0x12f   :  { %1125 = vmatpush.msrb.mxu2 %v5620_v37  ;;  %v4077_v37 = vld [vmem:[#allocation9 + $0x108] sm:$0xff]  ;;  %v5634_v51 = vld [vmem:[#allocation68_spill] sm:$0xff] }
 0x130   :  { %1199 = vmatpush.msrb.mxu3 %v5621_v18  ;;  %1219 = vmatpush.msrb.mxu0 %v5563_v38  ;;  %v791_v38 = vadd.f32 %v790_v21, %v786_v5  ;;  %v4083_v18 = vld [vmem:[#allocation10 + $0x100] sm:$0xff]  ;;  %v4086_v5 = vld [vmem:[#allocation9 + $0xf0] sm:$0xff]  ;;  %v4093_v21 = vld [vmem:[#allocation9 + $0xd8] sm:$0xff] }
 0x131   :  { %1126 = vmatpush.msrb.mxu2 %v5622_v3  ;;  %1566 = vperm.xlu1 %2723, %v1564_v44   ;;  %v4089_v3 = vld [vmem:[#allocation9 + $0xf8] sm:$0xff]  ;;  %v4100_v44 = vld [vmem:[#allocation9 + $0xc0] sm:$0xff] }
 0x132   :  { %1200 = vmatpush.msrb.mxu3 %v5560_v28  ;;  %1220 = vmatpush.msrb.mxu0 %v3631_v46  ;;  %v2747_v0 = vpop.eup %2746  ;;  %v776_v28 = vand.u32 2147483647, %v766_v43  ;;  %2748 = vtanh.f32 %v791_v38  ;;  %5629 = vst [vmem:[#allocation29_spill] sm:$0xff] %v4100_v44  ;;  %v4107_v38 = vld [vmem:[#allocation9 + $0xa8] sm:$0xff] }
 0x133   :  { %1127 = vmatpush.msrb.mxu2 %v5623_v6  ;;  %v768_v23 = vmul.f32 %v2747_v0, %v766_v43  ;;  %vm773_vm4 = vweird.f32 %v2747_v0  ;;  %v4041_v43 = vld [vmem:[#allocation9 + $0x168] sm:$0xff]  ;;  %v4096_v6 = vld [vmem:[#allocation9 + $0xe0] sm:$0xff]  ;;  %5632 = vst [vmem:[#allocation35_spill] sm:$0xff] %v4107_v38 }
 0x134   :  { %1201 = vmatpush.msrb.mxu3 %v5624_v26  ;;  %1221 = vmatpush.msrb.mxu0 %v5625_v7  ;;  %vm774_vm6 = vmor %vm772_vm5, %vm773_vm4  ;;  %vm777_vm7 = vcmp.eq.f32.partialorder %v776_v28, 8.507059e+37  ;;  %v4103_v26 = vld [vmem:[#allocation9 + $0xc8] sm:$0xff]  ;;  %v5631_v7 = vld [vmem:[#allocation67_spill] sm:$0xff] }
 0x135   :  { %v769_v27 = vsub.f32 1.0, %v768_v23  ;;  %v5628_v23 = vld [vmem:[#allocation65_spill] sm:$0xff]  ;;  %5630 = vst [vmem:[#allocation31_spill] sm:$0xff] %v4103_v26  ;;  %v4117_v28 = vld [vmem:[#allocation9 + $0x98] sm:$0xff] }
 0x136   :  { %5636 = vst [vmem:[#allocation47_spill] sm:$0xff] %v4117_v28 }
 0x137   :  { %v770_v24 = vmul.f32 %v2747_v0, %v769_v27  ;;  %v4110_v27 = vld [vmem:[#allocation9 + $0xb0] sm:$0xff]  ;;  %5665 = vst [vmem:[#allocation65_spill] sm:$0xff] %v4236_v4 }
 0x138   :  { %v2749_v45 = vpop.eup %2748  ;;  %5633 = vst [vmem:[#allocation34_spill] sm:$0xff] %v4110_v27 }
 0x139   :  { %v771_v46 = vadd.f32 %v2747_v0, %v770_v24  ;;  %v4114_v24 = vld [vmem:[#allocation9 + $0x90] sm:$0xff] }
 0x13a   :  { %5635 = vst [vmem:[#allocation38_spill] sm:$0xff] %v4114_v24 }
 0x13b   :  { %v775_v2 = vsel %vm774_vm6, %v2747_v0, %v771_v46  ;;  %v5627_v0 = vld [vmem:[#allocation63_spill] sm:$0xff]  ;;  %v5637_v46 = vld [vmem:[#allocation70_spill] sm:$0xff] }
 0x13c   :  { %v780_v41 = vsel %vm777_vm7, %v779_v42, %v775_v2  ;;  %v4121_v42 = vld [vmem:[#allocation9 + $0x78] sm:$0xff]  ;;  %v4124_v2 = vld [vmem:[#allocation9 + $0x80] sm:$0xff] }
 0x13d   :  { %v793_v29 = vsub.f32 1.0, %v780_v41  ;;  %v795_v56 = vmul.f32 0.0, %v780_v41  ;;  %5638 = vst [vmem:[#allocation36_spill] sm:$0xff] %v4121_v42  ;;  %v5640_v41 = vld [vmem:[#allocation71_spill] sm:$0xff] }
 0x13e   :  { %5639 = vst [vmem:[#allocation41_spill] sm:$0xff] %v4124_v2 }
 0x13f   :  { %v794_v9 = vmul.f32 %v2749_v45, %v793_v29  ;;  %v4128_v29 = vld [vmem:[#allocation9 + $0x60] sm:$0xff]  ;;  %v4131_v45 = vld [vmem:[#allocation9 + $0x68] sm:$0xff] }
 0x140   :  { %5641 = vst [vmem:[#allocation58_spill] sm:$0xff] %v4128_v29 }
 0x141   :  { %v4026_v30 = vadd.f32 %v795_v56, %v794_v9  ;;  %5642 = vst [vmem:[#allocation39_spill] sm:$0xff] %v4131_v45  ;;  %v5643_v9 = vld [vmem:[#allocation73_spill] sm:$0xff] }
 0x142   :  { %v4135_v56 = vld [vmem:[#allocation9 + $0x48] sm:$0xff] }
 0x143   :  { %2665 = vmatmul.msk.f32.vlgmr.msrb.gmra.mxu1 %vm809_vm8, %v4026_v30  ;;  %2666 = vmatmul.msk.f32.vlgmr.msra.gmra.mxu2 %vm809_vm8, %v4026_v30  ;;  %5644 = vst [vmem:[#allocation46_spill] sm:$0xff] %v4135_v56 }
 0x144   :  { %2667 = vmatmul.msk.f32.vlgmr.msra.gmra.mxu3 %vm809_vm8, %v4026_v30  ;;  %1226 = vmatpush.msrb.mxu1 %v4038_v34 }
 0x145   :  { %1325 = vmatpush.msra.mxu2 %v4041_v43  ;;  %1345 = vmatpush.msra.mxu3 %v4044_v61 }
 0x146   :  { %1227 = vmatpush.msrb.mxu1 %v4047_v19 }
 0x147   :  { %1326 = vmatpush.msra.mxu2 %v4050_v63  ;;  %1346 = vmatpush.msra.mxu3 %v4053_v10 }
 0x148   :  { %1228 = vmatpush.msrb.mxu1 %v4056_v11 }
 0x149   :  { %1327 = vmatpush.msra.mxu2 %v4059_v12  ;;  %1347 = vmatpush.msra.mxu3 %v4062_v13 }
 0x14a   :  { %1229 = vmatpush.msrb.mxu1 %v4065_v14 }
 0x14b   :  { %1328 = vmatpush.msra.mxu2 %v4068_v17  ;;  %1348 = vmatpush.msra.mxu3 %v4071_v15 }
 0x14c   :  { %1230 = vmatpush.msrb.mxu1 %v4074_v20 }
 0x14d   :  { %1329 = vmatpush.msra.mxu2 %v4077_v37  ;;  %1349 = vmatpush.msra.mxu3 %v4080_v36 }
 0x14e   :  { %1231 = vmatpush.msrb.mxu1 %v4083_v18 }
 0x14f   :  { %1330 = vmatpush.msra.mxu2 %v4086_v5  ;;  %1350 = vmatpush.msra.mxu3 %v4089_v3 }
 0x150   :  { %1232 = vmatpush.msrb.mxu1 %v5627_v0  ;;  %v4138_v0 = vld [vmem:[#allocation9 + $0x50] sm:$0xff] }
 0x151   :  { %1331 = vmatpush.msra.mxu2 %v4093_v21  ;;  %1351 = vmatpush.msra.mxu3 %v4096_v6  ;;  %5645 = vst [vmem:[#allocation60_spill] sm:$0xff] %v4138_v0 }
 0x152   :  { %1233 = vmatpush.msrb.mxu1 %v5628_v23  ;;  %v5646_v23 = vld [vmem:[#allocation74_spill] sm:$0xff] }
 0x153   :  { %1332 = vmatpush.msra.mxu2 %v4100_v44  ;;  %1352 = vmatpush.msra.mxu3 %v4103_v26 }
 0x154   :  { %1234 = vmatpush.msrb.mxu1 %v5631_v7  ;;  %v4142_v7 = vld [vmem:[#allocation9 + $0x30] sm:$0xff] }
 0x155   :  { %1333 = vmatpush.msra.mxu2 %v4107_v38  ;;  %1353 = vmatpush.msra.mxu3 %v4110_v27  ;;  %5647 = vst [vmem:[#allocation44_spill] sm:$0xff] %v4142_v7 }
 0x156   :  { %1235 = vmatpush.msrb.mxu1 %v5634_v51  ;;  %v4145_v51 = vld [vmem:[#allocation9 + $0x38] sm:$0xff] }
 0x157   :  { %1334 = vmatpush.msra.mxu2 %v4114_v24  ;;  %1354 = vmatpush.msra.mxu3 %v4117_v28  ;;  %5648 = vst [vmem:[#allocation50_spill] sm:$0xff] %v4145_v51 }
 0x158   :  { %1236 = vmatpush.msrb.mxu1 %v5637_v46  ;;  %v5649_v46 = vld [vmem:[#allocation75_spill] sm:$0xff] }
 0x159   :  { %1335 = vmatpush.msra.mxu2 %v4121_v42  ;;  %1355 = vmatpush.msra.mxu3 %v4124_v2 }
 0x15a   :  { %1237 = vmatpush.msrb.mxu1 %v5640_v41  ;;  %v4149_v41 = vld [vmem:[#allocation9 + $0x18] sm:$0xff] }
 0x15b   :  { %1336 = vmatpush.msra.mxu2 %v4128_v29  ;;  %1356 = vmatpush.msra.mxu3 %v4131_v45  ;;  %5650 = vst [vmem:[#allocation62_spill] sm:$0xff] %v4149_v41 }
 0x15c   :  { %1238 = vmatpush.msrb.mxu1 %v5643_v9  ;;  %v4152_v9 = vld [vmem:[#allocation9 + $0x20] sm:$0xff] }
 0x15d   :  { %1337 = vmatpush.msra.mxu2 %v4135_v56  ;;  %1357 = vmatpush.msra.mxu3 %v4138_v0  ;;  %5651 = vst [vmem:[#allocation48_spill] sm:$0xff] %v4152_v9 }
 0x15e   :  { %1239 = vmatpush.msrb.mxu1 %v5646_v23  ;;  %v4156_v23 = vld [vmem:[#allocation9] sm:$0xff]  ;;  %v5701_v55 = vld [vmem:[#allocation50_spill] sm:$0xff] }
 0x15f   :  { %1338 = vmatpush.msra.mxu2 %v4142_v7  ;;  %1358 = vmatpush.msra.mxu3 %v4145_v51  ;;  %5652 = vst [vmem:[#allocation52_spill] sm:$0xff] %v4156_v23  ;;  %v926_v51 = vunpack.c.l.bf16 %v3807_v22 }
 0x160   :  { %1240 = vmatpush.msrb.mxu1 %v5649_v46  ;;  %v901_v46 = vrot.slane %v5654_v47, 4 }
 0x161   :  { %1339 = vmatpush.msra.mxu2 %v4149_v41  ;;  %1359 = vmatpush.msra.mxu3 %v4152_v9 }
 0x162   :  { %1241 = vmatpush.msrb.mxu1 %v3677_v8  ;;  %v903_v39 = vunpack.c.l.bf16 %v901_v46 }
 0x163   :  { %1340 = vmatpush.msra.mxu2 %v4156_v23  ;;  %1360 = vmatpush.msra.mxu3 %v4159_v35 }
 0x197   :  { %v836_v1 = vpop.f32.mrf.mxu2  ;;  %v856_v40 = vpop.f32.mrf.mxu3 }
 0x198   :  { %v880_v59 = vadd.f32 %v879_v54, %v836_v1  ;;  %v904_v33 = vadd.f32 %v903_v39, %v856_v40  ;;  %v876_v54 = vpop.f32.mrf.mxu0 }
 0x199   :  { %v924_v40 = vadd.f32 %v3908_v57, %v876_v54 }
 0x19a   :  { %v2663_v32 = vmul.f32 -1.442695, %v880_v59  ;;  %v2664_v58 = vmul.f32 -1.442695, %v904_v33 }
 0x19c   :  { %2750 = vpow2.f32 %v2663_v32 }
 0x19d   :  { %2752 = vpow2.f32 %v2664_v58 }
 0x1a2   :  { %v2751_v8 = vpop.eup %2750 }
 0x1a3   :  { %v2753_v49 = vpop.eup %2752  ;;  %v884_v50 = vadd.f32 1.0, %v2751_v8 }
 0x1a4   :  { %v908_v31 = vadd.f32 1.0, %v2753_v49 }
 0x1a5   :  { %2754 = vrcp.f32 %v884_v50  ;;  %v896_v46 = vand.u32 2147483648, %v884_v50  ;;  %v894_v1 = vand.u32 2147483647, %v884_v50  ;;  %vm890_vm11 = vweird.f32 %v884_v50 }
 0x1a6   :  { %2756 = vrcp.f32 %v908_v31  ;;  %v920_v59 = vand.u32 2147483648, %v908_v31  ;;  %v918_v58 = vand.u32 2147483647, %v908_v31  ;;  %vm914_vm14 = vweird.f32 %v908_v31 }
 0x1a7   :  { %v897_v49 = vor.u32 1.1754944e-38, %v896_v46  ;;  %vm895_vm15 = vcmp.eq.f32.partialorder %v894_v1, 8.507059e+37 }
 0x1a8   :  { %vm919_vm1 = vcmp.eq.f32.partialorder %v918_v58, 8.507059e+37 }
 0x1ab   :  { %v2755_v53 = vpop.eup %2754 }
 0x1ac   :  { %v2757_v25 = vpop.eup %2756  ;;  %v886_v35 = vmul.f32 %v2755_v53, %v884_v50  ;;  %vm891_vm9 = vweird.f32 %v2755_v53 }
 0x1ad   :  { %v910_v23 = vmul.f32 %v2757_v25, %v908_v31  ;;  %vm915_vm10 = vweird.f32 %v2757_v25  ;;  %vm892_vm13 = vmor %vm890_vm11, %vm891_vm9  ;;  %v994_v31 = vrot.slane %v3874_v62, 4  ;;  %v4244_v62 = vld [vmem:[#allocation9 + $0xe8] sm:$0xff] }
 0x1ae   :  { %v887_v47 = vsub.f32 1.0, %v886_v35  ;;  %vm916_vm0 = vmor %vm914_vm14, %vm915_vm10  ;;  %v921_v35 = vor.u32 1.1754944e-38, %v920_v59  ;;  %5667 = vst [vmem:[#allocation68_spill] sm:$0xff] %v4244_v62 }
 0x1af   :  { %v911_v9 = vsub.f32 1.0, %v910_v23  ;;  %v996_v54 = vunpack.c.l.bf16 %v994_v31 }
 0x1b0   :  { %v888_v41 = vmul.f32 %v2755_v53, %v887_v47 }
 0x1b1   :  { %v912_v32 = vmul.f32 %v2757_v25, %v911_v9 }
 0x1b2   :  { %v889_v33 = vadd.f32 %v2755_v53, %v888_v41  ;;  %v803_v41 = vsel %vm802_vm12, %v3927_v60, 0.0 }
 0x1b3   :  { %v913_v39 = vadd.f32 %v2757_v25, %v912_v32 }
 0x1b4   :  { %v893_v8 = vsel %vm892_vm13, %v2755_v53, %v889_v33  ;;  %v4170_v53 = vpop.permute.xlu1 %1053 }
 0x1b5   :  { %v898_v23 = vsel %vm895_vm15, %v897_v49, %v893_v8  ;;  %v917_v47 = vsel %vm916_vm0, %v2757_v25, %v913_v39  ;;  %5655 = vst [vmem:[#allocation51_spill] sm:$0xff] %v4170_v53  ;;  %vm1055_vm2 = vcmp.eq.s32.totalorder %v4170_v53, 1  ;;  %v4181_v8 = vld [vmem:[#allocation9 + $0x178] sm:$0xff] }
 0x1b6   :  { %v922_v50 = vsel %vm919_vm1, %v921_v35, %v917_v47  ;;  %v925_v9 = vmul.f32 %v924_v40, %v898_v23  ;;  %v4184_v23 = vld [vmem:[#allocation10 + $0x168] sm:$0xff]  ;;  %v4187_v47 = vld [vmem:[#allocation10 + $0x170] sm:$0xff]  ;;  %v4239_v53 = vld [vmem:[#allocation10 + $0xf8] sm:$0xff] }
 0x1b7   :  { %v931_v46 = vmul.f32 %v922_v50, %v803_v41  ;;  %v929_v1 = vsub.f32 1.0, %v922_v50  ;;  %5666 = vst [vmem:[#allocation67_spill] sm:$0xff] %v4239_v53 }
 0x1b8   :  { %v927_v32 = vadd.f32 %v926_v51, %v925_v9  ;;  %v1017_v51 = vunpack.c.l.bf16 %v3929_v48  ;;  %v4193_v9 = vld [vmem:[#allocation10 + $0x150] sm:$0xff] }
 0x1ba   :  { %2758 = vtanh.f32 %v927_v32  ;;  %v4199_v32 = vld [vmem:[#allocation9 + $0x148] sm:$0xff] }
 0x1c0   :  { %v2759_v59 = vpop.eup %2758  ;;  %v950_v25 = vpop.f32.mrf.mxu1 }
 0x1c1   :  { %v930_v58 = vmul.f32 %v2759_v59, %v929_v1  ;;  %v997_v33 = vadd.f32 %v996_v54, %v950_v25  ;;  %v4202_v1 = vld [vmem:[#allocation10 + $0x138] sm:$0xff]  ;;  %v4205_v59 = vld [vmem:[#allocation10 + $0x140] sm:$0xff]  ;;  %v4210_v25 = vld [vmem:[#allocation9 + $0x130] sm:$0xff] }
 0x1c2   :  { %5656 = vst [vmem:[#allocation54_spill] sm:$0xff] %v4202_v1 }
 0x1c3   :  { %v932_v49 = vadd.f32 %v931_v46, %v930_v58  ;;  %v2668_v39 = vmul.f32 -1.442695, %v997_v33  ;;  %v4196_v46 = vld [vmem:[#allocation10 + $0x158] sm:$0xff]  ;;  %5657 = vst [vmem:[#allocation66_spill] sm:$0xff] %v4205_v59  ;;  %v4213_v58 = vld [vmem:[#allocation10 + $0x120] sm:$0xff]  ;;  %v4216_v33 = vld [vmem:[#allocation10 + $0x128] sm:$0xff] }
 0x1c4   :  { %5658 = vst [vmem:[#allocation53_spill] sm:$0xff] %v4210_v25 }
 0x1c5   :  { %v4175_v60 = vsel %vm1055_vm2, %v932_v49, %v803_v41  ;;  %2760 = vpow2.f32 %v2668_v39  ;;  %v4190_v41 = vld [vmem:[#allocation9 + $0x160] sm:$0xff]  ;;  %5659 = vst [vmem:[#allocation57_spill] sm:$0xff] %v4213_v58  ;;  %v4220_v49 = vld [vmem:[#allocation9 + $0x118] sm:$0xff]  ;;  %v4223_v39 = vld [vmem:[#allocation10 + $0x108] sm:$0xff] }
 0x1c6   :  { %1088 = vmatmul.f32.vlgmr.msra.gmra.mxu0 %v4175_v60  ;;  %1108 = vmatmul.f32.vlgmr.msra.gmra.mxu1 %v4175_v60  ;;  %v970_v40 = vpop.f32.mrf.mxu2  ;;  %5660 = vst [vmem:[#allocation55_spill] sm:$0xff] %v4216_v33 }
 0x1c7   :  { %1128 = vmatmul.f32.vlgmr.msrb.gmra.mxu2 %v4175_v60  ;;  %1365 = vmatpush.msra.mxu0 %v4181_v8  ;;  %v1018_v35 = vadd.f32 %v1017_v51, %v970_v40  ;;  %5661 = vst [vmem:[#allocation56_spill] sm:$0xff] %v4220_v49  ;;  %v4226_v51 = vld [vmem:[#allocation10 + $0x110] sm:$0xff]  ;;  %v2947_v40 = vld [vmem:[%s5197_s1] sm:$0xff] }
 0x1c8   :  { %1439 = vmatpush.msra.mxu1 %v4184_v23  ;;  %1459 = vmatpush.msrb.mxu2 %v4187_v47  ;;  %5662 = vst [vmem:[#allocation61_spill] sm:$0xff] %v4223_v39  ;;  %vm1303_vm3 = vcmp.gt.s32.totalorder %v2947_v40, 2  ;;  %vm1310_vm4 = vcmp.gt.s32.totalorder %v2947_v40, 5 }
 0x1c9   :  { %1366 = vmatpush.msra.mxu0 %v4190_v41  ;;  %v2669_v50 = vmul.f32 -1.442695, %v1018_v35  ;;  %5663 = vst [vmem:[#allocation72_spill] sm:$0xff] %v4226_v51  ;;  %v4232_v35 = vld [vmem:[#allocation9 + $0x100] sm:$0xff]  ;;  %v1311_v40 = vsel %vm1310_vm4, 1, %v5551_v16 }
 0x1ca   :  { %1440 = vmatpush.msra.mxu1 %v4193_v9  ;;  %1460 = vmatpush.msrb.mxu2 %v4196_v46  ;;  %5664 = vst [vmem:[#allocation63_spill] sm:$0xff] %v4232_v35 }
 0x1cb   :  { %1367 = vmatpush.msra.mxu0 %v4199_v32  ;;  %v2761_v31 = vpop.eup %2760  ;;  %2762 = vpow2.f32 %v2669_v50 }
 0x1cc   :  { %1441 = vmatpush.msra.mxu1 %v4202_v1  ;;  %1461 = vmatpush.msrb.mxu2 %v4205_v59  ;;  %v4208_v54 = vadd.f32 1.0, %v2761_v31  ;;  %v1304_v31 = vsel %vm1303_vm3, 1, %v5551_v16  ;;  %v4282_v16 = vld [vmem:[#allocation10 + $0x98] sm:$0xff] }
 0x1cd   :  { %1368 = vmatpush.msra.mxu0 %v4210_v25  ;;  %1306 = vperm.xlu2 %2724, %v1304_v31   ;;  %v4258_v31 = vld [vmem:[#allocation10 + $0xc0] sm:$0xff]  ;;  %5678 = vst [vmem:[#allocation81_spill] sm:$0xff] %v4282_v16  ;;  %v4291_v25 = vld [vmem:[#allocation10 + $0x78] sm:$0xff] }
 0x1ce   :  { %1442 = vmatpush.msra.mxu1 %v4213_v58  ;;  %1462 = vmatpush.msrb.mxu2 %v4216_v33  ;;  %2764 = vrcp.f32 %v4208_v54  ;;  %5671 = vst [vmem:[#allocation74_spill] sm:$0xff] %v4258_v31  ;;  %v990_v33 = vpop.f32.mrf.mxu3  ;;  %v4286_v58 = vld [vmem:[#allocation9 + $0x88] sm:$0xff]  ;;  %vm1007_vm6 = vweird.f32 %v4208_v54  ;;  %v4309_v1 = vld [vmem:[#allocation9 + $0x58] sm:$0xff] }
 0x1cf   :  { %1369 = vmatpush.msra.mxu0 %v4220_v49  ;;  %v4275_v49 = vld [vmem:[#allocation9 + $0xa0] sm:$0xff]  ;;  %5679 = vst [vmem:[#allocation82_spill] sm:$0xff] %v4286_v58 }
 0x1d0   :  { %1443 = vmatpush.msra.mxu1 %v4223_v39  ;;  %1463 = vmatpush.msrb.mxu2 %v4226_v51  ;;  %v4247_v51 = vld [vmem:[#allocation10 + $0xd8] sm:$0xff]  ;;  %v4268_v39 = vld [vmem:[#allocation10 + $0xa8] sm:$0xff]  ;;  %5676 = vst [vmem:[#allocation79_spill] sm:$0xff] %v4275_v49 }
 0x1d1   :  { %1370 = vmatpush.msra.mxu0 %v4232_v35  ;;  %v2763_v50 = vpop.eup %2762  ;;  %5668 = vst [vmem:[#allocation70_spill] sm:$0xff] %v4247_v51  ;;  %v4250_v35 = vld [vmem:[#allocation10 + $0xe0] sm:$0xff] }
 0x1d2   :  { %1444 = vmatpush.msra.mxu1 %v4236_v4  ;;  %1464 = vmatpush.msrb.mxu2 %v4239_v53  ;;  %v4242_v22 = vadd.f32 1.0, %v2763_v50  ;;  %5669 = vst [vmem:[#allocation71_spill] sm:$0xff] %v4250_v35  ;;  %v4254_v53 = vld [vmem:[#allocation9 + $0xd0] sm:$0xff] }
 0x1d3   :  { %1371 = vmatpush.msra.mxu0 %v4244_v62  ;;  %5670 = vst [vmem:[#allocation73_spill] sm:$0xff] %v4254_v53  ;;  %v4261_v62 = vld [vmem:[#allocation10 + $0xc8] sm:$0xff] }
 0x1d4   :  { %1445 = vmatpush.msra.mxu1 %v4247_v51  ;;  %1465 = vmatpush.msrb.mxu2 %v4250_v35  ;;  %v2765_v4 = vpop.eup %2764  ;;  %2766 = vrcp.f32 %v4242_v22  ;;  %5672 = vst [vmem:[#allocation75_spill] sm:$0xff] %v4261_v62  ;;  %v4264_v51 = vld [vmem:[#allocation9 + $0xb8] sm:$0xff]  ;;  %vm1028_vm11 = vweird.f32 %v4242_v22 }
 0x1d5   :  { %1372 = vmatpush.msra.mxu0 %v4254_v53  ;;  %v1003_v50 = vmul.f32 %v2765_v4, %v4208_v54  ;;  %5673 = vst [vmem:[#allocation32_spill] sm:$0xff] %v4264_v51  ;;  %v4271_v53 = vld [vmem:[#allocation10 + $0xb0] sm:$0xff]  ;;  %vm1008_vm5 = vweird.f32 %v2765_v4  ;;  %1313 = vperm.xlu2 %2724, %v1311_v40  }
 0x1d6   :  { %1446 = vmatpush.msra.mxu1 %v4258_v31  ;;  %1466 = vmatpush.msrb.mxu2 %v4261_v62  ;;  %5674 = vst [vmem:[#allocation77_spill] sm:$0xff] %v4268_v39  ;;  %v1013_v31 = vand.u32 2147483648, %v4208_v54  ;;  %vm1009_vm7 = vmor %vm1007_vm6, %vm1008_vm5  ;;  %v4298_v40 = vld [vmem:[#allocation9 + $0x70] sm:$0xff] }
 0x1d7   :  { %1373 = vmatpush.msra.mxu0 %v4264_v51  ;;  %v1004_v35 = vsub.f32 1.0, %v1003_v50  ;;  %5675 = vst [vmem:[#allocation78_spill] sm:$0xff] %v4271_v53  ;;  %v1011_v50 = vand.u32 2147483647, %v4208_v54  ;;  %v4279_v51 = vld [vmem:[#allocation10 + $0x90] sm:$0xff]  ;;  %v4302_v54 = vld [vmem:[#allocation10 + $0x60] sm:$0xff] }
 0x1d8   :  { %1447 = vmatpush.msra.mxu1 %v4268_v39  ;;  %1467 = vmatpush.msrb.mxu2 %v4271_v53  ;;  %5677 = vst [vmem:[#allocation80_spill] sm:$0xff] %v4279_v51  ;;  %v1041_v53 = vrot.slane %v3929_v48, 4  ;;  %v1014_v48 = vor.u32 1.1754944e-38, %v1013_v31  ;;  %v1034_v31 = vand.u32 2147483648, %v4242_v22 }
 0x1d9   :  { %1374 = vmatpush.msra.mxu0 %v4275_v49  ;;  %v1005_v62 = vmul.f32 %v2765_v4, %v1004_v35  ;;  %5680 = vst [vmem:[#allocation83_spill] sm:$0xff] %v4291_v25  ;;  %vm1012_vm9 = vcmp.eq.f32.partialorder %v1011_v50, 8.507059e+37  ;;  %v4313_v50 = vld [vmem:[#allocation10 + $0x48] sm:$0xff] }
 0x1da   :  { %1448 = vmatpush.msra.mxu1 %v4279_v51  ;;  %1468 = vmatpush.msrb.mxu2 %v4282_v16  ;;  %v2767_v39 = vpop.eup %2766  ;;  %v4294_v51 = vld [vmem:[#allocation10 + $0x80] sm:$0xff]  ;;  %5682 = vst [vmem:[#allocation85_spill] sm:$0xff] %v4298_v40 }
 0x1db   :  { %1375 = vmatpush.msra.mxu0 %v4286_v58  ;;  %v1024_v35 = vmul.f32 %v2767_v39, %v4242_v22  ;;  %v1006_v49 = vadd.f32 %v2765_v4, %v1005_v62  ;;  %5681 = vst [vmem:[#allocation84_spill] sm:$0xff] %v4294_v51  ;;  %v1038_v62 = vadd.f32 %v3991_v52, %v990_v33  ;;  %vm1029_vm10 = vweird.f32 %v2767_v39  ;;  %v4330_v52 = vld [vmem:[#allocation9 + $0x28] sm:$0xff] }
 0x1dc   :  { %1449 = vmatpush.msra.mxu1 %v4291_v25  ;;  %1469 = vmatpush.msrb.mxu2 %v4294_v51  ;;  %5683 = vst [vmem:[#allocation86_spill] sm:$0xff] %v4302_v54  ;;  %v4305_v25 = vld [vmem:[#allocation10 + $0x68] sm:$0xff]  ;;  %v1043_v51 = vunpack.c.l.bf16 %v1041_v53  ;;  %v1032_v33 = vand.u32 2147483647, %v4242_v22  ;;  %v4319_v53 = vld [vmem:[#allocation9 + $0x40] sm:$0xff]  ;;  %vm1030_vm13 = vmor %vm1028_vm11, %vm1029_vm10 }
 0x1dd   :  { %1376 = vmatpush.msra.mxu0 %v4298_v40  ;;  %v1025_v58 = vsub.f32 1.0, %v1024_v35  ;;  %v1010_v16 = vsel %vm1009_vm7, %v2765_v4, %v1006_v49  ;;  %5684 = vst [vmem:[#allocation87_spill] sm:$0xff] %v4305_v25  ;;  %v4316_v35 = vld [vmem:[#allocation10 + $0x50] sm:$0xff]  ;;  %v4336_v22 = vld [vmem:[#allocation10 + $0x20] sm:$0xff] }
 0x1de   :  { %1450 = vmatpush.msra.mxu1 %v4302_v54  ;;  %1470 = vmatpush.msrb.mxu2 %v4305_v25  ;;  %v1015_v59 = vsel %vm1012_vm9, %v1014_v48, %v1010_v16  ;;  %5685 = vst [vmem:[#allocation88_spill] sm:$0xff] %v4309_v1  ;;  %vm1033_vm14 = vcmp.eq.f32.partialorder %v1032_v33, 8.507059e+37  ;;  %v4348_v33 = vld [vmem:[#allocation10 + $0x8] sm:$0xff] }
 0x1df   :  { %1377 = vmatpush.msra.mxu0 %v4309_v1  ;;  %v1039_v4 = vmul.f32 %v1038_v62, %v1015_v59  ;;  %v1026_v49 = vmul.f32 %v2767_v39, %v1025_v58  ;;  %5686 = vst [vmem:[#allocation89_spill] sm:$0xff] %v4313_v50  ;;  %v4323_v59 = vld [vmem:[#allocation10 + $0x30] sm:$0xff]  ;;  %v4326_v58 = vld [vmem:[#allocation10 + $0x38] sm:$0xff]  ;;  %v1035_v62 = vor.u32 1.1754944e-38, %v1034_v31 }
 0x1e0   :  { %1451 = vmatpush.msra.mxu1 %v4313_v50  ;;  %5687 = vst [vmem:[#allocation90_spill] sm:$0xff] %v4316_v35  ;;  %1471 = vmatpush.msrb.mxu2 %v4316_v35 }
 0x1e1   :  { %5688 = vst [vmem:[#allocation91_spill] sm:$0xff] %v4319_v53  ;;  %1378 = vmatpush.msra.mxu0 %v4319_v53  ;;  %v1044_v16 = vadd.f32 %v1043_v51, %v1039_v4  ;;  %v1027_v48 = vadd.f32 %v2767_v39, %v1026_v49  ;;  %v4333_v4 = vld [vmem:[#allocation10 + $0x18] sm:$0xff]  ;;  %v810_v49 = vsel %vm809_vm8, %v4026_v30, 0.0 }
 0x1e2   :  { %1452 = vmatpush.msra.mxu1 %v4323_v59  ;;  %5689 = vst [vmem:[#allocation92_spill] sm:$0xff] %v4326_v58  ;;  %1472 = vmatpush.msrb.mxu2 %v4326_v58  ;;  %v4342_v58 = vld [vmem:[#allocation9 + $0x10] sm:$0xff] }
 0x1e3   :  { %5690 = vst [vmem:[#allocation93_spill] sm:$0xff] %v4330_v52  ;;  %1379 = vmatpush.msra.mxu0 %v4330_v52  ;;  %2768 = vtanh.f32 %v1044_v16  ;;  %v1031_v51 = vsel %vm1030_vm13, %v2767_v39, %v1027_v48  ;;  %v4345_v39 = vld [vmem:[#allocation10] sm:$0xff]  ;;  %v4351_v52 = vpop.permute.xlu1 %1060 }
 0x1e4   :  { %5691 = vst [vmem:[#allocation94_spill] sm:$0xff] %v4333_v4  ;;  %1453 = vmatpush.msra.mxu1 %v4333_v4  ;;  %1473 = vmatpush.msrb.mxu2 %v4336_v22  ;;  %v1036_v31 = vsel %vm1033_vm14, %v1035_v62, %v1031_v51  ;;  %vm1062_vm15 = vcmp.eq.s32.totalorder %v4351_v52, 1  ;;  %v4379_v51 = vld [vmem:[#allocation10 + $0xe8] sm:$0xff] }
 0x1e5   :  { %5692 = vst [vmem:[#allocation95_spill] sm:$0xff] %v4336_v22  ;;  %1380 = vmatpush.msra.mxu0 %v4342_v58  ;;  %v1048_v16 = vmul.f32 %v1036_v31, %v810_v49  ;;  %v1046_v48 = vsub.f32 1.0, %v1036_v31  ;;  %v4399_v31 = vld [vmem:[#allocation10 + $0x88] sm:$0xff] }
 0x1e6   :  { %1454 = vmatpush.msra.mxu1 %v4345_v39  ;;  %1474 = vmatpush.msrb.mxu2 %v4348_v33  ;;  %5693 = vst [vmem:[#allocation96_spill] sm:$0xff] %v4351_v52  ;;  %v4419_v52 = vld [vmem:[#allocation10 + $0x28] sm:$0xff] }
 0x1e7   :  { %5697 = vst [vmem:[#allocation100_spill] sm:$0xff] %v4399_v31 }
 0x1e8   :  { %5702 = vst [vmem:[#allocation104_spill] sm:$0xff] %v4419_v52 }
 0x1e9   :  { %v2769_v22 = vpop.eup %2768 }
 0x1ea   :  { %v1047_v4 = vmul.f32 %v2769_v22, %v1046_v48  ;;  %v4389_v22 = vld [vmem:[#allocation10 + $0xb8] sm:$0xff] }
 0x1eb   :  { %5695 = vst [vmem:[#allocation98_spill] sm:$0xff] %v4389_v22  ;;  %v4409_v48 = vld [vmem:[#allocation10 + $0x58] sm:$0xff] }
 0x1ec   :  { %v1049_v30 = vadd.f32 %v1048_v16, %v1047_v4  ;;  %v4384_v4 = vld [vmem:[#allocation10 + $0xd0] sm:$0xff]  ;;  %5699 = vst [vmem:[#allocation102_spill] sm:$0xff] %v4409_v48 }
 0x1ed   :  { %5694 = vst [vmem:[#allocation97_spill] sm:$0xff] %v4384_v4  ;;  %v4404_v16 = vld [vmem:[#allocation10 + $0x70] sm:$0xff] }
 0x1ee   :  { %v4356_v62 = vsel %vm1062_vm15, %v1049_v30, %v810_v49  ;;  %v4394_v49 = vld [vmem:[#allocation10 + $0xa0] sm:$0xff]  ;;  %5698 = vst [vmem:[#allocation101_spill] sm:$0xff] %v4404_v16 }
 0x1ef   :  { %1202 = vmatmul.f32.vlgmr.msrb.gmra.mxu3 %v4356_v62  ;;  %1222 = vmatmul.f32.vlgmr.msrb.gmra.mxu0 %v4356_v62  ;;  %5696 = vst [vmem:[#allocation99_spill] sm:$0xff] %v4394_v49  ;;  %v4414_v30 = vld [vmem:[#allocation10 + $0x40] sm:$0xff] }
 0x1f0   :  { %1242 = vmatmul.f32.vlgmr.msrb.gmra.mxu1 %v4356_v62  ;;  %1479 = vmatpush.msrb.mxu3 %v4038_v34  ;;  %5700 = vst [vmem:[#allocation103_spill] sm:$0xff] %v4414_v30 }
 0x1f1   :  { %1570 = vmatpush.msrb.mxu0 %v4041_v43  ;;  %1590 = vmatpush.msrb.mxu1 %v4044_v61 }
 0x1f2   :  { %1480 = vmatpush.msrb.mxu3 %v4047_v19 }
 0x1f3   :  { %1571 = vmatpush.msrb.mxu0 %v4050_v63  ;;  %1591 = vmatpush.msrb.mxu1 %v4053_v10 }
 0x1f4   :  { %1481 = vmatpush.msrb.mxu3 %v4056_v11 }
 0x1f5   :  { %1572 = vmatpush.msrb.mxu0 %v4059_v12  ;;  %1592 = vmatpush.msrb.mxu1 %v4062_v13 }
 0x1f6   :  { %1482 = vmatpush.msrb.mxu3 %v4065_v14 }
 0x1f7   :  { %1573 = vmatpush.msrb.mxu0 %v4068_v17  ;;  %1593 = vmatpush.msrb.mxu1 %v4071_v15 }
 0x1f8   :  { %1483 = vmatpush.msrb.mxu3 %v4074_v20 }
 0x1f9   :  { %1574 = vmatpush.msrb.mxu0 %v4077_v37  ;;  %1594 = vmatpush.msrb.mxu1 %v4080_v36 }
 0x1fa   :  { %1484 = vmatpush.msrb.mxu3 %v4083_v18 }
 0x1fb   :  { %1575 = vmatpush.msrb.mxu0 %v4086_v5  ;;  %1595 = vmatpush.msrb.mxu1 %v4089_v3 }
 0x1fc   :  { %1485 = vmatpush.msrb.mxu3 %v4379_v51 }
 0x1fd   :  { %1576 = vmatpush.msrb.mxu0 %v4093_v21  ;;  %1596 = vmatpush.msrb.mxu1 %v4096_v6 }
 0x1fe   :  { %1486 = vmatpush.msrb.mxu3 %v4384_v4 }
 0x1ff   :  { %1577 = vmatpush.msrb.mxu0 %v4100_v44  ;;  %1597 = vmatpush.msrb.mxu1 %v4103_v26 }
 0x200   :  { %1487 = vmatpush.msrb.mxu3 %v4389_v22 }
 0x201   :  { %1578 = vmatpush.msrb.mxu0 %v4107_v38  ;;  %1598 = vmatpush.msrb.mxu1 %v4110_v27 }
 0x202   :  { %1488 = vmatpush.msrb.mxu3 %v4394_v49 }
 0x203   :  { %1579 = vmatpush.msrb.mxu0 %v4114_v24  ;;  %1599 = vmatpush.msrb.mxu1 %v4117_v28 }
 0x204   :  { %1489 = vmatpush.msrb.mxu3 %v4399_v31 }
 0x205   :  { %1580 = vmatpush.msrb.mxu0 %v4121_v42  ;;  %1600 = vmatpush.msrb.mxu1 %v4124_v2 }
 0x206   :  { %1490 = vmatpush.msrb.mxu3 %v4404_v16 }
 0x207   :  { %1581 = vmatpush.msrb.mxu0 %v4128_v29  ;;  %1601 = vmatpush.msrb.mxu1 %v4131_v45  ;;  %v5703_v45 = vld [vmem:[#allocation62_spill] sm:$0xff]  ;;  %v5704_v29 = vld [vmem:[#allocation48_spill] sm:$0xff] }
 0x208   :  { %1491 = vmatpush.msrb.mxu3 %v4409_v48  ;;  %v4424_v48 = vld [vmem:[#allocation10 + $0x10] sm:$0xff] }
 0x209   :  { %1582 = vmatpush.msrb.mxu0 %v4135_v56  ;;  %1602 = vmatpush.msrb.mxu1 %v4138_v0  ;;  %5705 = vst [vmem:[#allocation105_spill] sm:$0xff] %v4424_v48  ;;  %v5706_v0 = vld [vmem:[#allocation52_spill] sm:$0xff] }
 0x20a   :  { %1492 = vmatpush.msrb.mxu3 %v4414_v30  ;;  %v5707_v56 = vld [vmem:[#allocation64_spill] sm:$0xff]  ;;  %v5708_v30 = vld [vmem:[#allocation45_spill] sm:$0xff] }
 0x20b   :  { %1583 = vmatpush.msrb.mxu0 %v4142_v7  ;;  %1603 = vmatpush.msrb.mxu1 %v5701_v55  ;;  %v1154_v7 = vrot.slane %v5708_v30, 4  ;;  %v1132_v55 = vunpack.c.l.bf16 %v5708_v30 }
 0x20c   :  { %1493 = vmatpush.msrb.mxu3 %v4419_v52 }
 0x20d   :  { %1584 = vmatpush.msrb.mxu0 %v5703_v45  ;;  %1604 = vmatpush.msrb.mxu1 %v5704_v29  ;;  %v1156_v16 = vunpack.c.l.bf16 %v1154_v7 }
 0x20e   :  { %1494 = vmatpush.msrb.mxu3 %v4424_v48 }
 0x20f   :  { %1585 = vmatpush.msrb.mxu0 %v5706_v0  ;;  %1605 = vmatpush.msrb.mxu1 %v5707_v56 }
 0x243   :  { %v1089_v2 = vpop.f32.mrf.mxu0  ;;  %v1109_v42 = vpop.f32.mrf.mxu1 }
 0x244   :  { %v1133_v52 = vadd.f32 %v1132_v55, %v1089_v2  ;;  %v1157_v31 = vadd.f32 %v1156_v16, %v1109_v42  ;;  %v5709_v16 = vld [vmem:[#allocation28_spill] sm:$0xff] }
 0x246   :  { %v2670_v45 = vmul.f32 -1.442695, %v1133_v52  ;;  %v2671_v28 = vmul.f32 -1.442695, %v1157_v31 }
 0x248   :  { %2770 = vpow2.f32 %v2670_v45 }
 0x249   :  { %2772 = vpow2.f32 %v2671_v28 }
 0x24a   :  { %v1129_v42 = vpop.f32.mrf.mxu2 }
 0x24e   :  { %v2771_v29 = vpop.eup %2770 }
 0x24f   :  { %v2773_v24 = vpop.eup %2772  ;;  %v1137_v48 = vadd.f32 1.0, %v2771_v29 }
 0x250   :  { %v1161_v49 = vadd.f32 1.0, %v2773_v24  ;;  %v1177_v24 = vadd.f32 %v3908_v57, %v1129_v42 }
 0x251   :  { %2774 = vrcp.f32 %v1137_v48  ;;  %v1149_v22 = vand.u32 2147483648, %v1137_v48  ;;  %v1147_v55 = vand.u32 2147483647, %v1137_v48  ;;  %vm1143_vm1 = vweird.f32 %v1137_v48 }
 0x252   :  { %2776 = vrcp.f32 %v1161_v49  ;;  %v1173_v44 = vand.u32 2147483648, %v1161_v49  ;;  %vm1167_vm6 = vweird.f32 %v1161_v49 }
 0x253   :  { %v1150_v28 = vor.u32 1.1754944e-38, %v1149_v22  ;;  %vm1148_vm4 = vcmp.eq.f32.partialorder %v1147_v55, 8.507059e+37  ;;  %v5711_v55 = vld [vmem:[#allocation24_spill] sm:$0xff] }
 0x257   :  { %v2775_v56 = vpop.eup %2774 }
 0x258   :  { %v2777_v0 = vpop.eup %2776  ;;  %v1139_v27 = vmul.f32 %v2775_v56, %v1137_v48  ;;  %vm1144_vm0 = vweird.f32 %v2775_v56 }
 0x259   :  { %v1163_v38 = vmul.f32 %v2777_v0, %v1161_v49  ;;  %vm1145_vm3 = vmor %vm1143_vm1, %vm1144_vm0  ;;  %vm1168_vm5 = vweird.f32 %v2777_v0 }
 0x25a   :  { %v1140_v30 = vsub.f32 1.0, %v1139_v27  ;;  %v1179_v27 = vunpack.c.l.bf16 %v5709_v16  ;;  %vm1169_vm7 = vmor %vm1167_vm6, %vm1168_vm5  ;;  %v5729_v16 = vld [vmem:[#allocation75_spill] sm:$0xff] }
 0x25b   :  { %v1164_v7 = vsub.f32 1.0, %v1163_v38 }
 0x25c   :  { %v1141_v26 = vmul.f32 %v2775_v56, %v1140_v30  ;;  %v1171_v30 = vand.u32 2147483647, %v1161_v49  ;;  %v5712_v49 = vld [vmem:[#allocation59_spill] sm:$0xff] }
 0x25d   :  { %v1165_v52 = vmul.f32 %v2777_v0, %v1164_v7 }
 0x25e   :  { %v1142_v2 = vadd.f32 %v2775_v56, %v1141_v26  ;;  %v1174_v26 = vor.u32 1.1754944e-38, %v1173_v44  ;;  %vm1172_vm9 = vcmp.eq.f32.partialorder %v1171_v30, 8.507059e+37  ;;  %v5713_v30 = vld [vmem:[#allocation54_spill] sm:$0xff] }
 0x25f   :  { %v1166_v31 = vadd.f32 %v2777_v0, %v1165_v52  ;;  %v1270_v52 = vunpack.c.l.bf16 %v5711_v55 }
 0x260   :  { %v1146_v29 = vsel %vm1145_vm3, %v2775_v56, %v1142_v2  ;;  %v4433_v56 = vpop.permute.xlu2 %1306 }
 0x261   :  { %v1151_v45 = vsel %vm1148_vm4, %v1150_v28, %v1146_v29  ;;  %v1170_v7 = vsel %vm1169_vm7, %v2777_v0, %v1166_v31  ;;  %5710 = vst [vmem:[#allocation45_spill] sm:$0xff] %v4433_v56  ;;  %vm1308_vm10 = vcmp.eq.s32.totalorder %v4433_v56, 1  ;;  %v5728_v56 = vld [vmem:[#allocation74_spill] sm:$0xff] }
 0x262   :  { %v1178_v38 = vmul.f32 %v1177_v24, %v1151_v45  ;;  %v1175_v22 = vsel %vm1172_vm9, %v1174_v26, %v1170_v7  ;;  %v1247_v24 = vrot.slane %v5712_v49, 4  ;;  %v5714_v7 = vld [vmem:[#allocation66_spill] sm:$0xff]  ;;  %v5730_v49 = vld [vmem:[#allocation32_spill] sm:$0xff] }
 0x263   :  { %v1182_v48 = vsub.f32 1.0, %v1175_v22  ;;  %v1184_v28 = vmul.f32 %v1175_v22, %v4175_v60  ;;  %v5715_v22 = vld [vmem:[#allocation53_spill] sm:$0xff] }
 0x264   :  { %v1180_v4 = vadd.f32 %v1179_v27, %v1178_v38  ;;  %v1249_v45 = vunpack.c.l.bf16 %v1247_v24  ;;  %v5722_v24 = vld [vmem:[#allocation65_spill] sm:$0xff] }
 0x266   :  { %2778 = vtanh.f32 %v1180_v4 }
 0x26c   :  { %v2779_v57 = vpop.eup %2778  ;;  %v1223_v42 = vpop.f32.mrf.mxu0 }
 0x26d   :  { %v1183_v2 = vmul.f32 %v2779_v57, %v1182_v48  ;;  %v1271_v29 = vadd.f32 %v1270_v52, %v1223_v42  ;;  %v5716_v48 = vld [vmem:[#allocation57_spill] sm:$0xff]  ;;  %v5717_v57 = vld [vmem:[#allocation55_spill] sm:$0xff]  ;;  %v5718_v52 = vld [vmem:[#allocation56_spill] sm:$0xff] }
 0x26e   :  { %v5719_v42 = vld [vmem:[#allocation61_spill] sm:$0xff] }
 0x26f   :  { %v1185_v0 = vadd.f32 %v1184_v28, %v1183_v2  ;;  %v2673_v4 = vmul.f32 -1.442695, %v1271_v29  ;;  %v5720_v2 = vld [vmem:[#allocation72_spill] sm:$0xff]  ;;  %v5721_v28 = vld [vmem:[#allocation63_spill] sm:$0xff] }
 0x271   :  { %v4442_v44 = vsel %vm1308_vm10, %v1185_v0, %v4175_v60  ;;  %2780 = vpow2.f32 %v2673_v4  ;;  %v5723_v0 = vld [vmem:[#allocation67_spill] sm:$0xff] }
 0x272   :  { %1341 = vmatmul.f32.vlgmr.msra.gmra.mxu2 %v4442_v44  ;;  %1361 = vmatmul.f32.vlgmr.msra.gmra.mxu3 %v4442_v44  ;;  %v1203_v31 = vpop.f32.mrf.mxu3 }
 0x273   :  { %1381 = vmatmul.f32.vlgmr.msra.gmra.mxu0 %v4442_v44  ;;  %1610 = vmatpush.msra.mxu2 %v4181_v8  ;;  %v1250_v27 = vadd.f32 %v1249_v45, %v1203_v31  ;;  %v5724_v45 = vld [vmem:[#allocation68_spill] sm:$0xff]  ;;  %v5725_v31 = vld [vmem:[#allocation70_spill] sm:$0xff] }
 0x274   :  { %1684 = vmatpush.msra.mxu3 %v4184_v23  ;;  %1704 = vmatpush.msra.mxu0 %v4187_v47 }
 0x275   :  { %1611 = vmatpush.msra.mxu2 %v4190_v41  ;;  %v2672_v60 = vmul.f32 -1.442695, %v1250_v27  ;;  %v5726_v27 = vld [vmem:[#allocation71_spill] sm:$0xff] }
 0x276   :  { %1685 = vmatpush.msra.mxu3 %v4193_v9  ;;  %1705 = vmatpush.msra.mxu0 %v4196_v46 }
 0x277   :  { %1612 = vmatpush.msra.mxu2 %v4199_v32  ;;  %v2781_v38 = vpop.eup %2780  ;;  %2782 = vpow2.f32 %v2672_v60  ;;  %v5727_v60 = vld [vmem:[#allocation73_spill] sm:$0xff] }
 0x278   :  { %1686 = vmatpush.msra.mxu3 %v5713_v30  ;;  %1706 = vmatpush.msra.mxu0 %v5714_v7  ;;  %v4456_v26 = vadd.f32 1.0, %v2781_v38 }
 0x279   :  { %1613 = vmatpush.msra.mxu2 %v5715_v22 }
 0x27a   :  { %1687 = vmatpush.msra.mxu3 %v5716_v48  ;;  %1707 = vmatpush.msra.mxu0 %v5717_v57  ;;  %2784 = vrcp.f32 %v4456_v26  ;;  %vm1281_vm3 = vweird.f32 %v4456_v26 }
 0x27b   :  { %1614 = vmatpush.msra.mxu2 %v5718_v52 }
 0x27c   :  { %1688 = vmatpush.msra.mxu3 %v5719_v42  ;;  %1708 = vmatpush.msra.mxu0 %v5720_v2  ;;  %v5737_v2 = vld [vmem:[#allocation83_spill] sm:$0xff] }
 0x27d   :  { %1615 = vmatpush.msra.mxu2 %v5721_v28  ;;  %v2783_v29 = vpop.eup %2782  ;;  %v5736_v28 = vld [vmem:[#allocation82_spill] sm:$0xff] }
 0x27e   :  { %1689 = vmatpush.msra.mxu3 %v5722_v24  ;;  %1709 = vmatpush.msra.mxu0 %v5723_v0  ;;  %v1254_v4 = vadd.f32 1.0, %v2783_v29  ;;  %v5731_v24 = vld [vmem:[#allocation77_spill] sm:$0xff]  ;;  %v5732_v0 = vld [vmem:[#allocation78_spill] sm:$0xff] }
 0x27f   :  { %1616 = vmatpush.msra.mxu2 %v5724_v45  ;;  %v5733_v45 = vld [vmem:[#allocation79_spill] sm:$0xff] }
 0x280   :  { %1690 = vmatpush.msra.mxu3 %v5725_v31  ;;  %1710 = vmatpush.msra.mxu0 %v5726_v27  ;;  %2786 = vrcp.f32 %v1254_v4  ;;  %v2785_v38 = vpop.eup %2784  ;;  %v5734_v31 = vld [vmem:[#allocation80_spill] sm:$0xff]  ;;  %v5735_v27 = vld [vmem:[#allocation81_spill] sm:$0xff]  ;;  %vm1260_vm13 = vweird.f32 %v1254_v4 }
 0x281   :  { %1617 = vmatpush.msra.mxu2 %v5727_v60  ;;  %v1277_v29 = vmul.f32 %v2785_v38, %v4456_v26  ;;  %vm1282_vm1 = vweird.f32 %v2785_v38 }
 0x282   :  { %1691 = vmatpush.msra.mxu3 %v5728_v56  ;;  %1711 = vmatpush.msra.mxu0 %v5729_v16  ;;  %v5738_v16 = vld [vmem:[#allocation84_spill] sm:$0xff]  ;;  %vm1283_vm4 = vmor %vm1281_vm3, %vm1282_vm1 }
 0x283   :  { %1618 = vmatpush.msra.mxu2 %v5730_v49  ;;  %v1278_v49 = vsub.f32 1.0, %v1277_v29 }
 0x284   :  { %1692 = vmatpush.msra.mxu3 %v5731_v24  ;;  %1712 = vmatpush.msra.mxu0 %v5732_v0 }
 0x285   :  { %1619 = vmatpush.msra.mxu2 %v5733_v45  ;;  %v1266_v45 = vand.u32 2147483648, %v1254_v4 }
 0x286   :  { %1693 = vmatpush.msra.mxu3 %v5734_v31  ;;  %1713 = vmatpush.msra.mxu0 %v5735_v27  ;;  %v2787_v60 = vpop.eup %2786  ;;  %v1264_v31 = vand.u32 2147483647, %v1254_v4 }
 0x287   :  { %1620 = vmatpush.msra.mxu2 %v5736_v28  ;;  %v1256_v56 = vmul.f32 %v2787_v60, %v1254_v4  ;;  %vm1261_vm11 = vweird.f32 %v2787_v60 }
 0x288   :  { %1694 = vmatpush.msra.mxu3 %v5737_v2  ;;  %1714 = vmatpush.msra.mxu0 %v5738_v16  ;;  %v1279_v2 = vmul.f32 %v2785_v38, %v1278_v49  ;;  %v1243_v16 = vpop.f32.mrf.mxu1  ;;  %vm1262_vm14 = vmor %vm1260_vm13, %vm1261_vm11  ;;  %vm1265_vm0 = vcmp.eq.f32.partialorder %v1264_v31, 8.507059e+37  ;;  %v5742_v49 = vld [vmem:[#allocation94_spill] sm:$0xff] }
 0x289   :  { %1621 = vmatpush.msra.mxu2 %v4298_v40  ;;  %v1257_v0 = vsub.f32 1.0, %v1256_v56  ;;  %v1294_v56 = vrot.slane %v5711_v55, 4 }
 0x28a   :  { %1695 = vmatpush.msra.mxu3 %v4302_v54  ;;  %1715 = vmatpush.msra.mxu0 %v4305_v25  ;;  %v5739_v25 = vld [vmem:[#allocation92_spill] sm:$0xff]  ;;  %v5741_v54 = vld [vmem:[#allocation26_spill] sm:$0xff]  ;;  %v1280_v55 = vadd.f32 %v2785_v38, %v1279_v2 }
 0x28b   :  { %1622 = vmatpush.msra.mxu2 %v4309_v1  ;;  %v1258_v27 = vmul.f32 %v2787_v60, %v1257_v0  ;;  %v1267_v0 = vor.u32 1.1754944e-38, %v1266_v45  ;;  %v5740_v1 = vld [vmem:[#allocation93_spill] sm:$0xff]  ;;  %v1296_v4 = vunpack.c.l.bf16 %v1294_v56  ;;  %v4504_v56 = vpop.permute.xlu2 %1313 }
 0x28c   :  { %1696 = vmatpush.msra.mxu3 %v4313_v50  ;;  %1716 = vmatpush.msra.mxu0 %v4316_v35  ;;  %v1291_v50 = vadd.f32 %v5741_v54, %v1243_v16  ;;  %v5743_v35 = vld [vmem:[#allocation95_spill] sm:$0xff]  ;;  %v1285_v54 = vand.u32 2147483647, %v4456_v26  ;;  %v1284_v45 = vsel %vm1283_vm4, %v2785_v38, %v1280_v55  ;;  %5744 = vst [vmem:[#allocation24_spill] sm:$0xff] %v4504_v56  ;;  %vm1315_vm6 = vcmp.eq.s32.totalorder %v4504_v56, 1  ;;  %v5767_v38 = vld [vmem:[#allocation62_spill] sm:$0xff] }
 0x28d   :  { %1623 = vmatpush.msra.mxu2 %v4319_v53  ;;  %v1259_v29 = vadd.f32 %v2787_v60, %v1258_v27  ;;  %v1287_v27 = vand.u32 2147483648, %v4456_v26  ;;  %v5769_v55 = vld [vmem:[#allocation105_spill] sm:$0xff] }
 0x28e   :  { %1697 = vmatpush.msra.mxu3 %v4323_v59  ;;  %1717 = vmatpush.msra.mxu0 %v5739_v25  ;;  %vm1286_vm5 = vcmp.eq.f32.partialorder %v1285_v54, 8.507059e+37  ;;  %v5772_v54 = vld [vmem:[#allocation33_spill] sm:$0xff] }
 0x28f   :  { %1624 = vmatpush.msra.mxu2 %v5740_v1  ;;  %v1263_v40 = vsel %vm1262_vm14, %v2787_v60, %v1259_v29 }
 0x290   :  { %1698 = vmatpush.msra.mxu3 %v5742_v49  ;;  %1718 = vmatpush.msra.mxu0 %v5743_v35  ;;  %v1268_v53 = vsel %vm1265_vm0, %v1267_v0, %v1263_v40  ;;  %v1288_v40 = vor.u32 1.1754944e-38, %v1287_v27  ;;  %v5768_v0 = vld [vmem:[#allocation48_spill] sm:$0xff] }
 0x291   :  { %1625 = vmatpush.msra.mxu2 %v4342_v58  ;;  %v1292_v25 = vmul.f32 %v1291_v50, %v1268_v53  ;;  %v5771_v27 = vld [vmem:[#allocation64_spill] sm:$0xff] }
 0x292   :  { %1699 = vmatpush.msra.mxu3 %v4345_v39  ;;  %1719 = vmatpush.msra.mxu0 %v4348_v33  ;;  %v1289_v2 = vsel %vm1286_vm5, %v1288_v40, %v1284_v45  ;;  %v1385_v45 = vunpack.c.l.bf16 %v5772_v54 }
 0x293   :  { %v1297_v16 = vadd.f32 %v1296_v4, %v1292_v25  ;;  %v1299_v31 = vsub.f32 1.0, %v1289_v2  ;;  %v1301_v53 = vmul.f32 %v1289_v2, %v4356_v62  ;;  %v5765_v25 = vld [vmem:[#allocation50_spill] sm:$0xff]  ;;  %v5770_v4 = vld [vmem:[#allocation52_spill] sm:$0xff] }
 0x295   :  { %2788 = vtanh.f32 %v1297_v16  ;;  %v1407_v16 = vrot.slane %v5772_v54, 4 }
 0x297   :  { %v1409_v40 = vunpack.c.l.bf16 %v1407_v16 }
 0x29b   :  { %v2789_v60 = vpop.eup %2788 }
 0x29c   :  { %v1300_v50 = vmul.f32 %v2789_v60, %v1299_v31 }
 0x29e   :  { %v1302_v29 = vadd.f32 %v1301_v53, %v1300_v50 }
 0x2a0   :  { %v4511_v26 = vsel %vm1315_vm6, %v1302_v29, %v4356_v62  ;;  %v5766_v62 = vld [vmem:[#allocation104_spill] sm:$0xff] }
 0x2a1   :  { %1455 = vmatmul.f32.vlgmr.msra.gmra.mxu1 %v4511_v26  ;;  %1475 = vmatmul.f32.vlgmr.msrb.gmra.mxu2 %v4511_v26 }
 0x2a2   :  { %1495 = vmatmul.f32.vlgmr.msrb.gmra.mxu3 %v4511_v26  ;;  %1724 = vmatpush.msra.mxu1 %v4038_v34  ;;  %v5745_v34 = vld [vmem:[#allocation97_spill] sm:$0xff] }
 0x2a3   :  { %1803 = vmatpush.msrb.mxu2 %v4041_v43  ;;  %1823 = vmatpush.msrb.mxu3 %v4044_v61  ;;  %v5746_v43 = vld [vmem:[#allocation29_spill] sm:$0xff]  ;;  %v5747_v61 = vld [vmem:[#allocation31_spill] sm:$0xff] }
 0x2a4   :  { %1725 = vmatpush.msra.mxu1 %v4047_v19  ;;  %v5748_v19 = vld [vmem:[#allocation98_spill] sm:$0xff] }
 0x2a5   :  { %1804 = vmatpush.msrb.mxu2 %v4050_v63  ;;  %1824 = vmatpush.msrb.mxu3 %v4053_v10  ;;  %v5749_v63 = vld [vmem:[#allocation35_spill] sm:$0xff]  ;;  %v5750_v10 = vld [vmem:[#allocation34_spill] sm:$0xff] }
 0x2a6   :  { %1726 = vmatpush.msra.mxu1 %v4056_v11  ;;  %v5751_v11 = vld [vmem:[#allocation99_spill] sm:$0xff] }
 0x2a7   :  { %1805 = vmatpush.msrb.mxu2 %v4059_v12  ;;  %1825 = vmatpush.msrb.mxu3 %v4062_v13  ;;  %v5752_v12 = vld [vmem:[#allocation38_spill] sm:$0xff]  ;;  %v5753_v13 = vld [vmem:[#allocation47_spill] sm:$0xff] }
 0x2a8   :  { %1727 = vmatpush.msra.mxu1 %v4065_v14  ;;  %v5754_v14 = vld [vmem:[#allocation100_spill] sm:$0xff] }
 0x2a9   :  { %1806 = vmatpush.msrb.mxu2 %v4068_v17  ;;  %1826 = vmatpush.msrb.mxu3 %v4071_v15  ;;  %v5755_v17 = vld [vmem:[#allocation36_spill] sm:$0xff]  ;;  %v5756_v15 = vld [vmem:[#allocation41_spill] sm:$0xff] }
 0x2aa   :  { %1728 = vmatpush.msra.mxu1 %v4074_v20  ;;  %v5757_v20 = vld [vmem:[#allocation101_spill] sm:$0xff] }
 0x2ab   :  { %1807 = vmatpush.msrb.mxu2 %v4077_v37  ;;  %1827 = vmatpush.msrb.mxu3 %v4080_v36  ;;  %v5758_v37 = vld [vmem:[#allocation58_spill] sm:$0xff]  ;;  %v5759_v36 = vld [vmem:[#allocation39_spill] sm:$0xff] }
 0x2ac   :  { %1729 = vmatpush.msra.mxu1 %v4083_v18  ;;  %v5760_v18 = vld [vmem:[#allocation102_spill] sm:$0xff] }
 0x2ad   :  { %1808 = vmatpush.msrb.mxu2 %v4086_v5  ;;  %1828 = vmatpush.msrb.mxu3 %v4089_v3  ;;  %v5761_v5 = vld [vmem:[#allocation46_spill] sm:$0xff]  ;;  %v5762_v3 = vld [vmem:[#allocation60_spill] sm:$0xff] }
 0x2ae   :  { %1730 = vmatpush.msra.mxu1 %v4379_v51 }
 0x2af   :  { %1809 = vmatpush.msrb.mxu2 %v4093_v21  ;;  %1829 = vmatpush.msrb.mxu3 %v4096_v6  ;;  %v5763_v21 = vld [vmem:[#allocation103_spill] sm:$0xff]  ;;  %v5764_v6 = vld [vmem:[#allocation44_spill] sm:$0xff] }
 0x2b0   :  { %1731 = vmatpush.msra.mxu1 %v5745_v34 }
 0x2b1   :  { %1810 = vmatpush.msrb.mxu2 %v5746_v43  ;;  %1830 = vmatpush.msrb.mxu3 %v5747_v61 }
 0x2b2   :  { %1732 = vmatpush.msra.mxu1 %v5748_v19 }
 0x2b3   :  { %1811 = vmatpush.msrb.mxu2 %v5749_v63  ;;  %1831 = vmatpush.msrb.mxu3 %v5750_v10 }
 0x2b4   :  { %1733 = vmatpush.msra.mxu1 %v5751_v11 }
 0x2b5   :  { %1812 = vmatpush.msrb.mxu2 %v5752_v12  ;;  %1832 = vmatpush.msrb.mxu3 %v5753_v13 }
 0x2b6   :  { %1734 = vmatpush.msra.mxu1 %v5754_v14 }
 0x2b7   :  { %1813 = vmatpush.msrb.mxu2 %v5755_v17  ;;  %1833 = vmatpush.msrb.mxu3 %v5756_v15 }
 0x2b8   :  { %1735 = vmatpush.msra.mxu1 %v5757_v20 }
 0x2b9   :  { %1814 = vmatpush.msrb.mxu2 %v5758_v37  ;;  %1834 = vmatpush.msrb.mxu3 %v5759_v36 }
 0x2ba   :  { %1736 = vmatpush.msra.mxu1 %v5760_v18 }
 0x2bb   :  { %1815 = vmatpush.msrb.mxu2 %v5761_v5  ;;  %1835 = vmatpush.msrb.mxu3 %v5762_v3 }
 0x2bc   :  { %1737 = vmatpush.msra.mxu1 %v5763_v21 }
 0x2bd   :  { %1816 = vmatpush.msrb.mxu2 %v5764_v6  ;;  %1836 = vmatpush.msrb.mxu3 %v5765_v25 }
 0x2be   :  { %1738 = vmatpush.msra.mxu1 %v5766_v62 }
 0x2bf   :  { %1817 = vmatpush.msrb.mxu2 %v5767_v38  ;;  %1837 = vmatpush.msrb.mxu3 %v5768_v0 }
 0x2c0   :  { %1739 = vmatpush.msra.mxu1 %v5769_v55 }
 0x2c1   :  { %1818 = vmatpush.msrb.mxu2 %v5770_v4  ;;  %1838 = vmatpush.msrb.mxu3 %v5771_v27  ;;  %v4569_v27 = vld [vmem:[%s5202_s6] ss:$0 sm:$0xff] }
 0x2f0   :  { %v1382_v25 = vpop.f32.mrf.mxu0 }
 0x2f1   :  { %v1430_v54 = vadd.f32 %v4569_v27, %v1382_v25 }
 0x2f5   :  { %v1342_v2 = vpop.f32.mrf.mxu2  ;;  %v1362_v31 = vpop.f32.mrf.mxu3 }
 0x2f6   :  { %v1386_v60 = vadd.f32 %v1385_v45, %v1342_v2  ;;  %v1410_v50 = vadd.f32 %v1409_v40, %v1362_v31  ;;  %v5773_v2 = vld [vmem:[#allocation49_spill] sm:$0xff] }
 0x2f7   :  { %v1432_v31 = vunpack.c.l.bf16 %v5773_v2 }
 0x2f8   :  { %v2674_v53 = vmul.f32 -1.442695, %v1386_v60  ;;  %v2675_v29 = vmul.f32 -1.442695, %v1410_v50 }
 0x2fa   :  { %2790 = vpow2.f32 %v2674_v53 }
 0x2fb   :  { %2792 = vpow2.f32 %v2675_v29 }
 0x300   :  { %v2791_v43 = vpop.eup %2790 }
 0x301   :  { %v2793_v61 = vpop.eup %2792  ;;  %v1390_v63 = vadd.f32 1.0, %v2791_v43 }
 0x302   :  { %v1414_v10 = vadd.f32 1.0, %v2793_v61 }
 0x303   :  { %2794 = vrcp.f32 %v1390_v63  ;;  %v1402_v36 = vand.u32 2147483648, %v1390_v63  ;;  %v1400_v6 = vand.u32 2147483647, %v1390_v63  ;;  %vm1396_vm9 = vweird.f32 %v1390_v63 }
 0x304   :  { %2796 = vrcp.f32 %v1414_v10  ;;  %v1426_v50 = vand.u32 2147483648, %v1414_v10  ;;  %vm1420_vm0 = vweird.f32 %v1414_v10  ;;  %v1424_v53 = vand.u32 2147483647, %v1414_v10 }
 0x305   :  { %v1403_v4 = vor.u32 1.1754944e-38, %v1402_v36  ;;  %vm1401_vm13 = vcmp.eq.f32.partialorder %v1400_v6, 8.507059e+37 }
 0x306   :  { %v1427_v61 = vor.u32 1.1754944e-38, %v1426_v50  ;;  %vm1425_vm3 = vcmp.eq.f32.partialorder %v1424_v53, 8.507059e+37  ;;  %v5787_v53 = vld [vmem:[#allocation78_spill] sm:$0xff] }
 0x309   :  { %v2795_v12 = vpop.eup %2794 }
 0x30a   :  { %v2797_v13 = vpop.eup %2796  ;;  %v1392_v17 = vmul.f32 %v2795_v12, %v1390_v63  ;;  %vm1397_vm7 = vweird.f32 %v2795_v12  ;;  %v5774_v63 = vld [vmem:[#allocation40_spill] sm:$0xff] }
 0x30b   :  { %v1416_v15 = vmul.f32 %v2797_v13, %v1414_v10  ;;  %vm1398_vm11 = vmor %vm1396_vm9, %vm1397_vm7  ;;  %vm1421_vm14 = vweird.f32 %v2797_v13 }
 0x30c   :  { %v1393_v37 = vsub.f32 1.0, %v1392_v17  ;;  %vm1422_vm1 = vmor %vm1420_vm0, %vm1421_vm14  ;;  %v1500_v17 = vrot.slane %v5774_v63, 4 }
 0x30d   :  { %v1417_v5 = vsub.f32 1.0, %v1416_v15 }
 0x30e   :  { %v1394_v3 = vmul.f32 %v2795_v12, %v1393_v37  ;;  %v1502_v36 = vunpack.c.l.bf16 %v1500_v17 }
 0x30f   :  { %v1418_v38 = vmul.f32 %v2797_v13, %v1417_v5  ;;  %v4574_v5 = vpop.permute.xlu0 %1559 }
 0x310   :  { %v1395_v0 = vadd.f32 %v2795_v12, %v1394_v3  ;;  %vm1561_vm4 = vcmp.eq.s32.totalorder %v4574_v5, 1  ;;  %v4995_v5 = vld [vmem:[#allocation10 + $0xe8] sm:$0xff] }
 0x311   :  { %v1419_v40 = vadd.f32 %v2797_v13, %v1418_v38 }
 0x312   :  { %v1399_v16 = vsel %vm1398_vm11, %v2795_v12, %v1395_v0 }
 0x313   :  { %v1404_v45 = vsel %vm1401_vm13, %v1403_v4, %v1399_v16  ;;  %v1423_v43 = vsel %vm1422_vm1, %v2797_v13, %v1419_v40  ;;  %v5775_v4 = vld [vmem:[#allocation22_spill] sm:$0xff] }
 0x314   :  { %v1431_v60 = vmul.f32 %v1430_v54, %v1404_v45  ;;  %v1428_v15 = vsel %vm1425_vm3, %v1427_v61, %v1423_v43  ;;  %v1523_v54 = vunpack.c.l.bf16 %v5775_v4  ;;  %v5788_v43 = vld [vmem:[#allocation79_spill] sm:$0xff] }
 0x315   :  { %v1435_v12 = vsub.f32 1.0, %v1428_v15  ;;  %v1437_v25 = vmul.f32 %v1428_v15, %v4442_v44  ;;  %v5789_v15 = vld [vmem:[#allocation80_spill] sm:$0xff] }
 0x316   :  { %v1433_v29 = vadd.f32 %v1432_v31, %v1431_v60  ;;  %v5785_v31 = vld [vmem:[#allocation75_spill] sm:$0xff]  ;;  %v5786_v60 = vld [vmem:[#allocation32_spill] sm:$0xff] }
 0x318   :  { %2798 = vtanh.f32 %v1433_v29 }
 0x31e   :  { %v2799_v37 = vpop.eup %2798  ;;  %v1456_v3 = vpop.f32.mrf.mxu1 }
 0x31f   :  { %v1436_v6 = vmul.f32 %v2799_v37, %v1435_v12  ;;  %v1503_v38 = vadd.f32 %v1502_v36, %v1456_v3  ;;  %v5790_v12 = vld [vmem:[#allocation81_spill] sm:$0xff]  ;;  %v1547_v36 = vrot.slane %v5775_v4, 4  ;;  %v4629_v4 = vld [vmem:[%s5203_s7] ss:$0 sm:$0xff] }
 0x321   :  { %v1438_v10 = vadd.f32 %v1437_v25, %v1436_v6  ;;  %v2676_v13 = vmul.f32 -1.442695, %v1503_v38  ;;  %v5791_v25 = vld [vmem:[#allocation83_spill] sm:$0xff]  ;;  %v5792_v38 = vld [vmem:[#allocation84_spill] sm:$0xff] }
 0x323   :  { %v4581_v0 = vsel %vm1561_vm4, %v1438_v10, %v4442_v44  ;;  %2800 = vpow2.f32 %v2676_v13  ;;  %v5793_v13 = vld [vmem:[#allocation85_spill] sm:$0xff] }
 0x324   :  { %1586 = vmatmul.f32.vlgmr.msrb.gmra.mxu0 %v4581_v0  ;;  %1606 = vmatmul.f32.vlgmr.msrb.gmra.mxu1 %v4581_v0  ;;  %v1476_v16 = vpop.f32.mrf.mxu2 }
 0x325   :  { %1626 = vmatmul.f32.vlgmr.msra.gmra.mxu2 %v4581_v0  ;;  %1843 = vmatpush.msrb.mxu0 %v4181_v8  ;;  %v1524_v45 = vadd.f32 %v1523_v54, %v1476_v16  ;;  %v1496_v3 = vpop.f32.mrf.mxu3 }
 0x326   :  { %1917 = vmatpush.msrb.mxu1 %v4184_v23  ;;  %1937 = vmatpush.msra.mxu2 %v4187_v47  ;;  %v5776_v23 = vld [vmem:[#allocation72_spill] sm:$0xff]  ;;  %v5777_v47 = vld [vmem:[#allocation63_spill] sm:$0xff] }
 0x327   :  { %1844 = vmatpush.msrb.mxu0 %v4190_v41  ;;  %v2677_v44 = vmul.f32 -1.442695, %v1524_v45  ;;  %v5794_v45 = vld [vmem:[#allocation86_spill] sm:$0xff] }
 0x328   :  { %1918 = vmatpush.msrb.mxu1 %v4193_v9  ;;  %1938 = vmatpush.msra.mxu2 %v4196_v46  ;;  %v5778_v9 = vld [vmem:[#allocation65_spill] sm:$0xff]  ;;  %v5779_v46 = vld [vmem:[#allocation67_spill] sm:$0xff] }
 0x329   :  { %1845 = vmatpush.msrb.mxu0 %v4199_v32  ;;  %v2801_v40 = vpop.eup %2800  ;;  %2802 = vpow2.f32 %v2677_v44  ;;  %v5795_v44 = vld [vmem:[#allocation87_spill] sm:$0xff] }
 0x32a   :  { %1919 = vmatpush.msrb.mxu1 %v5713_v30  ;;  %1939 = vmatpush.msra.mxu2 %v5714_v7  ;;  %v1507_v8 = vadd.f32 1.0, %v2801_v40  ;;  %v5780_v30 = vld [vmem:[#allocation68_spill] sm:$0xff]  ;;  %v5781_v7 = vld [vmem:[#allocation70_spill] sm:$0xff]  ;;  %v1549_v40 = vunpack.c.l.bf16 %v1547_v36  ;;  %v4694_v36 = vld [vmem:[#allocation9 + $0x128] sm:$0xff] }
 0x32b   :  { %1846 = vmatpush.msrb.mxu0 %v5715_v22  ;;  %v5782_v22 = vld [vmem:[#allocation71_spill] sm:$0xff] }
 0x32c   :  { %1920 = vmatpush.msrb.mxu1 %v5716_v48  ;;  %1940 = vmatpush.msra.mxu2 %v5717_v57  ;;  %2804 = vrcp.f32 %v1507_v8  ;;  %v5783_v57 = vld [vmem:[#allocation73_spill] sm:$0xff]  ;;  %v1519_v29 = vand.u32 2147483648, %v1507_v8  ;;  %v1517_v17 = vand.u32 2147483647, %v1507_v8  ;;  %vm1513_vm7 = vweird.f32 %v1507_v8 }
 0x32d   :  { %1847 = vmatpush.msrb.mxu0 %v5718_v52 }
 0x32e   :  { %1921 = vmatpush.msrb.mxu1 %v5719_v42  ;;  %1941 = vmatpush.msra.mxu2 %v5776_v23  ;;  %v5784_v42 = vld [vmem:[#allocation74_spill] sm:$0xff]  ;;  %v1520_v10 = vor.u32 1.1754944e-38, %v1519_v29  ;;  %vm1518_vm11 = vcmp.eq.f32.partialorder %v1517_v17, 8.507059e+37  ;;  %v5796_v23 = vld [vmem:[#allocation88_spill] sm:$0xff]  ;;  %v4682_v17 = vld [vmem:[#allocation9 + $0x138] sm:$0xff] }
 0x32f   :  { %1848 = vmatpush.msrb.mxu0 %v5777_v47  ;;  %v2803_v41 = vpop.eup %2802 }
 0x330   :  { %1922 = vmatpush.msrb.mxu1 %v5778_v9  ;;  %1942 = vmatpush.msra.mxu2 %v5779_v46  ;;  %v4605_v32 = vadd.f32 1.0, %v2803_v41  ;;  %v5797_v46 = vld [vmem:[#allocation89_spill] sm:$0xff] }
 0x331   :  { %1849 = vmatpush.msrb.mxu0 %v5780_v30  ;;  %v5798_v30 = vld [vmem:[#allocation90_spill] sm:$0xff] }
 0x332   :  { %1923 = vmatpush.msrb.mxu1 %v5781_v7  ;;  %1943 = vmatpush.msra.mxu2 %v5782_v22  ;;  %v2805_v48 = vpop.eup %2804  ;;  %2806 = vrcp.f32 %v4605_v32  ;;  %v1540_v41 = vand.u32 2147483648, %v4605_v32  ;;  %v1538_v7 = vand.u32 2147483647, %v4605_v32  ;;  %v5799_v22 = vld [vmem:[#allocation91_spill] sm:$0xff]  ;;  %vm1534_vm14 = vweird.f32 %v4605_v32 }
 0x333   :  { %1850 = vmatpush.msrb.mxu0 %v5783_v57  ;;  %v1509_v52 = vmul.f32 %v2805_v48, %v1507_v8  ;;  %vm1514_vm5 = vweird.f32 %v2805_v48 }
 0x334   :  { %1924 = vmatpush.msrb.mxu1 %v5784_v42  ;;  %1944 = vmatpush.msra.mxu2 %v5785_v31  ;;  %vm1515_vm9 = vmor %vm1513_vm7, %vm1514_vm5  ;;  %v1541_v42 = vor.u32 1.1754944e-38, %v1540_v41  ;;  %vm1539_vm1 = vcmp.eq.f32.partialorder %v1538_v7, 8.507059e+37  ;;  %v4775_v41 = vld [vmem:[#allocation9 + $0x20] sm:$0xff] }
 0x335   :  { %1851 = vmatpush.msrb.mxu0 %v5786_v60  ;;  %v1510_v50 = vsub.f32 1.0, %v1509_v52  ;;  %v5800_v52 = vld [vmem:[#allocation92_spill] sm:$0xff]  ;;  %5801 = vst [vmem:[#allocation54_spill] sm:$0xff] %v4775_v41 }
 0x336   :  { %1925 = vmatpush.msrb.mxu1 %v5731_v24  ;;  %1945 = vmatpush.msra.mxu2 %v5787_v53 }
 0x337   :  { %1852 = vmatpush.msrb.mxu0 %v5788_v43  ;;  %v1511_v61 = vmul.f32 %v2805_v48, %v1510_v50  ;;  %v4649_v50 = vpop.permute.xlu1 %1566  ;;  %v4676_v43 = vld [vmem:[#allocation9 + $0x158] sm:$0xff] }
 0x338   :  { %1926 = vmatpush.msrb.mxu1 %v5789_v15  ;;  %1946 = vmatpush.msra.mxu2 %v5790_v12  ;;  %v2807_v37 = vpop.eup %2806  ;;  %vm1568_vm3 = vcmp.eq.s32.totalorder %v4649_v50, 1  ;;  %v4685_v15 = vld [vmem:[#allocation9 + $0x140] sm:$0xff]  ;;  %v4688_v12 = vld [vmem:[#allocation10 + $0x130] sm:$0xff] }
 0x339   :  { %1853 = vmatpush.msrb.mxu0 %v5736_v28  ;;  %v1530_v24 = vmul.f32 %v2807_v37, %v4605_v32  ;;  %v1512_v6 = vadd.f32 %v2805_v48, %v1511_v61  ;;  %v1544_v28 = vadd.f32 %v4629_v4, %v1496_v3  ;;  %vm1535_vm13 = vweird.f32 %v2807_v37  ;;  %v4679_v61 = vld [vmem:[#allocation10 + $0x148] sm:$0xff]  ;;  %v4697_v3 = vld [vmem:[#allocation10 + $0x118] sm:$0xff]  ;;  %v4809_v50 = vld [vmem:[#allocation9 + $0x160] sm:$0xff] }
 0x33a   :  { %1927 = vmatpush.msrb.mxu1 %v5791_v25  ;;  %1947 = vmatpush.msra.mxu2 %v5792_v38  ;;  %vm1536_vm0 = vmor %vm1534_vm14, %vm1535_vm13  ;;  %v4706_v25 = vld [vmem:[#allocation10 + $0x100] sm:$0xff]  ;;  %v4709_v38 = vld [vmem:[#allocation9 + $0xf0] sm:$0xff] }
 0x33b   :  { %1854 = vmatpush.msrb.mxu0 %v5793_v13  ;;  %v1531_v54 = vsub.f32 1.0, %v1530_v24  ;;  %v1516_v16 = vsel %vm1515_vm9, %v2805_v48, %v1512_v6  ;;  %v4700_v24 = vld [vmem:[#allocation9 + $0x108] sm:$0xff]  ;;  %v4703_v6 = vld [vmem:[#allocation9 + $0x110] sm:$0xff]  ;;  %v4716_v13 = vld [vmem:[#allocation9 + $0xd8] sm:$0xff] }
 0x33c   :  { %1928 = vmatpush.msrb.mxu1 %v5794_v45  ;;  %1948 = vmatpush.msra.mxu2 %v5795_v44  ;;  %v1521_v8 = vsel %vm1518_vm11, %v1520_v10, %v1516_v16  ;;  %v4712_v10 = vld [vmem:[#allocation9 + $0xf8] sm:$0xff]  ;;  %v4723_v16 = vld [vmem:[#allocation9 + $0xc0] sm:$0xff]  ;;  %v4733_v45 = vld [vmem:[#allocation9 + $0xb0] sm:$0xff] }
 0x33d   :  { %1855 = vmatpush.msrb.mxu0 %v5796_v23  ;;  %v1532_v47 = vmul.f32 %v2807_v37, %v1531_v54  ;;  %v1545_v9 = vmul.f32 %v1544_v28, %v1521_v8  ;;  %v4719_v54 = vld [vmem:[#allocation9 + $0xe0] sm:$0xff]  ;;  %v4726_v28 = vld [vmem:[#allocation9 + $0xc8] sm:$0xff]  ;;  %v4740_v44 = vld [vmem:[#allocation9 + $0x98] sm:$0xff] }
 0x33e   :  { %1929 = vmatpush.msrb.mxu1 %v5797_v46  ;;  %1949 = vmatpush.msra.mxu2 %v5798_v30  ;;  %v4754_v8 = vld [vmem:[#allocation9 + $0x68] sm:$0xff]  ;;  %v4761_v23 = vld [vmem:[#allocation9 + $0x50] sm:$0xff] }
 0x33f   :  { %1856 = vmatpush.msrb.mxu0 %v5799_v22  ;;  %v1533_v48 = vadd.f32 %v2807_v37, %v1532_v47  ;;  %v1550_v57 = vadd.f32 %v1549_v40, %v1545_v9  ;;  %v4747_v40 = vld [vmem:[#allocation9 + $0x80] sm:$0xff]  ;;  %v4768_v47 = vld [vmem:[#allocation9 + $0x38] sm:$0xff]  ;;  %v4782_v9 = vld [vmem:[#allocation9 + $0x8] sm:$0xff] }
 0x340   :  { %1930 = vmatpush.msrb.mxu1 %v4323_v59  ;;  %1950 = vmatpush.msra.mxu2 %v5800_v52  ;;  %5803 = vst [vmem:[#allocation53_spill] sm:$0xff] %v4782_v9  ;;  %v5804_v46 = vld [vmem:[#allocation37_spill] sm:$0xff] }
 0x341   :  { %1857 = vmatpush.msrb.mxu0 %v5740_v1  ;;  %v1537_v31 = vsel %vm1536_vm0, %v2807_v37, %v1533_v48  ;;  %2808 = vtanh.f32 %v1550_v57  ;;  %v4691_v37 = vld [vmem:[#allocation9 + $0x120] sm:$0xff]  ;;  %v1630_v30 = vunpack.c.l.bf16 %v5804_v46 }
 0x342   :  { %1931 = vmatpush.msrb.mxu1 %v5742_v49  ;;  %1951 = vmatpush.msra.mxu2 %v5743_v35  ;;  %v1542_v60 = vsel %vm1539_vm1, %v1541_v42, %v1537_v31  ;;  %v4670_v49 = vld [vmem:[#allocation10 + $0x160] sm:$0xff] }
 0x343   :  { %1858 = vmatpush.msrb.mxu0 %v4342_v58  ;;  %v1552_v59 = vsub.f32 1.0, %v1542_v60  ;;  %v1554_v53 = vmul.f32 %v1542_v60, %v4511_v26  ;;  %v4661_v58 = vld [vmem:[#allocation10 + $0x178] sm:$0xff] }
 0x344   :  { %1932 = vmatpush.msrb.mxu1 %v4345_v39  ;;  %1952 = vmatpush.msra.mxu2 %v4348_v33  ;;  %v4664_v39 = vld [vmem:[#allocation9 + $0x168] sm:$0xff]  ;;  %v4667_v33 = vld [vmem:[#allocation9 + $0x170] sm:$0xff] }
 0x347   :  { %v2809_v32 = vpop.eup %2808 }
 0x348   :  { %v1553_v1 = vmul.f32 %v2809_v32, %v1552_v59 }
 0x34a   :  { %v1555_v29 = vadd.f32 %v1554_v53, %v1553_v1 }
 0x34c   :  { %v4656_v35 = vsel %vm1568_vm3, %v1555_v29, %v4511_v26  ;;  %v4673_v26 = vld [vmem:[#allocation9 + $0x150] sm:$0xff] }
 0x34d   :  { %1700 = vmatmul.f32.vlgmr.msra.gmra.mxu3 %v4656_v35  ;;  %1720 = vmatmul.f32.vlgmr.msra.gmra.mxu0 %v4656_v35 }
 0x34e   :  { %1740 = vmatmul.f32.vlgmr.msra.gmra.mxu1 %v4656_v35  ;;  %1957 = vmatpush.msra.mxu3 %v4661_v58 }
 0x34f   :  { %2036 = vmatpush.msra.mxu0 %v4664_v39  ;;  %2056 = vmatpush.msra.mxu1 %v4667_v33 }
 0x350   :  { %1958 = vmatpush.msra.mxu3 %v4670_v49 }
 0x351   :  { %2037 = vmatpush.msra.mxu0 %v4673_v26  ;;  %2057 = vmatpush.msra.mxu1 %v4676_v43 }
 0x352   :  { %1959 = vmatpush.msra.mxu3 %v4679_v61 }
 0x353   :  { %2038 = vmatpush.msra.mxu0 %v4682_v17  ;;  %2058 = vmatpush.msra.mxu1 %v4685_v15 }
 0x354   :  { %1960 = vmatpush.msra.mxu3 %v4688_v12 }
 0x355   :  { %2039 = vmatpush.msra.mxu0 %v4691_v37  ;;  %2059 = vmatpush.msra.mxu1 %v4694_v36 }
 0x356   :  { %1961 = vmatpush.msra.mxu3 %v4697_v3 }
 0x357   :  { %2040 = vmatpush.msra.mxu0 %v4700_v24  ;;  %2060 = vmatpush.msra.mxu1 %v4703_v6 }
 0x358   :  { %1962 = vmatpush.msra.mxu3 %v4706_v25 }
 0x359   :  { %2041 = vmatpush.msra.mxu0 %v4709_v38  ;;  %2061 = vmatpush.msra.mxu1 %v4712_v10 }
 0x35a   :  { %1963 = vmatpush.msra.mxu3 %v4379_v51  ;;  %v4730_v51 = vld [vmem:[#allocation9 + $0xa8] sm:$0xff] }
 0x35b   :  { %2042 = vmatpush.msra.mxu0 %v4716_v13  ;;  %2062 = vmatpush.msra.mxu1 %v4719_v54 }
 0x35c   :  { %1964 = vmatpush.msra.mxu3 %v5745_v34  ;;  %v4737_v34 = vld [vmem:[#allocation9 + $0x90] sm:$0xff] }
 0x35d   :  { %2043 = vmatpush.msra.mxu0 %v4723_v16  ;;  %2063 = vmatpush.msra.mxu1 %v4726_v28 }
 0x35e   :  { %1965 = vmatpush.msra.mxu3 %v5748_v19  ;;  %v4744_v19 = vld [vmem:[#allocation9 + $0x78] sm:$0xff] }
 0x35f   :  { %2044 = vmatpush.msra.mxu0 %v4730_v51  ;;  %2064 = vmatpush.msra.mxu1 %v4733_v45 }
 0x360   :  { %1966 = vmatpush.msra.mxu3 %v5751_v11  ;;  %v4751_v11 = vld [vmem:[#allocation9 + $0x60] sm:$0xff] }
 0x361   :  { %2045 = vmatpush.msra.mxu0 %v4737_v34  ;;  %2065 = vmatpush.msra.mxu1 %v4740_v44 }
 0x362   :  { %1967 = vmatpush.msra.mxu3 %v5754_v14  ;;  %v4758_v14 = vld [vmem:[#allocation9 + $0x48] sm:$0xff] }
 0x363   :  { %2046 = vmatpush.msra.mxu0 %v4744_v19  ;;  %2066 = vmatpush.msra.mxu1 %v4747_v40 }
 0x364   :  { %1968 = vmatpush.msra.mxu3 %v5757_v20  ;;  %v4765_v20 = vld [vmem:[#allocation9 + $0x30] sm:$0xff] }
 0x365   :  { %2047 = vmatpush.msra.mxu0 %v4751_v11  ;;  %2067 = vmatpush.msra.mxu1 %v4754_v8 }
 0x366   :  { %1969 = vmatpush.msra.mxu3 %v5760_v18  ;;  %v4772_v18 = vld [vmem:[#allocation9 + $0x18] sm:$0xff] }
 0x367   :  { %2048 = vmatpush.msra.mxu0 %v4758_v14  ;;  %2068 = vmatpush.msra.mxu1 %v4761_v23 }
 0x368   :  { %1970 = vmatpush.msra.mxu3 %v5763_v21  ;;  %v4779_v21 = vld [vmem:[#allocation9] sm:$0xff] }
 0x369   :  { %2049 = vmatpush.msra.mxu0 %v4765_v20  ;;  %2069 = vmatpush.msra.mxu1 %v4768_v47  ;;  %5802 = vst [vmem:[#allocation66_spill] sm:$0xff] %v4779_v21 }
 0x36a   :  { %1971 = vmatpush.msra.mxu3 %v5766_v62  ;;  %v1652_v62 = vrot.slane %v5804_v46, 4 }
 0x36b   :  { %2050 = vmatpush.msra.mxu0 %v4772_v18  ;;  %2070 = vmatpush.msra.mxu1 %v4775_v41 }
 0x36c   :  { %1972 = vmatpush.msra.mxu3 %v5769_v55  ;;  %v1654_v7 = vunpack.c.l.bf16 %v1652_v62 }
 0x36d   :  { %2051 = vmatpush.msra.mxu0 %v4779_v21  ;;  %2071 = vmatpush.msra.mxu1 %v4782_v9 }
 0x3a1   :  { %v1587_v22 = vpop.f32.mrf.mxu0  ;;  %v1607_v48 = vpop.f32.mrf.mxu1 }
 0x3a2   :  { %v1631_v57 = vadd.f32 %v1630_v30, %v1587_v22  ;;  %v1655_v52 = vadd.f32 %v1654_v7, %v1607_v48 }
 0x3a4   :  { %v2678_v42 = vmul.f32 -1.442695, %v1631_v57  ;;  %v2679_v31 = vmul.f32 -1.442695, %v1655_v52 }
 0x3a6   :  { %2810 = vpow2.f32 %v2678_v42 }
 0x3a7   :  { %2812 = vpow2.f32 %v2679_v31 }
 0x3a8   :  { %v1627_v22 = vpop.f32.mrf.mxu2 }
 0x3a9   :  { %v1675_v42 = vadd.f32 %v4569_v27, %v1627_v22 }
 0x3ac   :  { %v2811_v55 = vpop.eup %2810 }
 0x3ad   :  { %v2813_v60 = vpop.eup %2812  ;;  %v1635_v59 = vadd.f32 1.0, %v2811_v55 }
 0x3ae   :  { %v1659_v32 = vadd.f32 1.0, %v2813_v60  ;;  %v1677_v60 = vunpack.c.l.bf16 %v5774_v63 }
 0x3af   :  { %2814 = vrcp.f32 %v1635_v59  ;;  %v1647_v9 = vand.u32 2147483648, %v1635_v59  ;;  %v1645_v30 = vand.u32 2147483647, %v1635_v59  ;;  %vm1641_vm7 = vweird.f32 %v1635_v59 }
 0x3b0   :  { %2816 = vrcp.f32 %v1659_v32  ;;  %vm1665_vm14 = vweird.f32 %v1659_v32 }
 0x3b1   :  { %v1648_v57 = vor.u32 1.1754944e-38, %v1647_v9  ;;  %vm1646_vm11 = vcmp.eq.f32.partialorder %v1645_v30, 8.507059e+37  ;;  %v5805_v30 = vld [vmem:[#allocation25_spill] sm:$0xff] }
 0x3b2   :  { %v1768_v22 = vunpack.c.l.bf16 %v5805_v30 }
 0x3b5   :  { %v2815_v1 = vpop.eup %2814 }
 0x3b6   :  { %v2817_v53 = vpop.eup %2816  ;;  %v1637_v29 = vmul.f32 %v2815_v1, %v1635_v59  ;;  %vm1642_vm5 = vweird.f32 %v2815_v1 }
 0x3b7   :  { %v1661_v56 = vmul.f32 %v2817_v53, %v1659_v32  ;;  %vm1643_vm9 = vmor %vm1641_vm7, %vm1642_vm5  ;;  %vm1666_vm13 = vweird.f32 %v2817_v53 }
 0x3b8   :  { %v1638_v46 = vsub.f32 1.0, %v1637_v29  ;;  %vm1667_vm0 = vmor %vm1665_vm14, %vm1666_vm13 }
 0x3b9   :  { %v1662_v62 = vsub.f32 1.0, %v1661_v56  ;;  %v1671_v56 = vand.u32 2147483648, %v1659_v32 }
 0x3ba   :  { %v1639_v21 = vmul.f32 %v2815_v1, %v1638_v46  ;;  %v1669_v46 = vand.u32 2147483647, %v1659_v32 }
 0x3bb   :  { %v1663_v7 = vmul.f32 %v2817_v53, %v1662_v62 }
 0x3bc   :  { %v1640_v48 = vadd.f32 %v2815_v1, %v1639_v21  ;;  %v1672_v21 = vor.u32 1.1754944e-38, %v1671_v56  ;;  %vm1670_vm1 = vcmp.eq.f32.partialorder %v1669_v46, 8.507059e+37  ;;  %v4815_v46 = vld [vmem:[#allocation10 + $0x158] sm:$0xff] }
 0x3bd   :  { %v1664_v31 = vadd.f32 %v2817_v53, %v1663_v7 }
 0x3be   :  { %v1644_v52 = vsel %vm1643_vm9, %v2815_v1, %v1640_v48 }
 0x3bf   :  { %v1649_v55 = vsel %vm1646_vm11, %v1648_v57, %v1644_v52  ;;  %v1668_v41 = vsel %vm1667_vm0, %v2817_v53, %v1664_v31  ;;  %v1745_v52 = vrot.slane %v5773_v2, 4 }
 0x3c0   :  { %v1676_v29 = vmul.f32 %v1675_v42, %v1649_v55  ;;  %v1673_v9 = vsel %vm1670_vm1, %v1672_v21, %v1668_v41  ;;  %v4800_v55 = vld [vmem:[#allocation9 + $0x178] sm:$0xff] }
 0x3c1   :  { %v1680_v59 = vsub.f32 1.0, %v1673_v9  ;;  %v1682_v57 = vmul.f32 %v1673_v9, %v4581_v0  ;;  %v1747_v41 = vunpack.c.l.bf16 %v1745_v52  ;;  %v4821_v9 = vld [vmem:[#allocation10 + $0x138] sm:$0xff]  ;;  %v4845_v52 = vld [vmem:[#allocation10 + $0x110] sm:$0xff] }
 0x3c2   :  { %v1678_v62 = vadd.f32 %v1677_v60, %v1676_v29  ;;  %v4803_v60 = vld [vmem:[#allocation10 + $0x168] sm:$0xff]  ;;  %v4812_v29 = vld [vmem:[#allocation10 + $0x150] sm:$0xff]  ;;  %5806 = vst [vmem:[#allocation57_spill] sm:$0xff] %v4821_v9 }
 0x3c3   :  { %5813 = vst [vmem:[#allocation26_spill] sm:$0xff] %v4845_v52 }
 0x3c4   :  { %2818 = vtanh.f32 %v1678_v62  ;;  %v4818_v62 = vld [vmem:[#allocation9 + $0x148] sm:$0xff] }
 0x3ca   :  { %v2819_v1 = vpop.eup %2818  ;;  %v1721_v48 = vpop.f32.mrf.mxu0 }
 0x3cb   :  { %v1681_v7 = vmul.f32 %v2819_v1, %v1680_v59  ;;  %v1769_v63 = vadd.f32 %v1768_v22, %v1721_v48  ;;  %v4824_v59 = vld [vmem:[#allocation10 + $0x140] sm:$0xff]  ;;  %v4829_v22 = vld [vmem:[#allocation9 + $0x130] sm:$0xff]  ;;  %v4835_v48 = vld [vmem:[#allocation10 + $0x128] sm:$0xff] }
 0x3cc   :  { %5807 = vst [vmem:[#allocation55_spill] sm:$0xff] %v4824_v59 }
 0x3cd   :  { %v1683_v42 = vadd.f32 %v1682_v57, %v1681_v7  ;;  %v2681_v32 = vmul.f32 -1.442695, %v1769_v63  ;;  %5808 = vst [vmem:[#allocation56_spill] sm:$0xff] %v4829_v22  ;;  %v4832_v7 = vld [vmem:[#allocation10 + $0x120] sm:$0xff]  ;;  %v4838_v57 = vld [vmem:[#allocation9 + $0x118] sm:$0xff]  ;;  %v4842_v63 = vld [vmem:[#allocation10 + $0x108] sm:$0xff] }
 0x3ce   :  { %5809 = vst [vmem:[#allocation61_spill] sm:$0xff] %v4832_v7 }
 0x3cf   :  { %v4795_v53 = vsel %vm1568_vm3, %v1683_v42, %v4581_v0  ;;  %2820 = vpow2.f32 %v2681_v32  ;;  %v4806_v0 = vld [vmem:[#allocation10 + $0x170] sm:$0xff]  ;;  %5810 = vst [vmem:[#allocation77_spill] sm:$0xff] %v4835_v48  ;;  %v4848_v42 = vld [vmem:[#allocation9 + $0x100] sm:$0xff] }
 0x3d0   :  { %1819 = vmatmul.f32.vlgmr.msrb.gmra.mxu2 %v4795_v53  ;;  %1839 = vmatmul.f32.vlgmr.msrb.gmra.mxu3 %v4795_v53  ;;  %v1701_v31 = vpop.f32.mrf.mxu3  ;;  %5811 = vst [vmem:[#allocation82_spill] sm:$0xff] %v4838_v57 }
 0x3d1   :  { %1859 = vmatmul.f32.vlgmr.msrb.gmra.mxu0 %v4795_v53  ;;  %2076 = vmatpush.msrb.mxu2 %v4800_v55  ;;  %v1748_v2 = vadd.f32 %v1747_v41, %v1701_v31  ;;  %5812 = vst [vmem:[#allocation93_spill] sm:$0xff] %v4842_v63  ;;  %v4851_v41 = vld [vmem:[#allocation10 + $0xf0] sm:$0xff]  ;;  %v4854_v31 = vld [vmem:[#allocation10 + $0xf8] sm:$0xff] }
 0x3d2   :  { %2150 = vmatpush.msrb.mxu3 %v4803_v60  ;;  %2170 = vmatpush.msrb.mxu0 %v4806_v0  ;;  %5814 = vst [vmem:[#allocation94_spill] sm:$0xff] %v4848_v42 }
 0x3d3   :  { %2077 = vmatpush.msrb.mxu2 %v4809_v50  ;;  %v2680_v56 = vmul.f32 -1.442695, %v1748_v2  ;;  %5815 = vst [vmem:[#allocation95_spill] sm:$0xff] %v4851_v41 }
 0x3d4   :  { %2151 = vmatpush.msrb.mxu3 %v4812_v29  ;;  %2171 = vmatpush.msrb.mxu0 %v4815_v46  ;;  %5816 = vst [vmem:[#allocation97_spill] sm:$0xff] %v4854_v31 }
 0x3d5   :  { %2078 = vmatpush.msrb.mxu2 %v4818_v62  ;;  %v2821_v21 = vpop.eup %2820  ;;  %2822 = vpow2.f32 %v2680_v56  ;;  %v4859_v56 = vld [vmem:[#allocation9 + $0xe8] sm:$0xff] }
 0x3d6   :  { %2152 = vmatpush.msrb.mxu3 %v4821_v9  ;;  %2172 = vmatpush.msrb.mxu0 %v4824_v59  ;;  %v4827_v1 = vadd.f32 1.0, %v2821_v21  ;;  %5817 = vst [vmem:[#allocation29_spill] sm:$0xff] %v4859_v56  ;;  %v4862_v21 = vld [vmem:[#allocation10 + $0xd8] sm:$0xff]  ;;  %v4931_v59 = vld [vmem:[#allocation9 + $0x40] sm:$0xff]  ;;  %v4936_v9 = vld [vmem:[#allocation10 + $0x30] sm:$0xff] }
 0x3d7   :  { %2079 = vmatpush.msrb.mxu2 %v4829_v22  ;;  %5818 = vst [vmem:[#allocation31_spill] sm:$0xff] %v4862_v21  ;;  %v4920_v22 = vld [vmem:[#allocation9 + $0x58] sm:$0xff] }
 0x3d8   :  { %2153 = vmatpush.msrb.mxu3 %v4832_v7  ;;  %2173 = vmatpush.msrb.mxu0 %v4835_v48  ;;  %2824 = vrcp.f32 %v4827_v1  ;;  %v4910_v48 = vld [vmem:[#allocation9 + $0x70] sm:$0xff]  ;;  %v4913_v7 = vld [vmem:[#allocation10 + $0x60] sm:$0xff]  ;;  %5835 = vst [vmem:[#allocation44_spill] sm:$0xff] %v4920_v22  ;;  %vm1779_vm13 = vweird.f32 %v4827_v1 }
 0x3d9   :  { %2080 = vmatpush.msrb.mxu2 %v4838_v57  ;;  %v4904_v57 = vld [vmem:[#allocation10 + $0x78] sm:$0xff]  ;;  %5832 = vst [vmem:[#allocation46_spill] sm:$0xff] %v4910_v48 }
 0x3da   :  { %2154 = vmatpush.msrb.mxu3 %v4842_v63  ;;  %2174 = vmatpush.msrb.mxu0 %v4845_v52  ;;  %v4886_v52 = vld [vmem:[#allocation10 + $0xb0] sm:$0xff]  ;;  %v4900_v63 = vld [vmem:[#allocation9 + $0x88] sm:$0xff]  ;;  %5830 = vst [vmem:[#allocation39_spill] sm:$0xff] %v4904_v57 }
 0x3db   :  { %2081 = vmatpush.msrb.mxu2 %v4848_v42  ;;  %v2823_v32 = vpop.eup %2822  ;;  %v4865_v42 = vld [vmem:[#allocation10 + $0xe0] sm:$0xff]  ;;  %5825 = vst [vmem:[#allocation100_spill] sm:$0xff] %v4886_v52 }
 0x3dc   :  { %2155 = vmatpush.msrb.mxu3 %v4851_v41  ;;  %2175 = vmatpush.msrb.mxu0 %v4854_v31  ;;  %v4857_v2 = vadd.f32 1.0, %v2823_v32  ;;  %5819 = vst [vmem:[#allocation98_spill] sm:$0xff] %v4865_v42  ;;  %v4869_v41 = vld [vmem:[#allocation9 + $0xd0] sm:$0xff]  ;;  %v4874_v31 = vld [vmem:[#allocation10 + $0xc0] sm:$0xff] }
 0x3dd   :  { %2082 = vmatpush.msrb.mxu2 %v4859_v56  ;;  %5820 = vst [vmem:[#allocation35_spill] sm:$0xff] %v4869_v41  ;;  %v4877_v56 = vld [vmem:[#allocation10 + $0xc8] sm:$0xff] }
 0x3de   :  { %2156 = vmatpush.msrb.mxu3 %v4862_v21  ;;  %2176 = vmatpush.msrb.mxu0 %v4865_v42  ;;  %2826 = vrcp.f32 %v4857_v2  ;;  %v4872_v32 = vpop.eup %2824  ;;  %5821 = vst [vmem:[#allocation34_spill] sm:$0xff] %v4874_v31  ;;  %v4880_v21 = vld [vmem:[#allocation9 + $0xb8] sm:$0xff]  ;;  %v4883_v42 = vld [vmem:[#allocation10 + $0xa8] sm:$0xff]  ;;  %vm1758_vm5 = vweird.f32 %v4857_v2 }
 0x3df   :  { %2083 = vmatpush.msrb.mxu2 %v4869_v41  ;;  %5822 = vst [vmem:[#allocation99_spill] sm:$0xff] %v4877_v56  ;;  %v1775_v41 = vmul.f32 %v4872_v32, %v4827_v1  ;;  %vm1780_vm11 = vweird.f32 %v4872_v32 }
 0x3e0   :  { %2157 = vmatpush.msrb.mxu3 %v4874_v31  ;;  %2177 = vmatpush.msrb.mxu0 %v4877_v56  ;;  %5823 = vst [vmem:[#allocation38_spill] sm:$0xff] %v4880_v21  ;;  %v4891_v31 = vld [vmem:[#allocation9 + $0xa0] sm:$0xff]  ;;  %v4894_v56 = vld [vmem:[#allocation10 + $0x90] sm:$0xff]  ;;  %vm1781_vm14 = vmor %vm1779_vm13, %vm1780_vm11 }
 0x3e1   :  { %2084 = vmatpush.msrb.mxu2 %v4880_v21  ;;  %5824 = vst [vmem:[#allocation47_spill] sm:$0xff] %v4883_v42  ;;  %v4897_v21 = vld [vmem:[#allocation10 + $0x98] sm:$0xff] }
 0x3e2   :  { %2158 = vmatpush.msrb.mxu3 %v4883_v42  ;;  %2178 = vmatpush.msrb.mxu0 %v4886_v52  ;;  %5826 = vst [vmem:[#allocation36_spill] sm:$0xff] %v4891_v31 }
 0x3e3   :  { %2085 = vmatpush.msrb.mxu2 %v4891_v31  ;;  %5827 = vst [vmem:[#allocation41_spill] sm:$0xff] %v4894_v56  ;;  %v4907_v31 = vld [vmem:[#allocation10 + $0x80] sm:$0xff] }
 0x3e4   :  { %2159 = vmatpush.msrb.mxu3 %v4894_v56  ;;  %5828 = vst [vmem:[#allocation101_spill] sm:$0xff] %v4897_v21  ;;  %2179 = vmatpush.msrb.mxu0 %v4897_v21  ;;  %v2827_v42 = vpop.eup %2826  ;;  %v1776_v56 = vsub.f32 1.0, %v1775_v41 }
 0x3e5   :  { %5829 = vst [vmem:[#allocation58_spill] sm:$0xff] %v4900_v63  ;;  %2086 = vmatpush.msrb.mxu2 %v4900_v63  ;;  %v1754_v52 = vmul.f32 %v2827_v42, %v4857_v2  ;;  %v4916_v63 = vld [vmem:[#allocation10 + $0x68] sm:$0xff]  ;;  %vm1759_vm3 = vweird.f32 %v2827_v42 }
 0x3e6   :  { %2160 = vmatpush.msrb.mxu3 %v4904_v57  ;;  %5831 = vst [vmem:[#allocation102_spill] sm:$0xff] %v4907_v31  ;;  %2180 = vmatpush.msrb.mxu0 %v4907_v31  ;;  %v1764_v57 = vand.u32 2147483648, %v4857_v2  ;;  %v1762_v31 = vand.u32 2147483647, %v4857_v2  ;;  %vm1760_vm7 = vmor %vm1758_vm5, %vm1759_vm3  ;;  %v4947_v2 = vld [vmem:[#allocation10 + $0x18] sm:$0xff] }
 0x3e7   :  { %2087 = vmatpush.msrb.mxu2 %v4910_v48  ;;  %v1755_v21 = vsub.f32 1.0, %v1754_v52  ;;  %5833 = vst [vmem:[#allocation60_spill] sm:$0xff] %v4913_v7  ;;  %v4924_v48 = vld [vmem:[#allocation10 + $0x48] sm:$0xff]  ;;  %v4927_v52 = vld [vmem:[#allocation10 + $0x50] sm:$0xff] }
 0x3e8   :  { %2161 = vmatpush.msrb.mxu3 %v4913_v7  ;;  %5834 = vst [vmem:[#allocation103_spill] sm:$0xff] %v4916_v63  ;;  %2181 = vmatpush.msrb.mxu0 %v4916_v63  ;;  %v1777_v63 = vmul.f32 %v4872_v32, %v1776_v56  ;;  %v1741_v7 = vpop.f32.mrf.mxu1  ;;  %v1765_v56 = vor.u32 1.1754944e-38, %v1764_v57  ;;  %vm1763_vm9 = vcmp.eq.f32.partialorder %v1762_v31, 8.507059e+37  ;;  %v4959_v31 = vld [vmem:[#allocation10] sm:$0xff] }
 0x3e9   :  { %2088 = vmatpush.msrb.mxu2 %v4920_v22  ;;  %v1756_v41 = vmul.f32 %v2827_v42, %v1755_v21  ;;  %5836 = vst [vmem:[#allocation50_spill] sm:$0xff] %v4924_v48  ;;  %v1792_v21 = vrot.slane %v5805_v30, 4  ;;  %v1789_v30 = vadd.f32 %v4629_v4, %v1741_v7 }
 0x3ea   :  { %2162 = vmatpush.msrb.mxu3 %v4924_v48  ;;  %5837 = vst [vmem:[#allocation104_spill] sm:$0xff] %v4927_v52  ;;  %2182 = vmatpush.msrb.mxu0 %v4927_v52  ;;  %v4939_v48 = vld [vmem:[#allocation10 + $0x38] sm:$0xff]  ;;  %v4943_v52 = vld [vmem:[#allocation9 + $0x28] sm:$0xff]  ;;  %v1778_v57 = vadd.f32 %v4872_v32, %v1777_v63  ;;  %v1783_v63 = vand.u32 2147483647, %v4827_v1 }
 0x3eb   :  { %5838 = vst [vmem:[#allocation62_spill] sm:$0xff] %v4931_v59  ;;  %2089 = vmatpush.msrb.mxu2 %v4931_v59  ;;  %v1757_v22 = vadd.f32 %v2827_v42, %v1756_v41  ;;  %v4955_v59 = vld [vmem:[#allocation9 + $0x10] sm:$0xff]  ;;  %v1794_v7 = vunpack.c.l.bf16 %v1792_v21 }
 0x3ec   :  { %5839 = vst [vmem:[#allocation48_spill] sm:$0xff] %v4936_v9  ;;  %2163 = vmatpush.msrb.mxu3 %v4936_v9  ;;  %2183 = vmatpush.msrb.mxu0 %v4939_v48  ;;  %v4950_v9 = vld [vmem:[#allocation10 + $0x20] sm:$0xff]  ;;  %vm1784_vm0 = vcmp.eq.f32.partialorder %v1783_v63, 8.507059e+37 }
 0x3ed   :  { %5840 = vst [vmem:[#allocation105_spill] sm:$0xff] %v4939_v48  ;;  %2090 = vmatpush.msrb.mxu2 %v4943_v52  ;;  %v1761_v41 = vsel %vm1760_vm7, %v2827_v42, %v1757_v22  ;;  %v1785_v22 = vand.u32 2147483648, %v4827_v1 }
 0x3ee   :  { %5841 = vst [vmem:[#allocation52_spill] sm:$0xff] %v4943_v52  ;;  %2164 = vmatpush.msrb.mxu3 %v4947_v2  ;;  %2184 = vmatpush.msrb.mxu0 %v4950_v9  ;;  %v1766_v48 = vsel %vm1763_vm9, %v1765_v56, %v1761_v41  ;;  %v1782_v41 = vsel %vm1781_vm14, %v4872_v32, %v1778_v57 }
 0x3ef   :  { %5842 = vst [vmem:[#allocation64_spill] sm:$0xff] %v4947_v2  ;;  %2091 = vmatpush.msrb.mxu2 %v4955_v59  ;;  %v1790_v42 = vmul.f32 %v1789_v30, %v1766_v48  ;;  %v4962_v2 = vld [vmem:[#allocation10 + $0x8] sm:$0xff]  ;;  %v1786_v21 = vor.u32 1.1754944e-38, %v1785_v22 }
 0x3f0   :  { %5843 = vst [vmem:[#allocation33_spill] sm:$0xff] %v4950_v9  ;;  %2165 = vmatpush.msrb.mxu3 %v4959_v31  ;;  %2185 = vmatpush.msrb.mxu0 %v4962_v2 }
 0x3f1   :  { %5844 = vst [vmem:[#allocation49_spill] sm:$0xff] %v4955_v59  ;;  %v1795_v56 = vadd.f32 %v1794_v7, %v1790_v42  ;;  %v1787_v48 = vsel %vm1784_vm0, %v1786_v21, %v1782_v41  ;;  %v5851_v21 = vld [vmem:[#allocation59_spill] sm:$0xff] }
 0x3f2   :  { %5845 = vst [vmem:[#allocation40_spill] sm:$0xff] %v4959_v31  ;;  %v1797_v30 = vsub.f32 1.0, %v1787_v48  ;;  %v1799_v31 = vmul.f32 %v1787_v48, %v4656_v35  ;;  %v1910_v48 = vunpack.c.l.bf16 %v5851_v21  ;;  %v5869_v21 = vld [vmem:[#allocation35_spill] sm:$0xff] }
 0x3f3   :  { %5846 = vst [vmem:[#allocation22_spill] sm:$0xff] %v4962_v2  ;;  %2828 = vtanh.f32 %v1795_v56 }
 0x3f9   :  { %v2829_v59 = vpop.eup %2828 }
 0x3fa   :  { %v1798_v9 = vmul.f32 %v2829_v59, %v1797_v30 }
 0x3fc   :  { %v1800_v52 = vadd.f32 %v1799_v31, %v1798_v9 }
 0x3fe   :  { %v4972_v2 = vsel %vm1561_vm4, %v1800_v52, %v4656_v35  ;;  %v5000_v35 = vld [vmem:[#allocation10 + $0xd0] sm:$0xff] }
 0x3ff   :  { %1933 = vmatmul.f32.vlgmr.msrb.gmra.mxu1 %v4972_v2  ;;  %1953 = vmatmul.f32.vlgmr.msra.gmra.mxu2 %v4972_v2 }
 0x400   :  { %1973 = vmatmul.f32.vlgmr.msra.gmra.mxu3 %v4972_v2  ;;  %2190 = vmatpush.msrb.mxu1 %v4661_v58 }
 0x401   :  { %2269 = vmatpush.msra.mxu2 %v4664_v39  ;;  %2289 = vmatpush.msra.mxu3 %v4667_v33  ;;  %v5005_v39 = vld [vmem:[#allocation10 + $0xb8] sm:$0xff]  ;;  %v5010_v33 = vld [vmem:[#allocation10 + $0xa0] sm:$0xff] }
 0x402   :  { %2191 = vmatpush.msrb.mxu1 %v4670_v49 }
 0x403   :  { %2270 = vmatpush.msra.mxu2 %v4673_v26  ;;  %2290 = vmatpush.msra.mxu3 %v4676_v43  ;;  %v5015_v26 = vld [vmem:[#allocation10 + $0x88] sm:$0xff]  ;;  %v5020_v43 = vld [vmem:[#allocation10 + $0x70] sm:$0xff] }
 0x404   :  { %2192 = vmatpush.msrb.mxu1 %v4679_v61 }
 0x405   :  { %2271 = vmatpush.msra.mxu2 %v4682_v17  ;;  %2291 = vmatpush.msra.mxu3 %v4685_v15  ;;  %v5025_v17 = vld [vmem:[#allocation10 + $0x58] sm:$0xff]  ;;  %v5030_v15 = vld [vmem:[#allocation10 + $0x40] sm:$0xff] }
 0x406   :  { %2193 = vmatpush.msrb.mxu1 %v4688_v12 }
 0x407   :  { %2272 = vmatpush.msra.mxu2 %v4691_v37  ;;  %2292 = vmatpush.msra.mxu3 %v4694_v36  ;;  %v5035_v37 = vld [vmem:[#allocation10 + $0x28] sm:$0xff]  ;;  %v5847_v36 = vld [vmem:[#allocation54_spill] sm:$0xff] }
 0x408   :  { %2194 = vmatpush.msrb.mxu1 %v4697_v3 }
 0x409   :  { %2273 = vmatpush.msra.mxu2 %v4700_v24  ;;  %2293 = vmatpush.msra.mxu3 %v4703_v6  ;;  %v5040_v24 = vld [vmem:[#allocation10 + $0x10] sm:$0xff] }
 0x40a   :  { %2195 = vmatpush.msrb.mxu1 %v4706_v25  ;;  %v5848_v6 = vld [vmem:[#allocation66_spill] sm:$0xff] }
 0x40b   :  { %2274 = vmatpush.msra.mxu2 %v4709_v38  ;;  %2294 = vmatpush.msra.mxu3 %v4712_v10  ;;  %v5849_v38 = vld [vmem:[#allocation53_spill] sm:$0xff]  ;;  %v5850_v10 = vld [vmem:[#allocation43_spill] sm:$0xff] }
 0x40c   :  { %2196 = vmatpush.msrb.mxu1 %v4995_v5 }
 0x40d   :  { %2275 = vmatpush.msra.mxu2 %v4716_v13  ;;  %2295 = vmatpush.msra.mxu3 %v4719_v54  ;;  %v1885_v13 = vrot.slane %v5850_v10, 4  ;;  %v1863_v54 = vunpack.c.l.bf16 %v5850_v10 }
 0x40e   :  { %2197 = vmatpush.msrb.mxu1 %v5000_v35 }
 0x40f   :  { %2276 = vmatpush.msra.mxu2 %v4723_v16  ;;  %2296 = vmatpush.msra.mxu3 %v4726_v28  ;;  %v1887_v16 = vunpack.c.l.bf16 %v1885_v13 }
 0x410   :  { %2198 = vmatpush.msrb.mxu1 %v5005_v39 }
 0x411   :  { %2277 = vmatpush.msra.mxu2 %v4730_v51  ;;  %2297 = vmatpush.msra.mxu3 %v4733_v45 }
 0x412   :  { %2199 = vmatpush.msrb.mxu1 %v5010_v33 }
 0x413   :  { %2278 = vmatpush.msra.mxu2 %v4737_v34  ;;  %2298 = vmatpush.msra.mxu3 %v4740_v44 }
 0x414   :  { %2200 = vmatpush.msrb.mxu1 %v5015_v26 }
 0x415   :  { %2279 = vmatpush.msra.mxu2 %v4744_v19  ;;  %2299 = vmatpush.msra.mxu3 %v4747_v40 }
 0x416   :  { %2201 = vmatpush.msrb.mxu1 %v5020_v43 }
 0x417   :  { %2280 = vmatpush.msra.mxu2 %v4751_v11  ;;  %2300 = vmatpush.msra.mxu3 %v4754_v8 }
 0x418   :  { %2202 = vmatpush.msrb.mxu1 %v5025_v17 }
 0x419   :  { %2281 = vmatpush.msra.mxu2 %v4758_v14  ;;  %2301 = vmatpush.msra.mxu3 %v4761_v23 }
 0x41a   :  { %2203 = vmatpush.msrb.mxu1 %v5030_v15 }
 0x41b   :  { %2282 = vmatpush.msra.mxu2 %v4765_v20  ;;  %2302 = vmatpush.msra.mxu3 %v4768_v47 }
 0x41c   :  { %2204 = vmatpush.msrb.mxu1 %v5035_v37 }
 0x41d   :  { %2283 = vmatpush.msra.mxu2 %v4772_v18  ;;  %2303 = vmatpush.msra.mxu3 %v5847_v36 }
 0x41e   :  { %2205 = vmatpush.msrb.mxu1 %v5040_v24 }
 0x41f   :  { %2284 = vmatpush.msra.mxu2 %v5848_v6  ;;  %2304 = vmatpush.msra.mxu3 %v5849_v38 }
 0x44e   :  { %v1860_v57 = vpop.f32.mrf.mxu0 }
 0x44f   :  { %v1908_v31 = vadd.f32 %v4569_v27, %v1860_v57 }
 0x453   :  { %v1820_v28 = vpop.f32.mrf.mxu2  ;;  %v1840_v51 = vpop.f32.mrf.mxu3 }
 0x454   :  { %v1864_v45 = vadd.f32 %v1863_v54, %v1820_v28  ;;  %v1888_v34 = vadd.f32 %v1887_v16, %v1840_v51  ;;  %v5852_v54 = vld [vmem:[#allocation28_spill] sm:$0xff] }
 0x455   :  { %v1978_v16 = vrot.slane %v5852_v54, 4 }
 0x456   :  { %v2682_v44 = vmul.f32 -1.442695, %v1864_v45  ;;  %v2683_v19 = vmul.f32 -1.442695, %v1888_v34 }
 0x457   :  { %v1980_v45 = vunpack.c.l.bf16 %v1978_v16  ;;  %v5875_v16 = vld [vmem:[#allocation36_spill] sm:$0xff] }
 0x458   :  { %2830 = vpow2.f32 %v2682_v44 }
 0x459   :  { %2832 = vpow2.f32 %v2683_v19 }
 0x45e   :  { %v2831_v40 = vpop.eup %2830 }
 0x45f   :  { %v2833_v11 = vpop.eup %2832  ;;  %v1868_v8 = vadd.f32 1.0, %v2831_v40 }
 0x460   :  { %v1892_v14 = vadd.f32 1.0, %v2833_v11 }
 0x461   :  { %2834 = vrcp.f32 %v1868_v8  ;;  %v1880_v59 = vand.u32 2147483648, %v1868_v8  ;;  %v1878_v52 = vand.u32 2147483647, %v1868_v8  ;;  %vm1874_vm1 = vweird.f32 %v1868_v8 }
 0x462   :  { %2836 = vrcp.f32 %v1892_v14  ;;  %v1904_v36 = vand.u32 2147483648, %v1892_v14  ;;  %vm1898_vm9 = vweird.f32 %v1892_v14  ;;  %v1902_v6 = vand.u32 2147483647, %v1892_v14 }
 0x463   :  { %v1881_v42 = vor.u32 1.1754944e-38, %v1880_v59  ;;  %vm1879_vm5 = vcmp.eq.f32.partialorder %v1878_v52, 8.507059e+37  ;;  %v5857_v52 = vld [vmem:[#allocation56_spill] sm:$0xff] }
 0x464   :  { %v1905_v13 = vor.u32 1.1754944e-38, %v1904_v36  ;;  %vm1903_vm13 = vcmp.eq.f32.partialorder %v1902_v6, 8.507059e+37  ;;  %v5871_v36 = vld [vmem:[#allocation99_spill] sm:$0xff]  ;;  %v5872_v6 = vld [vmem:[#allocation38_spill] sm:$0xff] }
 0x467   :  { %v2835_v23 = vpop.eup %2834 }
 0x468   :  { %v2837_v20 = vpop.eup %2836  ;;  %v1870_v47 = vmul.f32 %v2835_v23, %v1868_v8  ;;  %vm1875_vm4 = vweird.f32 %v2835_v23 }
 0x469   :  { %v1894_v18 = vmul.f32 %v2837_v20, %v1892_v14  ;;  %vm1876_vm3 = vmor %vm1874_vm1, %vm1875_vm4  ;;  %vm1899_vm7 = vweird.f32 %v2837_v20  ;;  %v5879_v14 = vld [vmem:[#allocation39_spill] sm:$0xff] }
 0x46a   :  { %v1871_v9 = vsub.f32 1.0, %v1870_v47  ;;  %vm1900_vm11 = vmor %vm1898_vm9, %vm1899_vm7 }
 0x46b   :  { %v1895_v1 = vsub.f32 1.0, %v1894_v18 }
 0x46c   :  { %v1872_v32 = vmul.f32 %v2835_v23, %v1871_v9 }
 0x46d   :  { %v1896_v7 = vmul.f32 %v2837_v20, %v1895_v1  ;;  %v5855_v1 = vld [vmem:[#allocation57_spill] sm:$0xff] }
 0x46e   :  { %v1873_v22 = vadd.f32 %v2835_v23, %v1872_v32  ;;  %v5856_v32 = vld [vmem:[#allocation55_spill] sm:$0xff] }
 0x46f   :  { %v1897_v41 = vadd.f32 %v2837_v20, %v1896_v7  ;;  %v5864_v7 = vld [vmem:[#allocation95_spill] sm:$0xff] }
 0x470   :  { %v1877_v63 = vsel %vm1876_vm3, %v2835_v23, %v1873_v22  ;;  %v5865_v22 = vld [vmem:[#allocation97_spill] sm:$0xff] }
 0x471   :  { %v1882_v56 = vsel %vm1879_vm5, %v1881_v42, %v1877_v63  ;;  %v1901_v10 = vsel %vm1900_vm11, %v2837_v20, %v1897_v41  ;;  %v5854_v20 = vld [vmem:[#allocation20_spill] sm:$0xff]  ;;  %v5867_v63 = vld [vmem:[#allocation31_spill] sm:$0xff] }
 0x472   :  { %v1909_v30 = vmul.f32 %v1908_v31, %v1882_v56  ;;  %v1906_v27 = vsel %vm1903_vm13, %v1905_v13, %v1901_v10  ;;  %v2001_v47 = vunpack.c.l.bf16 %v5854_v20  ;;  %v5866_v31 = vld [vmem:[#allocation29_spill] sm:$0xff]  ;;  %v5868_v56 = vld [vmem:[#allocation98_spill] sm:$0xff]  ;;  %v5873_v10 = vld [vmem:[#allocation47_spill] sm:$0xff] }
 0x473   :  { %v1913_v28 = vsub.f32 1.0, %v1906_v27  ;;  %v1915_v19 = vmul.f32 %v1906_v27, %v4795_v53  ;;  %v5874_v13 = vld [vmem:[#allocation100_spill] sm:$0xff] }
 0x474   :  { %v1911_v38 = vadd.f32 %v1910_v48, %v1909_v30  ;;  %v5870_v30 = vld [vmem:[#allocation34_spill] sm:$0xff] }
 0x476   :  { %2838 = vtanh.f32 %v1911_v38 }
 0x47c   :  { %v2839_v51 = vpop.eup %2838  ;;  %v1934_v34 = vpop.f32.mrf.mxu1 }
 0x47d   :  { %v1914_v44 = vmul.f32 %v2839_v51, %v1913_v28  ;;  %v1981_v40 = vadd.f32 %v1980_v45, %v1934_v34  ;;  %v5876_v51 = vld [vmem:[#allocation41_spill] sm:$0xff] }
 0x47e   :  { %v5877_v45 = vld [vmem:[#allocation101_spill] sm:$0xff] }
 0x47f   :  { %v1916_v11 = vadd.f32 %v1915_v19, %v1914_v44  ;;  %v2684_v8 = vmul.f32 -1.442695, %v1981_v40  ;;  %v2025_v44 = vrot.slane %v5854_v20, 4  ;;  %v5878_v40 = vld [vmem:[#allocation58_spill] sm:$0xff]  ;;  %v5882_v20 = vld [vmem:[#allocation60_spill] sm:$0xff] }
 0x481   :  { %v5054_v23 = vsel %vm1315_vm6, %v1916_v11, %v4795_v53  ;;  %2840 = vpow2.f32 %v2684_v8 }
 0x482   :  { %2052 = vmatmul.f32.vlgmr.msra.gmra.mxu0 %v5054_v23  ;;  %2072 = vmatmul.f32.vlgmr.msra.gmra.mxu1 %v5054_v23  ;;  %v1954_v18 = vpop.f32.mrf.mxu2 }
 0x483   :  { %2092 = vmatmul.f32.vlgmr.msrb.gmra.mxu2 %v5054_v23  ;;  %2309 = vmatpush.msra.mxu0 %v4800_v55  ;;  %v2002_v9 = vadd.f32 %v2001_v47, %v1954_v18  ;;  %v1974_v19 = vpop.f32.mrf.mxu3  ;;  %v5880_v47 = vld [vmem:[#allocation102_spill] sm:$0xff] }
 0x484   :  { %2383 = vmatpush.msra.mxu1 %v4803_v60  ;;  %2403 = vmatpush.msrb.mxu2 %v4806_v0  ;;  %v5858_v60 = vld [vmem:[#allocation61_spill] sm:$0xff] }
 0x485   :  { %2310 = vmatpush.msra.mxu0 %v4809_v50  ;;  %v2685_v53 = vmul.f32 -1.442695, %v2002_v9  ;;  %v5859_v0 = vld [vmem:[#allocation77_spill] sm:$0xff]  ;;  %v5860_v50 = vld [vmem:[#allocation82_spill] sm:$0xff] }
 0x486   :  { %2384 = vmatpush.msra.mxu1 %v4812_v29  ;;  %2404 = vmatpush.msrb.mxu2 %v4815_v46  ;;  %v5861_v29 = vld [vmem:[#allocation93_spill] sm:$0xff]  ;;  %v5862_v46 = vld [vmem:[#allocation26_spill] sm:$0xff] }
 0x487   :  { %2311 = vmatpush.msra.mxu0 %v4818_v62  ;;  %v2841_v59 = vpop.eup %2840  ;;  %2842 = vpow2.f32 %v2685_v53  ;;  %v5863_v62 = vld [vmem:[#allocation94_spill] sm:$0xff] }
 0x488   :  { %2385 = vmatpush.msra.mxu1 %v5855_v1  ;;  %2405 = vmatpush.msrb.mxu2 %v5856_v32  ;;  %v1985_v55 = vadd.f32 1.0, %v2841_v59  ;;  %v5881_v9 = vld [vmem:[#allocation46_spill] sm:$0xff]  ;;  %v2022_v1 = vadd.f32 %v4629_v4, %v1974_v19  ;;  %v5883_v32 = vld [vmem:[#allocation103_spill] sm:$0xff] }
 0x489   :  { %2312 = vmatpush.msra.mxu0 %v5857_v52  ;;  %v2027_v52 = vunpack.c.l.bf16 %v2025_v44 }
 0x48a   :  { %2386 = vmatpush.msra.mxu1 %v5858_v60  ;;  %2406 = vmatpush.msrb.mxu2 %v5859_v0  ;;  %2844 = vrcp.f32 %v1985_v55  ;;  %v1997_v54 = vand.u32 2147483648, %v1985_v55  ;;  %v1995_v28 = vand.u32 2147483647, %v1985_v55  ;;  %vm1991_vm14 = vweird.f32 %v1985_v55 }
 0x48b   :  { %2313 = vmatpush.msra.mxu0 %v5860_v50 }
 0x48c   :  { %2387 = vmatpush.msra.mxu1 %v5861_v29  ;;  %2407 = vmatpush.msrb.mxu2 %v5862_v46  ;;  %v1998_v18 = vor.u32 1.1754944e-38, %v1997_v54  ;;  %vm1996_vm4 = vcmp.eq.f32.partialorder %v1995_v28, 8.507059e+37  ;;  %v5885_v46 = vld [vmem:[#allocation50_spill] sm:$0xff] }
 0x48d   :  { %2314 = vmatpush.msra.mxu0 %v5863_v62  ;;  %v2843_v57 = vpop.eup %2842  ;;  %v5886_v62 = vld [vmem:[#allocation104_spill] sm:$0xff] }
 0x48e   :  { %2388 = vmatpush.msra.mxu1 %v5864_v7  ;;  %2408 = vmatpush.msrb.mxu2 %v5865_v22  ;;  %v2006_v42 = vadd.f32 1.0, %v2843_v57  ;;  %v5887_v7 = vld [vmem:[#allocation62_spill] sm:$0xff] }
 0x48f   :  { %2315 = vmatpush.msra.mxu0 %v5866_v31  ;;  %v5888_v31 = vld [vmem:[#allocation48_spill] sm:$0xff] }
 0x490   :  { %2389 = vmatpush.msra.mxu1 %v5867_v63  ;;  %2409 = vmatpush.msrb.mxu2 %v5868_v56  ;;  %v2845_v41 = vpop.eup %2844  ;;  %2846 = vrcp.f32 %v2006_v42  ;;  %v2018_v50 = vand.u32 2147483648, %v2006_v42  ;;  %v2016_v57 = vand.u32 2147483647, %v2006_v42  ;;  %vm2012_vm3 = vweird.f32 %v2006_v42  ;;  %v5889_v63 = vld [vmem:[#allocation105_spill] sm:$0xff]  ;;  %v5890_v56 = vld [vmem:[#allocation52_spill] sm:$0xff] }
 0x491   :  { %2316 = vmatpush.msra.mxu0 %v5869_v21  ;;  %v1987_v48 = vmul.f32 %v2845_v41, %v1985_v55  ;;  %vm1992_vm6 = vweird.f32 %v2845_v41  ;;  %v5884_v55 = vld [vmem:[#allocation44_spill] sm:$0xff] }
 0x492   :  { %2390 = vmatpush.msra.mxu1 %v5870_v30  ;;  %2410 = vmatpush.msrb.mxu2 %v5871_v36  ;;  %vm1993_vm0 = vmor %vm1991_vm14, %vm1992_vm6  ;;  %v5892_v30 = vld [vmem:[#allocation33_spill] sm:$0xff]  ;;  %vm2017_vm7 = vcmp.eq.f32.partialorder %v2016_v57, 8.507059e+37 }
 0x493   :  { %2317 = vmatpush.msra.mxu0 %v5872_v6  ;;  %v1988_v38 = vsub.f32 1.0, %v1987_v48  ;;  %v5891_v48 = vld [vmem:[#allocation64_spill] sm:$0xff]  ;;  %v5893_v36 = vld [vmem:[#allocation49_spill] sm:$0xff] }
 0x494   :  { %2391 = vmatpush.msra.mxu1 %v5873_v10  ;;  %2411 = vmatpush.msrb.mxu2 %v5874_v13 }
 0x495   :  { %2318 = vmatpush.msra.mxu0 %v5875_v16  ;;  %v1989_v27 = vmul.f32 %v2845_v41, %v1988_v38  ;;  %v5895_v38 = vld [vmem:[#allocation22_spill] sm:$0xff] }
 0x496   :  { %2392 = vmatpush.msra.mxu1 %v5876_v51  ;;  %2412 = vmatpush.msrb.mxu2 %v5877_v45  ;;  %v2847_v34 = vpop.eup %2846 }
 0x497   :  { %2319 = vmatpush.msra.mxu0 %v5878_v40  ;;  %v2008_v11 = vmul.f32 %v2847_v34, %v2006_v42  ;;  %v1990_v8 = vadd.f32 %v2845_v41, %v1989_v27  ;;  %vm2013_vm1 = vweird.f32 %v2847_v34  ;;  %v5894_v42 = vld [vmem:[#allocation40_spill] sm:$0xff] }
 0x498   :  { %2393 = vmatpush.msra.mxu1 %v5879_v14  ;;  %2413 = vmatpush.msrb.mxu2 %v5880_v47  ;;  %vm2014_vm5 = vmor %vm2012_vm3, %vm2013_vm1 }
 0x499   :  { %2320 = vmatpush.msra.mxu0 %v5881_v9  ;;  %v2009_v53 = vsub.f32 1.0, %v2008_v11  ;;  %v1994_v59 = vsel %vm1993_vm0, %v2845_v41, %v1990_v8  ;;  %v2019_v41 = vor.u32 1.1754944e-38, %v2018_v50 }
 0x49a   :  { %2394 = vmatpush.msra.mxu1 %v5882_v20  ;;  %2414 = vmatpush.msrb.mxu2 %v5883_v32  ;;  %v1999_v60 = vsel %vm1996_vm4, %v1998_v18, %v1994_v59  ;;  %v5898_v32 = vld [vmem:[#allocation69_spill] sm:$0xff] }
 0x49b   :  { %2321 = vmatpush.msra.mxu0 %v5884_v55  ;;  %v2010_v0 = vmul.f32 %v2847_v34, %v2009_v53  ;;  %v2023_v29 = vmul.f32 %v2022_v1, %v1999_v60  ;;  %v5140_v53 = vld [vmem:[%s5202_s6] ss:$0 sm:$0xff] }
 0x49c   :  { %2395 = vmatpush.msra.mxu1 %v5885_v46  ;;  %2415 = vmatpush.msrb.mxu2 %v5886_v62 }
 0x49d   :  { %2322 = vmatpush.msra.mxu0 %v5887_v7  ;;  %v2011_v4 = vadd.f32 %v2847_v34, %v2010_v0  ;;  %v2028_v22 = vadd.f32 %v2027_v52, %v2023_v29  ;;  %v2143_v52 = vunpack.c.l.bf16 %v5898_v32 }
 0x49e   :  { %2396 = vmatpush.msra.mxu1 %v5888_v31  ;;  %2416 = vmatpush.msrb.mxu2 %v5889_v63 }
 0x49f   :  { %2323 = vmatpush.msra.mxu0 %v5890_v56  ;;  %v2015_v21 = vsel %vm2014_vm5, %v2847_v34, %v2011_v4  ;;  %2848 = vtanh.f32 %v2028_v22  ;;  %v5899_v4 = vld [vmem:[#allocation18_spill] sm:$0xff] }
 0x4a0   :  { %2397 = vmatpush.msra.mxu1 %v5891_v48  ;;  %2417 = vmatpush.msrb.mxu2 %v5892_v30  ;;  %v2020_v6 = vsel %vm2017_vm7, %v2019_v41, %v2015_v21  ;;  %v2234_v22 = vunpack.c.l.bf16 %v5899_v4  ;;  %v5900_v21 = vld [vmem:[#allocation27_spill] sm:$0xff] }
 0x4a1   :  { %2324 = vmatpush.msra.mxu0 %v5893_v36  ;;  %v2030_v10 = vsub.f32 1.0, %v2020_v6  ;;  %v2032_v16 = vmul.f32 %v2020_v6, %v4972_v2  ;;  %v2211_v48 = vrot.slane %v5900_v21, 4 }
 0x4a2   :  { %2398 = vmatpush.msra.mxu1 %v5894_v42  ;;  %2418 = vmatpush.msrb.mxu2 %v5895_v38 }
 0x4a3   :  { %v2213_v38 = vunpack.c.l.bf16 %v2211_v48 }
 0x4a5   :  { %v2849_v13 = vpop.eup %2848 }
 0x4a6   :  { %v2031_v54 = vmul.f32 %v2849_v13, %v2030_v10 }
 0x4a8   :  { %v2033_v27 = vadd.f32 %v2032_v16, %v2031_v54 }
 0x4aa   :  { %v5114_v51 = vsel %vm1308_vm10, %v2033_v27, %v4972_v2 }
 0x4ab   :  { %2166 = vmatmul.f32.vlgmr.msrb.gmra.mxu3 %v5114_v51  ;;  %2186 = vmatmul.f32.vlgmr.msrb.gmra.mxu0 %v5114_v51 }
 0x4ac   :  { %2206 = vmatmul.f32.vlgmr.msrb.gmra.mxu1 %v5114_v51  ;;  %2423 = vmatpush.msrb.mxu3 %v4661_v58  ;;  %v5897_v58 = vld [vmem:[#allocation19_spill] sm:$0xff] }
 0x4ae   :  { %2424 = vmatpush.msrb.mxu3 %v4670_v49  ;;  %v2118_v49 = vrot.slane %v5897_v58, 4 }
 0x4b0   :  { %2425 = vmatpush.msrb.mxu3 %v4679_v61  ;;  %v2096_v61 = vunpack.c.l.bf16 %v5897_v58 }
 0x4b2   :  { %2426 = vmatpush.msrb.mxu3 %v4688_v12  ;;  %v2120_v12 = vunpack.c.l.bf16 %v2118_v49 }
 0x4b4   :  { %2427 = vmatpush.msrb.mxu3 %v4697_v3 }
 0x4b6   :  { %2428 = vmatpush.msrb.mxu3 %v4706_v25 }
 0x4b8   :  { %2429 = vmatpush.msrb.mxu3 %v4995_v5 }
 0x4ba   :  { %2430 = vmatpush.msrb.mxu3 %v5000_v35 }
 0x4bc   :  { %2431 = vmatpush.msrb.mxu3 %v5005_v39 }
 0x4be   :  { %2432 = vmatpush.msrb.mxu3 %v5010_v33 }
 0x4c0   :  { %2433 = vmatpush.msrb.mxu3 %v5015_v26 }
 0x4c2   :  { %2434 = vmatpush.msrb.mxu3 %v5020_v43 }
 0x4c4   :  { %2435 = vmatpush.msrb.mxu3 %v5025_v17 }
 0x4c6   :  { %2436 = vmatpush.msrb.mxu3 %v5030_v15 }
 0x4c8   :  { %2437 = vmatpush.msrb.mxu3 %v5035_v37 }
 0x4ca   :  { %2438 = vmatpush.msrb.mxu3 %v5040_v24 }
 0x4ff   :  { %v2053_v3 = vpop.f32.mrf.mxu0  ;;  %v2073_v25 = vpop.f32.mrf.mxu1 }
 0x500   :  { %v2097_v2 = vadd.f32 %v2096_v61, %v2053_v3  ;;  %v2121_v5 = vadd.f32 %v2120_v12, %v2073_v25 }
 0x502   :  { %v2686_v35 = vmul.f32 -1.442695, %v2097_v2  ;;  %v2687_v39 = vmul.f32 -1.442695, %v2121_v5 }
 0x504   :  { %2850 = vpow2.f32 %v2686_v35 }
 0x505   :  { %2852 = vpow2.f32 %v2687_v39 }
 0x506   :  { %v2093_v14 = vpop.f32.mrf.mxu2 }
 0x507   :  { %v2141_v59 = vadd.f32 %v5140_v53, %v2093_v14 }
 0x50a   :  { %v2851_v33 = vpop.eup %2850 }
 0x50b   :  { %v2853_v26 = vpop.eup %2852  ;;  %v2101_v43 = vadd.f32 1.0, %v2851_v33 }
 0x50c   :  { %v2125_v17 = vadd.f32 1.0, %v2853_v26  ;;  %v2258_v26 = vrot.slane %v5899_v4, 4 }
 0x50d   :  { %2854 = vrcp.f32 %v2101_v43  ;;  %v2113_v19 = vand.u32 2147483648, %v2101_v43  ;;  %v2111_v11 = vand.u32 2147483647, %v2101_v43  ;;  %vm2107_vm9 = vweird.f32 %v2101_v43 }
 0x50e   :  { %2856 = vrcp.f32 %v2125_v17  ;;  %v2137_v60 = vand.u32 2147483648, %v2125_v17  ;;  %vm2131_vm14 = vweird.f32 %v2125_v17  ;;  %v2135_v0 = vand.u32 2147483647, %v2125_v17 }
 0x50f   :  { %v2114_v18 = vor.u32 1.1754944e-38, %v2113_v19  ;;  %vm2112_vm13 = vcmp.eq.f32.partialorder %v2111_v11, 8.507059e+37 }
 0x510   :  { %v2138_v46 = vor.u32 1.1754944e-38, %v2137_v60  ;;  %vm2136_vm4 = vcmp.eq.f32.partialorder %v2135_v0, 8.507059e+37 }
 0x513   :  { %v2855_v15 = vpop.eup %2854 }
 0x514   :  { %v2857_v37 = vpop.eup %2856  ;;  %v2103_v24 = vmul.f32 %v2855_v15, %v2101_v43  ;;  %vm2108_vm10 = vweird.f32 %v2855_v15 }
 0x515   :  { %v2127_v45 = vmul.f32 %v2857_v37, %v2125_v17  ;;  %vm2109_vm11 = vmor %vm2107_vm9, %vm2108_vm10  ;;  %vm2132_vm6 = vweird.f32 %v2857_v37 }
 0x516   :  { %v2104_v34 = vsub.f32 1.0, %v2103_v24  ;;  %vm2133_vm0 = vmor %vm2131_vm14, %vm2132_vm6 }
 0x517   :  { %v2128_v44 = vsub.f32 1.0, %v2127_v45 }
 0x518   :  { %v2105_v40 = vmul.f32 %v2855_v15, %v2104_v34 }
 0x519   :  { %v2129_v8 = vmul.f32 %v2857_v37, %v2128_v44  ;;  %v2260_v44 = vunpack.c.l.bf16 %v2258_v26  ;;  %v5905_v26 = vld [vmem:[#allocation42_spill] sm:$0xff] }
 0x51a   :  { %v2106_v47 = vadd.f32 %v2855_v15, %v2105_v40 }
 0x51b   :  { %v2130_v1 = vadd.f32 %v2857_v37, %v2129_v8 }
 0x51c   :  { %v2110_v9 = vsel %vm2109_vm11, %v2855_v15, %v2106_v47  ;;  %v5159_v15 = vld [vmem:[%s5203_s7] ss:$0 sm:$0xff] }
 0x51d   :  { %v2115_v20 = vsel %vm2112_vm13, %v2114_v18, %v2110_v9  ;;  %v2134_v29 = vsel %vm2133_vm0, %v2857_v37, %v2130_v1 }
 0x51e   :  { %v2142_v55 = vmul.f32 %v2141_v59, %v2115_v20  ;;  %v2139_v62 = vsel %vm2136_vm4, %v2138_v46, %v2134_v29 }
 0x51f   :  { %v2146_v57 = vsub.f32 1.0, %v2139_v62  ;;  %v2148_v56 = vmul.f32 %v2139_v62, %v5054_v23 }
 0x520   :  { %v2144_v50 = vadd.f32 %v2143_v52, %v2142_v55  ;;  %v5903_v55 = vld [vmem:[#allocation17_spill] sm:$0xff] }
 0x521   :  { %v2351_v0 = vrot.slane %v5903_v55, 4 }
 0x522   :  { %2858 = vtanh.f32 %v2144_v50  ;;  %v2329_v50 = vunpack.c.l.bf16 %v5903_v55 }
 0x523   :  { %v2353_v29 = vunpack.c.l.bf16 %v2351_v0 }
 0x528   :  { %v2859_v7 = vpop.eup %2858  ;;  %v2187_v63 = vpop.f32.mrf.mxu0 }
 0x529   :  { %v2147_v31 = vmul.f32 %v2859_v7, %v2146_v57  ;;  %v2235_v41 = vadd.f32 %v2234_v22, %v2187_v63  ;;  %v2207_v33 = vpop.f32.mrf.mxu1 }
 0x52a   :  { %v2255_v37 = vadd.f32 %v5159_v15, %v2207_v33 }
 0x52b   :  { %v2149_v30 = vadd.f32 %v2148_v56, %v2147_v31  ;;  %v2689_v36 = vmul.f32 -1.442695, %v2235_v41 }
 0x52d   :  { %v5150_v42 = vsel %vm1062_vm15, %v2149_v30, %v5054_v23  ;;  %2860 = vpow2.f32 %v2689_v36 }
 0x52e   :  { %2285 = vmatmul.f32.vlgmr.msra.gmra.mxu2 %v5150_v42  ;;  %2305 = vmatmul.f32.vlgmr.msra.gmra.mxu3 %v5150_v42  ;;  %v2167_v10 = vpop.f32.mrf.mxu3 }
 0x52f   :  { %2325 = vmatmul.f32.vlgmr.msra.gmra.mxu0 %v5150_v42  ;;  %v2214_v13 = vadd.f32 %v2213_v38, %v2167_v10 }
 0x531   :  { %v2688_v54 = vmul.f32 -1.442695, %v2214_v13 }
 0x533   :  { %v2861_v16 = vpop.eup %2860  ;;  %2862 = vpow2.f32 %v2688_v54 }
 0x534   :  { %v2239_v27 = vadd.f32 1.0, %v2861_v16 }
 0x536   :  { %2864 = vrcp.f32 %v2239_v27  ;;  %v2251_v19 = vand.u32 2147483648, %v2239_v27  ;;  %vm2245_vm10 = vweird.f32 %v2239_v27  ;;  %v2249_v11 = vand.u32 2147483647, %v2239_v27 }
 0x538   :  { %v2252_v47 = vor.u32 1.1754944e-38, %v2251_v19  ;;  %vm2250_vm11 = vcmp.eq.f32.partialorder %v2249_v11, 8.507059e+37 }
 0x539   :  { %v2863_v28 = vpop.eup %2862 }
 0x53a   :  { %v2218_v58 = vadd.f32 1.0, %v2863_v28 }
 0x53c   :  { %2866 = vrcp.f32 %v2218_v58  ;;  %v2865_v23 = vpop.eup %2864  ;;  %v2230_v2 = vand.u32 2147483648, %v2218_v58  ;;  %v2228_v35 = vand.u32 2147483647, %v2218_v58  ;;  %vm2224_vm1 = vweird.f32 %v2218_v58 }
 0x53d   :  { %v2241_v49 = vmul.f32 %v2865_v23, %v2239_v27  ;;  %vm2246_vm7 = vweird.f32 %v2865_v23 }
 0x53e   :  { %v2231_v17 = vor.u32 1.1754944e-38, %v2230_v2  ;;  %vm2229_vm5 = vcmp.eq.f32.partialorder %v2228_v35, 8.507059e+37  ;;  %vm2247_vm9 = vmor %vm2245_vm10, %vm2246_vm7 }
 0x53f   :  { %v2242_v3 = vsub.f32 1.0, %v2241_v49 }
 0x541   :  { %v2243_v39 = vmul.f32 %v2865_v23, %v2242_v3 }
 0x542   :  { %v2867_v61 = vpop.eup %2866 }
 0x543   :  { %v2220_v12 = vmul.f32 %v2867_v61, %v2218_v58  ;;  %vm2225_vm15 = vweird.f32 %v2867_v61  ;;  %v2244_v34 = vadd.f32 %v2865_v23, %v2243_v39 }
 0x544   :  { %vm2226_vm3 = vmor %vm2224_vm1, %vm2225_vm15 }
 0x545   :  { %v2221_v25 = vsub.f32 1.0, %v2220_v12  ;;  %v2248_v14 = vsel %vm2247_vm9, %v2865_v23, %v2244_v34  ;;  %v5904_v12 = vld [vmem:[#allocation23_spill] sm:$0xff] }
 0x546   :  { %v2253_v18 = vsel %vm2250_vm11, %v2252_v47, %v2248_v14  ;;  %v2376_v3 = vunpack.c.l.bf16 %v5904_v12 }
 0x547   :  { %v2222_v5 = vmul.f32 %v2867_v61, %v2221_v25  ;;  %v2263_v9 = vsub.f32 1.0, %v2253_v18  ;;  %v2265_v20 = vmul.f32 %v2253_v18, %v5114_v51  ;;  %v5907_v18 = vld [vmem:[#allocation21_spill] sm:$0xff] }
 0x549   :  { %v2223_v43 = vadd.f32 %v2867_v61, %v2222_v5 }
 0x54b   :  { %v2227_v24 = vsel %vm2226_vm3, %v2867_v61, %v2223_v43  ;;  %v2444_v43 = vrot.slane %v5905_v26, 4 }
 0x54c   :  { %v2232_v45 = vsel %vm2229_vm5, %v2231_v17, %v2227_v24 }
 0x54d   :  { %v2256_v40 = vmul.f32 %v2255_v37, %v2232_v45  ;;  %v2446_v24 = vunpack.c.l.bf16 %v2444_v43 }
 0x54f   :  { %v2261_v8 = vadd.f32 %v2260_v44, %v2256_v40 }
 0x551   :  { %2868 = vtanh.f32 %v2261_v8  ;;  %v2727_v8 = vld [vmem:[%s5204_s8] ss:$0 sm:$0xff] }
 0x557   :  { %v2869_v59 = vpop.eup %2868 }
 0x558   :  { %v2264_v1 = vmul.f32 %v2869_v59, %v2263_v9  ;;  %v2467_v9 = vunpack.c.l.bf16 %v5907_v18 }
 0x55a   :  { %v2266_v32 = vadd.f32 %v2265_v20, %v2264_v1 }
 0x55c   :  { %v5166_v60 = vsel %vm1055_vm2, %v2266_v32, %v5114_v51 }
 0x55d   :  { %2399 = vmatmul.f32.vlgmr.msra.gmra.mxu1 %v5166_v60  ;;  %2419 = vmatmul.f32.vlgmr.msrb.gmra.mxu2 %v5166_v60 }
 0x55e   :  { %2439 = vmatmul.f32.vlgmr.msrb.gmra.mxu3 %v5166_v60 }
 0x5ac   :  { %v2326_v54 = vpop.f32.mrf.mxu0 }
 0x5ad   :  { %v2374_v58 = vadd.f32 %v5140_v53, %v2326_v54 }
 0x5b1   :  { %v2286_v46 = vpop.f32.mrf.mxu2  ;;  %v2306_v62 = vpop.f32.mrf.mxu3 }
 0x5b2   :  { %v2330_v57 = vadd.f32 %v2329_v50, %v2286_v46  ;;  %v2354_v7 = vadd.f32 %v2353_v29, %v2306_v62 }
 0x5b4   :  { %v2690_v4 = vmul.f32 -1.442695, %v2330_v57  ;;  %v2691_v22 = vmul.f32 -1.442695, %v2354_v7 }
 0x5b6   :  { %2870 = vpow2.f32 %v2690_v4 }
 0x5b7   :  { %2872 = vpow2.f32 %v2691_v22 }
 0x5bc   :  { %v2871_v51 = vpop.eup %2870 }
 0x5bd   :  { %v2873_v31 = vpop.eup %2872  ;;  %v2334_v63 = vadd.f32 1.0, %v2871_v51  ;;  %v2491_v51 = vrot.slane %v5907_v18, 4 }
 0x5be   :  { %v2358_v56 = vadd.f32 1.0, %v2873_v31 }
 0x5bf   :  { %2874 = vrcp.f32 %v2334_v63  ;;  %v2346_v6 = vand.u32 2147483648, %v2334_v63  ;;  %v2344_v13 = vand.u32 2147483647, %v2334_v63  ;;  %vm2340_vm13 = vweird.f32 %v2334_v63 }
 0x5c0   :  { %2876 = vrcp.f32 %v2358_v56  ;;  %v2370_v2 = vand.u32 2147483648, %v2358_v56  ;;  %vm2364_vm4 = vweird.f32 %v2358_v56  ;;  %v2368_v5 = vand.u32 2147483647, %v2358_v56 }
 0x5c1   :  { %v2347_v28 = vor.u32 1.1754944e-38, %v2346_v6  ;;  %vm2345_vm14 = vcmp.eq.f32.partialorder %v2344_v13, 8.507059e+37 }
 0x5c2   :  { %v2371_v33 = vor.u32 1.1754944e-38, %v2370_v2  ;;  %vm2369_vm1 = vcmp.eq.f32.partialorder %v2368_v5, 8.507059e+37 }
 0x5c5   :  { %v2875_v41 = vpop.eup %2874 }
 0x5c6   :  { %v2877_v21 = vpop.eup %2876  ;;  %v2336_v48 = vmul.f32 %v2875_v41, %v2334_v63  ;;  %vm2341_vm2 = vweird.f32 %v2875_v41 }
 0x5c7   :  { %v2360_v30 = vmul.f32 %v2877_v21, %v2358_v56  ;;  %vm2342_vm6 = vmor %vm2340_vm13, %vm2341_vm2  ;;  %vm2365_vm0 = vweird.f32 %v2877_v21 }
 0x5c8   :  { %v2337_v36 = vsub.f32 1.0, %v2336_v48  ;;  %vm2366_vm15 = vmor %vm2364_vm4, %vm2365_vm0 }
 0x5c9   :  { %v2361_v38 = vsub.f32 1.0, %v2360_v30 }
 0x5ca   :  { %v2338_v10 = vmul.f32 %v2875_v41, %v2337_v36  ;;  %v2493_v36 = vunpack.c.l.bf16 %v2491_v51 }
 0x5cb   :  { %v2362_v16 = vmul.f32 %v2877_v21, %v2361_v38 }
 0x5cc   :  { %v2339_v27 = vadd.f32 %v2875_v41, %v2338_v10 }
 0x5cd   :  { %v2363_v61 = vadd.f32 %v2877_v21, %v2362_v16 }
 0x5ce   :  { %v2343_v23 = vsel %vm2342_vm6, %v2875_v41, %v2339_v27 }
 0x5cf   :  { %v2348_v49 = vsel %vm2345_vm14, %v2347_v28, %v2343_v23  ;;  %v2367_v39 = vsel %vm2366_vm15, %v2877_v21, %v2363_v61 }
 0x5d0   :  { %v2375_v25 = vmul.f32 %v2374_v58, %v2348_v49  ;;  %v2372_v53 = vsel %vm2369_vm1, %v2371_v33, %v2367_v39  ;;  %v2729_v33 = vld [vmem:[#allocation3] ss:$0 sm:$0xff] }
 0x5d1   :  { %v2379_v17 = vsub.f32 1.0, %v2372_v53  ;;  %v2381_v44 = vmul.f32 %v2372_v53, %v5150_v42 }
 0x5d2   :  { %v2377_v35 = vadd.f32 %v2376_v3, %v2375_v25  ;;  %v2728_v25 = vld [vmem:[%s5205_s9] ss:$0 sm:$0xff]  ;;  %s3229_s9 = smov [#allocation12]  }
 0x5d3   :  { %s2554_s15 = sshll.u32 %s3229_s9, 4  ;;  %s2555_s15 = int_to_ptr.vmem [resolvable:$true] %s2554_s15 }
 0x5d4   :  { %2878 = vtanh.f32 %v2377_v35 }
 0x5da   :  { %v2879_v37 = vpop.eup %2878  ;;  %v2400_v45 = vpop.f32.mrf.mxu1 }
 0x5db   :  { %v2380_v34 = vmul.f32 %v2879_v37, %v2379_v17  ;;  %v2447_v19 = vadd.f32 %v2446_v24, %v2400_v45 }
 0x5dd   :  { %v2382_v40 = vadd.f32 %v2381_v44, %v2380_v34  ;;  %v2692_v11 = vmul.f32 -1.442695, %v2447_v19 }
 0x5df   :  { %v2500_v47 = vsel %vm809_vm8, %v2382_v40, %v5150_v42  ;;  %2880 = vpow2.f32 %v2692_v11 }
 0x5e0   :  { %v2502_v59 = vmax.f32 %v2500_v47, 0.0  ;;  %v2420_v1 = vpop.f32.mrf.mxu2 }
 0x5e1   :  { %v2468_v20 = vadd.f32 %v2467_v9, %v2420_v1  ;;  %v2440_v31 = vpop.f32.mrf.mxu3 }
 0x5e2   :  { %v2508_v32 = vmul.f32 %v2727_v8, %v2502_v59  ;;  %v2488_v30 = vadd.f32 %v5159_v15, %v2440_v31 }
 0x5e3   :  { %v2693_v52 = vmul.f32 -1.442695, %v2468_v20 }
 0x5e4   :  { %2509 = vadd.xlane.f32.xlu2 %v2508_v32 }
 0x5e5   :  { %v2881_v55 = vpop.eup %2880  ;;  %2882 = vpow2.f32 %v2693_v52 }
 0x5e6   :  { %v2451_v0 = vadd.f32 1.0, %v2881_v55 }
 0x5e8   :  { %2884 = vrcp.f32 %v2451_v0  ;;  %v2463_v42 = vand.u32 2147483648, %v2451_v0  ;;  %v2461_v4 = vand.u32 2147483647, %v2451_v0  ;;  %vm2457_vm3 = vweird.f32 %v2451_v0 }
 0x5ea   :  { %v2464_v41 = vor.u32 1.1754944e-38, %v2463_v42  ;;  %vm2462_vm7 = vcmp.eq.f32.partialorder %v2461_v4, 8.507059e+37 }
 0x5eb   :  { %v2883_v50 = vpop.eup %2882 }
 0x5ec   :  { %v2472_v29 = vadd.f32 1.0, %v2883_v50 }
 0x5ee   :  { %v2885_v46 = vpop.eup %2884  ;;  %2886 = vrcp.f32 %v2472_v29  ;;  %v2484_v10 = vand.u32 2147483648, %v2472_v29  ;;  %v2482_v54 = vand.u32 2147483647, %v2472_v29  ;;  %vm2478_vm9 = vweird.f32 %v2472_v29 }
 0x5ef   :  { %v2453_v62 = vmul.f32 %v2885_v46, %v2451_v0  ;;  %vm2458_vm8 = vweird.f32 %v2885_v46 }
 0x5f0   :  { %vm2459_vm5 = vmor %vm2457_vm3, %vm2458_vm8  ;;  %v2485_v58 = vor.u32 1.1754944e-38, %v2484_v10  ;;  %vm2483_vm2 = vcmp.eq.f32.partialorder %v2482_v54, 8.507059e+37 }
 0x5f1   :  { %v2454_v57 = vsub.f32 1.0, %v2453_v62 }
 0x5f3   :  { %v2455_v7 = vmul.f32 %v2885_v46, %v2454_v57 }
 0x5f4   :  { %v2887_v22 = vpop.eup %2886 }
 0x5f5   :  { %v2474_v63 = vmul.f32 %v2887_v22, %v2472_v29  ;;  %v2456_v56 = vadd.f32 %v2885_v46, %v2455_v7  ;;  %vm2479_vm10 = vweird.f32 %v2887_v22 }
 0x5f6   :  { %vm2480_vm11 = vmor %vm2478_vm9, %vm2479_vm10 }
 0x5f7   :  { %v2475_v21 = vsub.f32 1.0, %v2474_v63  ;;  %v2460_v48 = vsel %vm2459_vm5, %v2885_v46, %v2456_v56 }
 0x5f8   :  { %v2465_v6 = vsel %vm2462_vm7, %v2464_v41, %v2460_v48 }
 0x5f9   :  { %v2476_v38 = vmul.f32 %v2887_v22, %v2475_v21  ;;  %v2489_v13 = vmul.f32 %v2488_v30, %v2465_v6 }
 0x5fb   :  { %v2494_v16 = vadd.f32 %v2493_v36, %v2489_v13  ;;  %v2477_v27 = vadd.f32 %v2887_v22, %v2476_v38 }
 0x5fd   :  { %2888 = vtanh.f32 %v2494_v16  ;;  %v2481_v28 = vsel %vm2480_vm11, %v2887_v22, %v2477_v27 }
 0x5fe   :  { %v2486_v23 = vsel %vm2483_vm2, %v2485_v58, %v2481_v28 }
 0x5ff   :  { %v2496_v49 = vsub.f32 1.0, %v2486_v23  ;;  %v2498_v15 = vmul.f32 %v2486_v23, %v5166_v60 }
 0x603   :  { %v2889_v61 = vpop.eup %2888 }
 0x604   :  { %v2497_v12 = vmul.f32 %v2889_v61, %v2496_v49 }
 0x606   :  { %v2499_v3 = vadd.f32 %v2498_v15, %v2497_v12 }
 0x608   :  { %v2501_v5 = vsel %vm802_vm12, %v2499_v3, %v5166_v60 }
 0x609   :  { %v2503_v35 = vmax.f32 %v2501_v5, 0.0 }
 0x60b   :  { %v2515_v39 = vmul.f32 %v2728_v25, %v2503_v35 }
 0x60d   :  { %2516 = vadd.xlane.f32.xlu0 %v2515_v39 }
 0x657   :  { %v2510_v26 = vpop.xlane.xlu2 %2509 }
 0x680   :  { %v2517_v43 = vpop.xlane.xlu0 %2516 }
 0x681   :  { %v2518_v53 = vadd.f32 %v2517_v43, %v2510_v26 }
 0x683   :  { %v2523_v17 = vadd.f32 %v2729_v33, %v2518_v53 }
 0x685   :  { %v2694_v37 = vmul.f32 -1.442695, %v2523_v17 }
 0x687   :  { %2890 = vpow2.f32 %v2694_v37 }
 0x68d   :  { %v2891_v24 = vpop.eup %2890 }
 0x68e   :  { %v2527_v45 = vadd.f32 1.0, %v2891_v24 }
 0x690   :  { %2892 = vrcp.f32 %v2527_v45  ;;  %v2539_v40 = vand.u32 2147483648, %v2527_v45  ;;  %v2537_v60 = vand.u32 2147483647, %v2527_v45  ;;  %vm2533_vm12 = vweird.f32 %v2527_v45 }
 0x692   :  { %v2540_v14 = vor.u32 1.1754944e-38, %v2539_v40  ;;  %vm2538_vm14 = vcmp.eq.f32.partialorder %v2537_v60, 8.507059e+37 }
 0x696   :  { %v2893_v34 = vpop.eup %2892 }
 0x697   :  { %v2529_v44 = vmul.f32 %v2893_v34, %v2527_v45  ;;  %vm2534_vm13 = vweird.f32 %v2893_v34 }
 0x698   :  { %vm2535_vm6 = vmor %vm2533_vm12, %vm2534_vm13 }
 0x699   :  { %v2530_v19 = vsub.f32 1.0, %v2529_v44 }
 0x69b   :  { %v2531_v11 = vmul.f32 %v2893_v34, %v2530_v19 }
 0x69d   :  { %v2532_v8 = vadd.f32 %v2893_v34, %v2531_v11 }
 0x69f   :  { %v2536_v47 = vsel %vm2535_vm6, %v2893_v34, %v2532_v8 }
 0x6a0   :  { %v2541_v18 = vsel %vm2538_vm14, %v2540_v14, %v2536_v47 }
 0x6a1   :  { %2545 = vperm.xlu1 %2723, %v2541_v18  }
 0x713   :  { %v2546_v9 = vpop.permute.xlu1 %2545 }
 0x714   :  { %2548 = vst [vmem:[#allocation12] sm:$0xff] %v2546_v9 }
 0x715   :  { %2559 = dma.vmem_to_hbm [thread:$0]  %s2555_s15, 128, %s2557_s0, [#allocation6]  }
 0x716   :  { %3217 = dma.done.wait [#allocation6], 128  }
 0x717   :  { %3218 = vsyncadd [#allocation6], 4294967168 }
 0x718   :  { %2564 = vsyncpa [#allocation5], 1 }
 0x719   :  { %2565 = vsyncpa [#allocation8], 1 }
 0x71a   :  { %2566 = vsyncpa [#allocation11], 1 }
 0x71b   :  { %2567 = vsyncpa [#allocation6], 1 }

</bundles_post_ra>
